<compile_context>
chip_gen: v5e
topology: v5e:2x2
jax: 0.10.0
libtpu: 0.0.40
codegen_flags: <defaults>
</compile_context>

<pallas_src>
import functools

import numpy as np
import jax
import jax.numpy as jnp
from jax.experimental import pallas as pl
from jax.experimental.pallas import tpu as pltpu

NUM_LAYERS = 4  # nn.Sequential of 4 selfAttention blocks


def msp_kernel(x_ref, bias_ref, ssum_ref, w_in_ref, b_in_ref,
               wqkv_ref, bqkv_ref, w1_ref, b1_ref, w2_ref, b2_ref,
               w_out_ref, b_out_ref, o_ref, *, dim_p):
    """One batch group: input_fc -> 4x selfAttention -> output_fc -> carrier-normalize.

    x_ref:   [1, Mp, indim]   Mp = padded (batch-tile * carriers * routes) rows.
    bias_ref:[Mp, Mp]         block-diagonal attention bias (adj + I on real
                              diag blocks, pad rows self-only, -1e9 off-block).
    ssum_ref:[Mp, Mp]         0/1 matrix summing over carriers per (batch, route);
                              pad rows only match themselves.
    All weights are zero-padded to dim_p (multiple of 128) lanes; the scale
    dim**-0.5 is already folded into the q columns of wqkv / bqkv.
    """
    bias = bias_ref[...]                               # hoisted out of the layer loop

    x2 = x_ref[0]                                      # [Mp, indim]
    h = jnp.dot(x2, w_in_ref[...],
                preferred_element_type=jnp.float32) + b_in_ref[0]          # [Mp, dim_p]

    for l in range(NUM_LAYERS):
        # fused q/k/v projection: one [Mp,dim_p] x [dim_p,3*dim_p] MXU matmul,
        # tile-aligned slices at lanes 0 / dim_p / 2*dim_p.
        qkv = jnp.dot(h, wqkv_ref[l],
                      preferred_element_type=jnp.float32) + bqkv_ref[l]    # [Mp, 3*dim_p]
        q = qkv[:, :dim_p]
        k = qkv[:, dim_p:2 * dim_p]
        v = qkv[:, 2 * dim_p:]

        # flat block-diagonal attention: single [Mp,dim_p] x [dim_p,Mp] MXU matmul
        # (scale already folded into wq/bq)
        s = jax.lax.dot_general(q, k, (((1,), (1,)), ((), ())),
                                preferred_element_type=jnp.float32) + bias
        s = s - jnp.max(s, axis=-1, keepdims=True)
        e = jnp.exp(s)
        p = e * pl.reciprocal(jnp.sum(e, axis=-1, keepdims=True), approx=True)

        attn = jnp.dot(p, v, preferred_element_type=jnp.float32)           # [Mp, dim_p]
        out = jnp.maximum(attn, 0.0) + h                                   # relu + residual

        # feedForward: relu(L2(relu(L1(out)))) + out
        t = jnp.maximum(jnp.dot(out, w1_ref[l],
                                preferred_element_type=jnp.float32) + b1_ref[l], 0.0)
        t = jnp.dot(t, w2_ref[l], preferred_element_type=jnp.float32) + b2_ref[l]
        h = jnp.maximum(t, 0.0) + out

    # output_fc (outdim == 1): contract over dim_p directly -> lane-dense [1, Mp]
    y = jax.lax.dot_general(w_out_ref[...], h, (((1,), (1,)), ((), ())),
                            preferred_element_type=jnp.float32) + b_out_ref[...]
    # carrier-sum denominator per (batch, route) via matmul with the 0/1 sum matrix
    denom = jnp.dot(y, ssum_ref[...], preferred_element_type=jnp.float32)  # [1, Mp]
    # exact divide on the user-visible output (trivial cost on a [1, Mp] row)
    o_ref[...] = y / denom


def _round_up(n, m):
    return ((n + m - 1) // m) * m


def _pick_batch_tile(B, rows_per_batch, cap=256):
    """Largest divisor of B such that bt*rows_per_batch stays <= cap rows
    (bounds the O(M^2) masked-attention waste while keeping lane density)."""
    bt = 1
    for cand in range(1, B + 1):
        if B % cand == 0 and cand * rows_per_batch <= max(cap, rows_per_batch):
            bt = cand
    return bt


def _pad_last(a, target):
    p = target - a.shape[-1]
    if p == 0:
        return a
    return jnp.pad(a, [(0, 0)] * (a.ndim - 1) + [(0, p)])


def _pad_last2(a, t1, t2):
    p1, p2 = t1 - a.shape[-2], t2 - a.shape[-1]
    if p1 == 0 and p2 == 0:
        return a
    return jnp.pad(a, [(0, 0)] * (a.ndim - 2) + [(0, p1), (0, p2)])


def msp_forward(x, w_in, b_in, wq, bq, wk, bk, wv, bv, w1, b1, w2, b2,
                w_out, b_out, adj_plus):
    B, C, R, indim = x.shape
    dim = w_in.shape[1]
    scale = dim ** (-0.5)

    per = C * R
    bt = _pick_batch_tile(B, per)
    G = B // bt
    m_real = bt * per                       # real rows per grid step
    Mp = _round_up(m_real, 128)             # lane-dense padded rows per step
    dim_p = _round_up(dim, 128)             # lane-dense hidden width

    # flatten (batch-tile, carrier, route) into the matmul M dimension and pad rows
    x_flat = x.reshape(G, m_real, indim)
    if Mp > m_real:
        x_flat = jnp.pad(x_flat, ((0, 0), (0, Mp - m_real), (0, 0)))

    # fold softmax scale into q weights/biases; zero-pad dim -> dim_p; fuse qkv
    wqkv = jnp.concatenate([_pad_last2(wq * scale, dim_p, dim_p),
                            _pad_last2(wk, dim_p, dim_p),
                            _pad_last2(wv, dim_p, dim_p)], axis=-1)   # [L, dim_p, 3*dim_p]
    bqkv = jnp.concatenate([_pad_last(bq * scale, dim_p),
                            _pad_last(bk, dim_p),
                            _pad_last(bv, dim_p)], axis=-1)           # [L, 3*dim_p]
    w_in_p = _pad_last(w_in, dim_p)
    b_in_p = _pad_last(b_in, dim_p)
    w1_p = _pad_last2(w1, dim_p, dim_p)
    b1_p = _pad_last(b1, dim_p)
    w2_p = _pad_last2(w2, dim_p, dim_p)
    b2_p = _pad_last(b2, dim_p)
    w_out_p = _pad_last(w_out, dim_p)                                 # [1, dim_p]

    rows = jnp.arange(Mp, dtype=jnp.int32)
    real = rows < m_real

    # block-diagonal attention bias: adj+I on each real per-(batch,carrier) RxR
    # block, pad rows attend only to themselves, -1e9 everywhere else.
    blk = jnp.where(real, rows // R, (m_real // R) + rows)            # unique pad blocks
    same_block = blk[:, None] == blk[None, :]
    adj_big = adj_plus[(rows % R)[:, None], (rows % R)[None, :]]      # [Mp, Mp]
    attn_bias = jnp.where(same_block, adj_big, jnp.float32(-1e9)).astype(jnp.float32)

    # carrier-sum matrix: 1 where (batch, route) match (sums over carriers);
    # pad rows only match themselves (denominator = own value, never 0/0-prone).
    gid_b = jnp.where(real, rows // per, Mp + rows)
    gid_r = jnp.where(real, rows % R, 0)
    ssum = ((gid_b[:, None] == gid_b[None, :]) &
            (gid_r[:, None] == gid_r[None, :])).astype(jnp.float32)   # [Mp, Mp]

    weights = (attn_bias, ssum, w_in_p, b_in_p, wqkv, bqkv,
               w1_p, b1_p, w2_p, b2_p, w_out_p, b_out)

    def fullspec(a):
        nd = a.ndim
        return pl.BlockSpec(a.shape, lambda g, _nd=nd: (0,) * _nd)

    in_specs = [pl.BlockSpec((1, Mp, indim), lambda g: (g, 0, 0))]
    in_specs += [fullspec(a) for a in weights]
    out_specs = pl.BlockSpec((1, Mp), lambda g: (g, 0))               # lane-dense output slab

    kernel = functools.partial(msp_kernel, dim_p=dim_p)
    out_flat = pl.pallas_call(
        kernel,
        out_shape=jax.ShapeDtypeStruct((G, Mp), jnp.float32),
        grid_spec=pltpu.PrefetchScalarGridSpec(
            num_scalar_prefetch=0,
            grid=(G,),
            in_specs=in_specs,
            out_specs=out_specs),
        compiler_params=pltpu.CompilerParams(
            dimension_semantics=("parallel",)),   # independent batch groups (v7x 2-TC)
    )(x_flat, *weights)

    return out_flat[:, :m_real].reshape(B, C, R)


def msp_reference(x, w_in, b_in, wq, bq, wk, bk, wv, bv, w1, b1, w2, b2,
                  w_out, b_out, adj_plus):
    """Pure-JAX reference mirroring the PyTorch forward."""
    dim = w_in.shape[1]
    h = jnp.einsum('bcrf,fd->bcrd', x, w_in) + b_in[0]
    for l in range(NUM_LAYERS):
        q = jnp.einsum('bcrd,de->bcre', h, wq[l]) + bq[l]
        k = jnp.einsum('bcrd,de->bcre', h, wk[l]) + bk[l]
        v = jnp.einsum('bcrd,de->bcre', h, wv[l]) + bv[l]
        corr = jnp.einsum('bcrd,bcsd->bcrs', q, k) * dim ** (-0.5) + adj_plus
        p = jax.nn.softmax(corr, axis=-1)
        out = jnp.maximum(jnp.einsum('bcrs,bcsd->bcrd', p, v), 0.0) + h
        t = jnp.maximum(jnp.einsum('bcrd,de->bcre', out, w1[l]) + b1[l], 0.0)
        t = jnp.einsum('bcrd,de->bcre', t, w2[l]) + b2[l]
        h = jnp.maximum(t, 0.0) + out
    y = jnp.einsum('bcrd,d->bcr', h, w_out[0]) + b_out[0, 0]   # squeeze(-1), outdim=1
    return y / jnp.sum(y, axis=1, keepdims=True)


def init_params(key, indim, dim, outdim, R):
    assert outdim == 1, "outdim must be 1 (module squeezes last dim)"
    ks = jax.random.split(key, 16)
    s = 0.1
    w_in = jax.random.normal(ks[0], (indim, dim), jnp.float32) * s
    b_in = jax.random.normal(ks[1], (1, dim), jnp.float32) * s
    wq = jax.random.normal(ks[2], (NUM_LAYERS, dim, dim), jnp.float32) * s
    bq = jax.random.normal(ks[3], (NUM_LAYERS, dim), jnp.float32) * s
    wk = jax.random.normal(ks[4], (NUM_LAYERS, dim, dim), jnp.float32) * s
    bk = jax.random.normal(ks[5], (NUM_LAYERS, dim), jnp.float32) * s
    wv = jax.random.normal(ks[6], (NUM_LAYERS, dim, dim), jnp.float32) * s
    bv = jax.random.normal(ks[7], (NUM_LAYERS, dim), jnp.float32) * s
    w1 = jax.random.normal(ks[8], (NUM_LAYERS, dim, dim), jnp.float32) * s
    b1 = jax.random.normal(ks[9], (NUM_LAYERS, dim), jnp.float32) * s
    w2 = jax.random.normal(ks[10], (NUM_LAYERS, dim, dim), jnp.float32) * s
    b2 = jax.random.normal(ks[11], (NUM_LAYERS, dim), jnp.float32) * s
    # output_fc stored transposed ([outdim, dim]) so its row lives on the lane axis
    w_out = jax.random.normal(ks[12], (outdim, dim), jnp.float32) * 0.05
    b_out = jnp.ones((1, outdim), jnp.float32)           # keeps y and its carrier-sum away from 0
    adj = jax.random.uniform(ks[13], (R, R), jnp.float32) * 0.1
    adj_plus = adj + jnp.eye(R, dtype=jnp.float32)        # eye(adj.shape[0]) + adj, folded once
    return (w_in, b_in, wq, bq, wk, bk, wv, bv, w1, b1, w2, b2,
            w_out, b_out, adj_plus)


if __name__ == "__main__":
    B, C, R = 2, 4, 8          # batch, carriers, routes
    indim, dim, outdim = 16, 32, 1

    key = jax.random.PRNGKey(0)
    kx, kp = jax.random.split(key)
    x = jax.random.normal(kx, (B, C, R, indim), jnp.float32)
    params = init_params(kp, indim, dim, outdim, R)

    out = jax.jit(msp_forward)(x, *params)
    out = jax.block_until_ready(out)

    ref = msp_reference(x, *params)
    assert out.shape == (B, C, R), out.shape
    np.testing.assert_allclose(np.asarray(out), np.asarray(ref), rtol=5e-3, atol=5e-3)

    print("KERNEL_OK")
</pallas_src>

<mosaic_0001>
module attributes {stable_mosaic.version = 11 : i64} {
  func.func @msp_kernel(%arg0: i32, %arg1: memref<1x128x16xf32, #tpu.memory_space<vmem>>, %arg2: memref<128x128xf32, #tpu.memory_space<vmem>>, %arg3: memref<128x128xf32, #tpu.memory_space<vmem>>, %arg4: memref<16x128xf32, #tpu.memory_space<vmem>>, %arg5: memref<1x128xf32, #tpu.memory_space<vmem>>, %arg6: memref<4x128x384xf32, #tpu.memory_space<vmem>>, %arg7: memref<4x384xf32, #tpu.memory_space<vmem>>, %arg8: memref<4x128x128xf32, #tpu.memory_space<vmem>>, %arg9: memref<4x128xf32, #tpu.memory_space<vmem>>, %arg10: memref<4x128x128xf32, #tpu.memory_space<vmem>>, %arg11: memref<4x128xf32, #tpu.memory_space<vmem>>, %arg12: memref<1x128xf32, #tpu.memory_space<vmem>>, %arg13: memref<1x1xf32, #tpu.memory_space<vmem>>, %arg14: memref<1x128xf32, #tpu.memory_space<vmem>>) attributes {dimension_semantics = [#tpu.dimension_semantics<parallel>], iteration_bounds = array<i64: 1>, scalar_prefetch = 0 : i64, scratch_operands = 0 : i64, tpu.core_type = #tpu.core_type<tc>, window_params = [{transform_indices = @transform_0, window_bounds = array<i64: 1, 128, 16>}, {pipeline_mode = #tpu.pipeline_mode<synchronous>, transform_indices = @transform_1, window_bounds = array<i64: 128, 128>}, {pipeline_mode = #tpu.pipeline_mode<synchronous>, transform_indices = @transform_2, window_bounds = array<i64: 128, 128>}, {pipeline_mode = #tpu.pipeline_mode<synchronous>, transform_indices = @transform_3, window_bounds = array<i64: 16, 128>}, {pipeline_mode = #tpu.pipeline_mode<synchronous>, transform_indices = @transform_4, window_bounds = array<i64: 1, 128>}, {pipeline_mode = #tpu.pipeline_mode<synchronous>, transform_indices = @transform_5, window_bounds = array<i64: 4, 128, 384>}, {pipeline_mode = #tpu.pipeline_mode<synchronous>, transform_indices = @transform_6, window_bounds = array<i64: 4, 384>}, {pipeline_mode = #tpu.pipeline_mode<synchronous>, transform_indices = @transform_7, window_bounds = array<i64: 4, 128, 128>}, {pipeline_mode = #tpu.pipeline_mode<synchronous>, transform_indices = @transform_8, window_bounds = array<i64: 4, 128>}, {pipeline_mode = #tpu.pipeline_mode<synchronous>, transform_indices = @transform_9, window_bounds = array<i64: 4, 128, 128>}, {pipeline_mode = #tpu.pipeline_mode<synchronous>, transform_indices = @transform_10, window_bounds = array<i64: 4, 128>}, {pipeline_mode = #tpu.pipeline_mode<synchronous>, transform_indices = @transform_11, window_bounds = array<i64: 1, 128>}, {pipeline_mode = #tpu.pipeline_mode<synchronous>, transform_indices = @transform_12, window_bounds = array<i64: 1, 1>}, {transform_indices = @transform_13, window_bounds = array<i64: 1, 128>}]} {
    %c0 = arith.constant 0 : index
    %c0_0 = arith.constant 0 : index
    %0 = vector.load %arg2[%c0, %c0_0] : memref<128x128xf32, #tpu.memory_space<vmem>>, vector<128x128xf32>
    %c0_1 = arith.constant 0 : index
    %c0_2 = arith.constant 0 : index
    %c0_3 = arith.constant 0 : index
    %1 = vector.load %arg1[%c0_1, %c0_2, %c0_3] : memref<1x128x16xf32, #tpu.memory_space<vmem>>, vector<1x128x16xf32>
    %2 = vector.shape_cast %1 : vector<1x128x16xf32> to vector<128x16xf32>
    %c0_4 = arith.constant 0 : index
    %c0_5 = arith.constant 0 : index
    %3 = vector.load %arg4[%c0_4, %c0_5] : memref<16x128xf32, #tpu.memory_space<vmem>>, vector<16x128xf32>
    %cst = arith.constant dense<0.000000e+00> : vector<128x128xf32>
    %4 = tpu.matmul %2, %3, %cst {dimension_numbers = #tpu.dot_dimension_numbers<[1], [0], [0], [1], [0, 0, 1, 1], [], []>} : vector<128x16xf32>, vector<16x128xf32>, vector<128x128xf32> -> vector<128x128xf32>
    %c0_6 = arith.constant 0 : index
    %c0_7 = arith.constant 0 : index
    %5 = vector.load %arg5[%c0_6, %c0_7] : memref<1x128xf32, #tpu.memory_space<vmem>>, vector<1x128xf32>
    %6 = vector.shape_cast %5 : vector<1x128xf32> to vector<128xf32>
    %7 = vector.shape_cast %6 : vector<128xf32> to vector<1x128xf32>
    %8 = vector.broadcast %7 : vector<1x128xf32> to vector<128x128xf32>
    %9 = arith.addf %4, %8 : vector<128x128xf32>
    %c0_8 = arith.constant 0 : index
    %c0_9 = arith.constant 0 : index
    %c0_10 = arith.constant 0 : index
    %10 = vector.load %arg6[%c0_8, %c0_9, %c0_10] : memref<4x128x384xf32, #tpu.memory_space<vmem>>, vector<1x128x384xf32>
    %11 = vector.shape_cast %10 : vector<1x128x384xf32> to vector<128x384xf32>
    %cst_11 = arith.constant dense<0.000000e+00> : vector<128x384xf32>
    %12 = tpu.matmul %9, %11, %cst_11 {dimension_numbers = #tpu.dot_dimension_numbers<[1], [0], [0], [1], [0, 0, 1, 1], [], []>} : vector<128x128xf32>, vector<128x384xf32>, vector<128x384xf32> -> vector<128x384xf32>
    %c0_12 = arith.constant 0 : index
    %c0_13 = arith.constant 0 : index
    %13 = vector.load %arg7[%c0_12, %c0_13] : memref<4x384xf32, #tpu.memory_space<vmem>>, vector<1x384xf32>
    %14 = vector.shape_cast %13 : vector<1x384xf32> to vector<384xf32>
    %15 = vector.shape_cast %14 : vector<384xf32> to vector<1x384xf32>
    %16 = vector.broadcast %15 : vector<1x384xf32> to vector<128x384xf32>
    %17 = arith.addf %12, %16 : vector<128x384xf32>
    %18 = vector.extract_strided_slice %17 {offsets = [0, 0], sizes = [128, 128], strides = [1, 1]} : vector<128x384xf32> to vector<128x128xf32>
    %19 = vector.extract_strided_slice %17 {offsets = [0, 128], sizes = [128, 128], strides = [1, 1]} : vector<128x384xf32> to vector<128x128xf32>
    %20 = vector.extract_strided_slice %17 {offsets = [0, 256], sizes = [128, 128], strides = [1, 1]} : vector<128x384xf32> to vector<128x128xf32>
    %cst_14 = arith.constant dense<0.000000e+00> : vector<128x128xf32>
    %21 = tpu.matmul %18, %19, %cst_14 {dimension_numbers = #tpu.dot_dimension_numbers<[1], [1], [0], [0], [0, 0, 1, 0], [], []>} : vector<128x128xf32>, vector<128x128xf32>, vector<128x128xf32> -> vector<128x128xf32>
    %22 = arith.addf %21, %0 : vector<128x128xf32>
    %cst_15 = arith.constant dense<0xFF800000> : vector<128xf32>
    %23 = vector.multi_reduction <maximumf>, %22, %cst_15 [1] : vector<128x128xf32> to vector<128xf32>
    %24 = vector.shape_cast %23 : vector<128xf32> to vector<128x1xf32>
    %25 = vector.broadcast %24 : vector<128x1xf32> to vector<128x128xf32>
    %26 = arith.subf %22, %25 : vector<128x128xf32>
    %27 = math.exp %26 : vector<128x128xf32>
    %cst_16 = arith.constant dense<0.000000e+00> : vector<128xf32>
    %28 = vector.multi_reduction <add>, %27, %cst_16 [1] : vector<128x128xf32> to vector<128xf32>
    %29 = vector.shape_cast %28 : vector<128xf32> to vector<128x1xf32>
    %30 = tpu.reciprocal %29 {approx = true} : vector<128x1xf32> -> vector<128x1xf32>
    %31 = vector.broadcast %30 : vector<128x1xf32> to vector<128x128xf32>
    %32 = arith.mulf %27, %31 : vector<128x128xf32>
    %cst_17 = arith.constant dense<0.000000e+00> : vector<128x128xf32>
    %33 = tpu.matmul %32, %20, %cst_17 {dimension_numbers = #tpu.dot_dimension_numbers<[1], [0], [0], [1], [0, 0, 1, 1], [], []>} : vector<128x128xf32>, vector<128x128xf32>, vector<128x128xf32> -> vector<128x128xf32>
    %cst_18 = arith.constant 0.000000e+00 : f32
    %34 = vector.broadcast %cst_18 : f32 to vector<128x128xf32>
    %35 = arith.maximumf %33, %34 : vector<128x128xf32>
    %36 = arith.addf %35, %9 : vector<128x128xf32>
    %c0_19 = arith.constant 0 : index
    %c0_20 = arith.constant 0 : index
    %c0_21 = arith.constant 0 : index
    %37 = vector.load %arg8[%c0_19, %c0_20, %c0_21] : memref<4x128x128xf32, #tpu.memory_space<vmem>>, vector<1x128x128xf32>
    %38 = vector.shape_cast %37 : vector<1x128x128xf32> to vector<128x128xf32>
    %cst_22 = arith.constant dense<0.000000e+00> : vector<128x128xf32>
    %39 = tpu.matmul %36, %38, %cst_22 {dimension_numbers = #tpu.dot_dimension_numbers<[1], [0], [0], [1], [0, 0, 1, 1], [], []>} : vector<128x128xf32>, vector<128x128xf32>, vector<128x128xf32> -> vector<128x128xf32>
    %c0_23 = arith.constant 0 : index
    %c0_24 = arith.constant 0 : index
    %40 = vector.load %arg9[%c0_23, %c0_24] : memref<4x128xf32, #tpu.memory_space<vmem>>, vector<1x128xf32>
    %41 = vector.shape_cast %40 : vector<1x128xf32> to vector<128xf32>
    %42 = vector.shape_cast %41 : vector<128xf32> to vector<1x128xf32>
    %43 = vector.broadcast %42 : vector<1x128xf32> to vector<128x128xf32>
    %44 = arith.addf %39, %43 : vector<128x128xf32>
    %cst_25 = arith.constant 0.000000e+00 : f32
    %45 = vector.broadcast %cst_25 : f32 to vector<128x128xf32>
    %46 = arith.maximumf %44, %45 : vector<128x128xf32>
    %c0_26 = arith.constant 0 : index
    %c0_27 = arith.constant 0 : index
    %c0_28 = arith.constant 0 : index
    %47 = vector.load %arg10[%c0_26, %c0_27, %c0_28] : memref<4x128x128xf32, #tpu.memory_space<vmem>>, vector<1x128x128xf32>
    %48 = vector.shape_cast %47 : vector<1x128x128xf32> to vector<128x128xf32>
    %cst_29 = arith.constant dense<0.000000e+00> : vector<128x128xf32>
    %49 = tpu.matmul %46, %48, %cst_29 {dimension_numbers = #tpu.dot_dimension_numbers<[1], [0], [0], [1], [0, 0, 1, 1], [], []>} : vector<128x128xf32>, vector<128x128xf32>, vector<128x128xf32> -> vector<128x128xf32>
    %c0_30 = arith.constant 0 : index
    %c0_31 = arith.constant 0 : index
    %50 = vector.load %arg11[%c0_30, %c0_31] : memref<4x128xf32, #tpu.memory_space<vmem>>, vector<1x128xf32>
    %51 = vector.shape_cast %50 : vector<1x128xf32> to vector<128xf32>
    %52 = vector.shape_cast %51 : vector<128xf32> to vector<1x128xf32>
    %53 = vector.broadcast %52 : vector<1x128xf32> to vector<128x128xf32>
    %54 = arith.addf %49, %53 : vector<128x128xf32>
    %cst_32 = arith.constant 0.000000e+00 : f32
    %55 = vector.broadcast %cst_32 : f32 to vector<128x128xf32>
    %56 = arith.maximumf %54, %55 : vector<128x128xf32>
    %57 = arith.addf %56, %36 : vector<128x128xf32>
    %c1 = arith.constant 1 : index
    %c0_33 = arith.constant 0 : index
    %c0_34 = arith.constant 0 : index
    %58 = vector.load %arg6[%c1, %c0_33, %c0_34] : memref<4x128x384xf32, #tpu.memory_space<vmem>>, vector<1x128x384xf32>
    %59 = vector.shape_cast %58 : vector<1x128x384xf32> to vector<128x384xf32>
    %cst_35 = arith.constant dense<0.000000e+00> : vector<128x384xf32>
    %60 = tpu.matmul %57, %59, %cst_35 {dimension_numbers = #tpu.dot_dimension_numbers<[1], [0], [0], [1], [0, 0, 1, 1], [], []>} : vector<128x128xf32>, vector<128x384xf32>, vector<128x384xf32> -> vector<128x384xf32>
    %c1_36 = arith.constant 1 : index
    %c0_37 = arith.constant 0 : index
    %61 = vector.load %arg7[%c1_36, %c0_37] : memref<4x384xf32, #tpu.memory_space<vmem>>, vector<1x384xf32>
    %62 = vector.shape_cast %61 : vector<1x384xf32> to vector<384xf32>
    %63 = vector.shape_cast %62 : vector<384xf32> to vector<1x384xf32>
    %64 = vector.broadcast %63 : vector<1x384xf32> to vector<128x384xf32>
    %65 = arith.addf %60, %64 : vector<128x384xf32>
    %66 = vector.extract_strided_slice %65 {offsets = [0, 0], sizes = [128, 128], strides = [1, 1]} : vector<128x384xf32> to vector<128x128xf32>
    %67 = vector.extract_strided_slice %65 {offsets = [0, 128], sizes = [128, 128], strides = [1, 1]} : vector<128x384xf32> to vector<128x128xf32>
    %68 = vector.extract_strided_slice %65 {offsets = [0, 256], sizes = [128, 128], strides = [1, 1]} : vector<128x384xf32> to vector<128x128xf32>
    %cst_38 = arith.constant dense<0.000000e+00> : vector<128x128xf32>
    %69 = tpu.matmul %66, %67, %cst_38 {dimension_numbers = #tpu.dot_dimension_numbers<[1], [1], [0], [0], [0, 0, 1, 0], [], []>} : vector<128x128xf32>, vector<128x128xf32>, vector<128x128xf32> -> vector<128x128xf32>
    %70 = arith.addf %69, %0 : vector<128x128xf32>
    %cst_39 = arith.constant dense<0xFF800000> : vector<128xf32>
    %71 = vector.multi_reduction <maximumf>, %70, %cst_39 [1] : vector<128x128xf32> to vector<128xf32>
    %72 = vector.shape_cast %71 : vector<128xf32> to vector<128x1xf32>
    %73 = vector.broadcast %72 : vector<128x1xf32> to vector<128x128xf32>
    %74 = arith.subf %70, %73 : vector<128x128xf32>
    %75 = math.exp %74 : vector<128x128xf32>
    %cst_40 = arith.constant dense<0.000000e+00> : vector<128xf32>
    %76 = vector.multi_reduction <add>, %75, %cst_40 [1] : vector<128x128xf32> to vector<128xf32>
    %77 = vector.shape_cast %76 : vector<128xf32> to vector<128x1xf32>
    %78 = tpu.reciprocal %77 {approx = true} : vector<128x1xf32> -> vector<128x1xf32>
    %79 = vector.broadcast %78 : vector<128x1xf32> to vector<128x128xf32>
    %80 = arith.mulf %75, %79 : vector<128x128xf32>
    %cst_41 = arith.constant dense<0.000000e+00> : vector<128x128xf32>
    %81 = tpu.matmul %80, %68, %cst_41 {dimension_numbers = #tpu.dot_dimension_numbers<[1], [0], [0], [1], [0, 0, 1, 1], [], []>} : vector<128x128xf32>, vector<128x128xf32>, vector<128x128xf32> -> vector<128x128xf32>
    %cst_42 = arith.constant 0.000000e+00 : f32
    %82 = vector.broadcast %cst_42 : f32 to vector<128x128xf32>
    %83 = arith.maximumf %81, %82 : vector<128x128xf32>
    %84 = arith.addf %83, %57 : vector<128x128xf32>
    %c1_43 = arith.constant 1 : index
    %c0_44 = arith.constant 0 : index
    %c0_45 = arith.constant 0 : index
    %85 = vector.load %arg8[%c1_43, %c0_44, %c0_45] : memref<4x128x128xf32, #tpu.memory_space<vmem>>, vector<1x128x128xf32>
    %86 = vector.shape_cast %85 : vector<1x128x128xf32> to vector<128x128xf32>
    %cst_46 = arith.constant dense<0.000000e+00> : vector<128x128xf32>
    %87 = tpu.matmul %84, %86, %cst_46 {dimension_numbers = #tpu.dot_dimension_numbers<[1], [0], [0], [1], [0, 0, 1, 1], [], []>} : vector<128x128xf32>, vector<128x128xf32>, vector<128x128xf32> -> vector<128x128xf32>
    %c1_47 = arith.constant 1 : index
    %c0_48 = arith.constant 0 : index
    %88 = vector.load %arg9[%c1_47, %c0_48] : memref<4x128xf32, #tpu.memory_space<vmem>>, vector<1x128xf32>
    %89 = vector.shape_cast %88 : vector<1x128xf32> to vector<128xf32>
    %90 = vector.shape_cast %89 : vector<128xf32> to vector<1x128xf32>
    %91 = vector.broadcast %90 : vector<1x128xf32> to vector<128x128xf32>
    %92 = arith.addf %87, %91 : vector<128x128xf32>
    %cst_49 = arith.constant 0.000000e+00 : f32
    %93 = vector.broadcast %cst_49 : f32 to vector<128x128xf32>
    %94 = arith.maximumf %92, %93 : vector<128x128xf32>
    %c1_50 = arith.constant 1 : index
    %c0_51 = arith.constant 0 : index
    %c0_52 = arith.constant 0 : index
    %95 = vector.load %arg10[%c1_50, %c0_51, %c0_52] : memref<4x128x128xf32, #tpu.memory_space<vmem>>, vector<1x128x128xf32>
    %96 = vector.shape_cast %95 : vector<1x128x128xf32> to vector<128x128xf32>
    %cst_53 = arith.constant dense<0.000000e+00> : vector<128x128xf32>
    %97 = tpu.matmul %94, %96, %cst_53 {dimension_numbers = #tpu.dot_dimension_numbers<[1], [0], [0], [1], [0, 0, 1, 1], [], []>} : vector<128x128xf32>, vector<128x128xf32>, vector<128x128xf32> -> vector<128x128xf32>
    %c1_54 = arith.constant 1 : index
    %c0_55 = arith.constant 0 : index
    %98 = vector.load %arg11[%c1_54, %c0_55] : memref<4x128xf32, #tpu.memory_space<vmem>>, vector<1x128xf32>
    %99 = vector.shape_cast %98 : vector<1x128xf32> to vector<128xf32>
    %100 = vector.shape_cast %99 : vector<128xf32> to vector<1x128xf32>
    %101 = vector.broadcast %100 : vector<1x128xf32> to vector<128x128xf32>
    %102 = arith.addf %97, %101 : vector<128x128xf32>
    %cst_56 = arith.constant 0.000000e+00 : f32
    %103 = vector.broadcast %cst_56 : f32 to vector<128x128xf32>
    %104 = arith.maximumf %102, %103 : vector<128x128xf32>
    %105 = arith.addf %104, %84 : vector<128x128xf32>
    %c2 = arith.constant 2 : index
    %c0_57 = arith.constant 0 : index
    %c0_58 = arith.constant 0 : index
    %106 = vector.load %arg6[%c2, %c0_57, %c0_58] : memref<4x128x384xf32, #tpu.memory_space<vmem>>, vector<1x128x384xf32>
    %107 = vector.shape_cast %106 : vector<1x128x384xf32> to vector<128x384xf32>
    %cst_59 = arith.constant dense<0.000000e+00> : vector<128x384xf32>
    %108 = tpu.matmul %105, %107, %cst_59 {dimension_numbers = #tpu.dot_dimension_numbers<[1], [0], [0], [1], [0, 0, 1, 1], [], []>} : vector<128x128xf32>, vector<128x384xf32>, vector<128x384xf32> -> vector<128x384xf32>
    %c2_60 = arith.constant 2 : index
    %c0_61 = arith.constant 0 : index
    %109 = vector.load %arg7[%c2_60, %c0_61] : memref<4x384xf32, #tpu.memory_space<vmem>>, vector<1x384xf32>
    %110 = vector.shape_cast %109 : vector<1x384xf32> to vector<384xf32>
    %111 = vector.shape_cast %110 : vector<384xf32> to vector<1x384xf32>
    %112 = vector.broadcast %111 : vector<1x384xf32> to vector<128x384xf32>
    %113 = arith.addf %108, %112 : vector<128x384xf32>
    %114 = vector.extract_strided_slice %113 {offsets = [0, 0], sizes = [128, 128], strides = [1, 1]} : vector<128x384xf32> to vector<128x128xf32>
    %115 = vector.extract_strided_slice %113 {offsets = [0, 128], sizes = [128, 128], strides = [1, 1]} : vector<128x384xf32> to vector<128x128xf32>
    %116 = vector.extract_strided_slice %113 {offsets = [0, 256], sizes = [128, 128], strides = [1, 1]} : vector<128x384xf32> to vector<128x128xf32>
    %cst_62 = arith.constant dense<0.000000e+00> : vector<128x128xf32>
    %117 = tpu.matmul %114, %115, %cst_62 {dimension_numbers = #tpu.dot_dimension_numbers<[1], [1], [0], [0], [0, 0, 1, 0], [], []>} : vector<128x128xf32>, vector<128x128xf32>, vector<128x128xf32> -> vector<128x128xf32>
    %118 = arith.addf %117, %0 : vector<128x128xf32>
    %cst_63 = arith.constant dense<0xFF800000> : vector<128xf32>
    %119 = vector.multi_reduction <maximumf>, %118, %cst_63 [1] : vector<128x128xf32> to vector<128xf32>
    %120 = vector.shape_cast %119 : vector<128xf32> to vector<128x1xf32>
    %121 = vector.broadcast %120 : vector<128x1xf32> to vector<128x128xf32>
    %122 = arith.subf %118, %121 : vector<128x128xf32>
    %123 = math.exp %122 : vector<128x128xf32>
    %cst_64 = arith.constant dense<0.000000e+00> : vector<128xf32>
    %124 = vector.multi_reduction <add>, %123, %cst_64 [1] : vector<128x128xf32> to vector<128xf32>
    %125 = vector.shape_cast %124 : vector<128xf32> to vector<128x1xf32>
    %126 = tpu.reciprocal %125 {approx = true} : vector<128x1xf32> -> vector<128x1xf32>
    %127 = vector.broadcast %126 : vector<128x1xf32> to vector<128x128xf32>
    %128 = arith.mulf %123, %127 : vector<128x128xf32>
    %cst_65 = arith.constant dense<0.000000e+00> : vector<128x128xf32>
    %129 = tpu.matmul %128, %116, %cst_65 {dimension_numbers = #tpu.dot_dimension_numbers<[1], [0], [0], [1], [0, 0, 1, 1], [], []>} : vector<128x128xf32>, vector<128x128xf32>, vector<128x128xf32> -> vector<128x128xf32>
    %cst_66 = arith.constant 0.000000e+00 : f32
    %130 = vector.broadcast %cst_66 : f32 to vector<128x128xf32>
    %131 = arith.maximumf %129, %130 : vector<128x128xf32>
    %132 = arith.addf %131, %105 : vector<128x128xf32>
    %c2_67 = arith.constant 2 : index
    %c0_68 = arith.constant 0 : index
    %c0_69 = arith.constant 0 : index
    %133 = vector.load %arg8[%c2_67, %c0_68, %c0_69] : memref<4x128x128xf32, #tpu.memory_space<vmem>>, vector<1x128x128xf32>
    %134 = vector.shape_cast %133 : vector<1x128x128xf32> to vector<128x128xf32>
    %cst_70 = arith.constant dense<0.000000e+00> : vector<128x128xf32>
    %135 = tpu.matmul %132, %134, %cst_70 {dimension_numbers = #tpu.dot_dimension_numbers<[1], [0], [0], [1], [0, 0, 1, 1], [], []>} : vector<128x128xf32>, vector<128x128xf32>, vector<128x128xf32> -> vector<128x128xf32>
    %c2_71 = arith.constant 2 : index
    %c0_72 = arith.constant 0 : index
    %136 = vector.load %arg9[%c2_71, %c0_72] : memref<4x128xf32, #tpu.memory_space<vmem>>, vector<1x128xf32>
    %137 = vector.shape_cast %136 : vector<1x128xf32> to vector<128xf32>
    %138 = vector.shape_cast %137 : vector<128xf32> to vector<1x128xf32>
    %139 = vector.broadcast %138 : vector<1x128xf32> to vector<128x128xf32>
    %140 = arith.addf %135, %139 : vector<128x128xf32>
    %cst_73 = arith.constant 0.000000e+00 : f32
    %141 = vector.broadcast %cst_73 : f32 to vector<128x128xf32>
    %142 = arith.maximumf %140, %141 : vector<128x128xf32>
    %c2_74 = arith.constant 2 : index
    %c0_75 = arith.constant 0 : index
    %c0_76 = arith.constant 0 : index
    %143 = vector.load %arg10[%c2_74, %c0_75, %c0_76] : memref<4x128x128xf32, #tpu.memory_space<vmem>>, vector<1x128x128xf32>
    %144 = vector.shape_cast %143 : vector<1x128x128xf32> to vector<128x128xf32>
    %cst_77 = arith.constant dense<0.000000e+00> : vector<128x128xf32>
    %145 = tpu.matmul %142, %144, %cst_77 {dimension_numbers = #tpu.dot_dimension_numbers<[1], [0], [0], [1], [0, 0, 1, 1], [], []>} : vector<128x128xf32>, vector<128x128xf32>, vector<128x128xf32> -> vector<128x128xf32>
    %c2_78 = arith.constant 2 : index
    %c0_79 = arith.constant 0 : index
    %146 = vector.load %arg11[%c2_78, %c0_79] : memref<4x128xf32, #tpu.memory_space<vmem>>, vector<1x128xf32>
    %147 = vector.shape_cast %146 : vector<1x128xf32> to vector<128xf32>
    %148 = vector.shape_cast %147 : vector<128xf32> to vector<1x128xf32>
    %149 = vector.broadcast %148 : vector<1x128xf32> to vector<128x128xf32>
    %150 = arith.addf %145, %149 : vector<128x128xf32>
    %cst_80 = arith.constant 0.000000e+00 : f32
    %151 = vector.broadcast %cst_80 : f32 to vector<128x128xf32>
    %152 = arith.maximumf %150, %151 : vector<128x128xf32>
    %153 = arith.addf %152, %132 : vector<128x128xf32>
    %c3 = arith.constant 3 : index
    %c0_81 = arith.constant 0 : index
    %c0_82 = arith.constant 0 : index
    %154 = vector.load %arg6[%c3, %c0_81, %c0_82] : memref<4x128x384xf32, #tpu.memory_space<vmem>>, vector<1x128x384xf32>
    %155 = vector.shape_cast %154 : vector<1x128x384xf32> to vector<128x384xf32>
    %cst_83 = arith.constant dense<0.000000e+00> : vector<128x384xf32>
    %156 = tpu.matmul %153, %155, %cst_83 {dimension_numbers = #tpu.dot_dimension_numbers<[1], [0], [0], [1], [0, 0, 1, 1], [], []>} : vector<128x128xf32>, vector<128x384xf32>, vector<128x384xf32> -> vector<128x384xf32>
    %c3_84 = arith.constant 3 : index
    %c0_85 = arith.constant 0 : index
    %157 = vector.load %arg7[%c3_84, %c0_85] : memref<4x384xf32, #tpu.memory_space<vmem>>, vector<1x384xf32>
    %158 = vector.shape_cast %157 : vector<1x384xf32> to vector<384xf32>
    %159 = vector.shape_cast %158 : vector<384xf32> to vector<1x384xf32>
    %160 = vector.broadcast %159 : vector<1x384xf32> to vector<128x384xf32>
    %161 = arith.addf %156, %160 : vector<128x384xf32>
    %162 = vector.extract_strided_slice %161 {offsets = [0, 0], sizes = [128, 128], strides = [1, 1]} : vector<128x384xf32> to vector<128x128xf32>
    %163 = vector.extract_strided_slice %161 {offsets = [0, 128], sizes = [128, 128], strides = [1, 1]} : vector<128x384xf32> to vector<128x128xf32>
    %164 = vector.extract_strided_slice %161 {offsets = [0, 256], sizes = [128, 128], strides = [1, 1]} : vector<128x384xf32> to vector<128x128xf32>
    %cst_86 = arith.constant dense<0.000000e+00> : vector<128x128xf32>
    %165 = tpu.matmul %162, %163, %cst_86 {dimension_numbers = #tpu.dot_dimension_numbers<[1], [1], [0], [0], [0, 0, 1, 0], [], []>} : vector<128x128xf32>, vector<128x128xf32>, vector<128x128xf32> -> vector<128x128xf32>
    %166 = arith.addf %165, %0 : vector<128x128xf32>
    %cst_87 = arith.constant dense<0xFF800000> : vector<128xf32>
    %167 = vector.multi_reduction <maximumf>, %166, %cst_87 [1] : vector<128x128xf32> to vector<128xf32>
    %168 = vector.shape_cast %167 : vector<128xf32> to vector<128x1xf32>
    %169 = vector.broadcast %168 : vector<128x1xf32> to vector<128x128xf32>
    %170 = arith.subf %166, %169 : vector<128x128xf32>
    %171 = math.exp %170 : vector<128x128xf32>
    %cst_88 = arith.constant dense<0.000000e+00> : vector<128xf32>
    %172 = vector.multi_reduction <add>, %171, %cst_88 [1] : vector<128x128xf32> to vector<128xf32>
    %173 = vector.shape_cast %172 : vector<128xf32> to vector<128x1xf32>
    %174 = tpu.reciprocal %173 {approx = true} : vector<128x1xf32> -> vector<128x1xf32>
    %175 = vector.broadcast %174 : vector<128x1xf32> to vector<128x128xf32>
    %176 = arith.mulf %171, %175 : vector<128x128xf32>
    %cst_89 = arith.constant dense<0.000000e+00> : vector<128x128xf32>
    %177 = tpu.matmul %176, %164, %cst_89 {dimension_numbers = #tpu.dot_dimension_numbers<[1], [0], [0], [1], [0, 0, 1, 1], [], []>} : vector<128x128xf32>, vector<128x128xf32>, vector<128x128xf32> -> vector<128x128xf32>
    %cst_90 = arith.constant 0.000000e+00 : f32
    %178 = vector.broadcast %cst_90 : f32 to vector<128x128xf32>
    %179 = arith.maximumf %177, %178 : vector<128x128xf32>
    %180 = arith.addf %179, %153 : vector<128x128xf32>
    %c3_91 = arith.constant 3 : index
    %c0_92 = arith.constant 0 : index
    %c0_93 = arith.constant 0 : index
    %181 = vector.load %arg8[%c3_91, %c0_92, %c0_93] : memref<4x128x128xf32, #tpu.memory_space<vmem>>, vector<1x128x128xf32>
    %182 = vector.shape_cast %181 : vector<1x128x128xf32> to vector<128x128xf32>
    %cst_94 = arith.constant dense<0.000000e+00> : vector<128x128xf32>
    %183 = tpu.matmul %180, %182, %cst_94 {dimension_numbers = #tpu.dot_dimension_numbers<[1], [0], [0], [1], [0, 0, 1, 1], [], []>} : vector<128x128xf32>, vector<128x128xf32>, vector<128x128xf32> -> vector<128x128xf32>
    %c3_95 = arith.constant 3 : index
    %c0_96 = arith.constant 0 : index
    %184 = vector.load %arg9[%c3_95, %c0_96] : memref<4x128xf32, #tpu.memory_space<vmem>>, vector<1x128xf32>
    %185 = vector.shape_cast %184 : vector<1x128xf32> to vector<128xf32>
    %186 = vector.shape_cast %185 : vector<128xf32> to vector<1x128xf32>
    %187 = vector.broadcast %186 : vector<1x128xf32> to vector<128x128xf32>
    %188 = arith.addf %183, %187 : vector<128x128xf32>
    %cst_97 = arith.constant 0.000000e+00 : f32
    %189 = vector.broadcast %cst_97 : f32 to vector<128x128xf32>
    %190 = arith.maximumf %188, %189 : vector<128x128xf32>
    %c3_98 = arith.constant 3 : index
    %c0_99 = arith.constant 0 : index
    %c0_100 = arith.constant 0 : index
    %191 = vector.load %arg10[%c3_98, %c0_99, %c0_100] : memref<4x128x128xf32, #tpu.memory_space<vmem>>, vector<1x128x128xf32>
    %192 = vector.shape_cast %191 : vector<1x128x128xf32> to vector<128x128xf32>
    %cst_101 = arith.constant dense<0.000000e+00> : vector<128x128xf32>
    %193 = tpu.matmul %190, %192, %cst_101 {dimension_numbers = #tpu.dot_dimension_numbers<[1], [0], [0], [1], [0, 0, 1, 1], [], []>} : vector<128x128xf32>, vector<128x128xf32>, vector<128x128xf32> -> vector<128x128xf32>
    %c3_102 = arith.constant 3 : index
    %c0_103 = arith.constant 0 : index
    %194 = vector.load %arg11[%c3_102, %c0_103] : memref<4x128xf32, #tpu.memory_space<vmem>>, vector<1x128xf32>
    %195 = vector.shape_cast %194 : vector<1x128xf32> to vector<128xf32>
    %196 = vector.shape_cast %195 : vector<128xf32> to vector<1x128xf32>
    %197 = vector.broadcast %196 : vector<1x128xf32> to vector<128x128xf32>
    %198 = arith.addf %193, %197 : vector<128x128xf32>
    %cst_104 = arith.constant 0.000000e+00 : f32
    %199 = vector.broadcast %cst_104 : f32 to vector<128x128xf32>
    %200 = arith.maximumf %198, %199 : vector<128x128xf32>
    %201 = arith.addf %200, %180 : vector<128x128xf32>
    %c0_105 = arith.constant 0 : index
    %c0_106 = arith.constant 0 : index
    %202 = vector.load %arg12[%c0_105, %c0_106] : memref<1x128xf32, #tpu.memory_space<vmem>>, vector<1x128xf32>
    %cst_107 = arith.constant dense<0.000000e+00> : vector<1x128xf32>
    %203 = tpu.matmul %202, %201, %cst_107 {dimension_numbers = #tpu.dot_dimension_numbers<[1], [1], [0], [0], [0, 0, 1, 0], [], []>} : vector<1x128xf32>, vector<128x128xf32>, vector<1x128xf32> -> vector<1x128xf32>
    %c0_108 = arith.constant 0 : index
    %c0_109 = arith.constant 0 : index
    %204 = vector.load %arg13[%c0_108, %c0_109] : memref<1x1xf32, #tpu.memory_space<vmem>>, vector<1x1xf32>
    %205 = vector.broadcast %204 : vector<1x1xf32> to vector<1x128xf32>
    %206 = arith.addf %203, %205 : vector<1x128xf32>
    %c0_110 = arith.constant 0 : index
    %c0_111 = arith.constant 0 : index
    %207 = vector.load %arg3[%c0_110, %c0_111] : memref<128x128xf32, #tpu.memory_space<vmem>>, vector<128x128xf32>
    %cst_112 = arith.constant dense<0.000000e+00> : vector<1x128xf32>
    %208 = tpu.matmul %206, %207, %cst_112 {dimension_numbers = #tpu.dot_dimension_numbers<[1], [0], [0], [1], [0, 0, 1, 1], [], []>} : vector<1x128xf32>, vector<128x128xf32>, vector<1x128xf32> -> vector<1x128xf32>
    %209 = arith.divf %206, %208 : vector<1x128xf32>
    %c0_113 = arith.constant 0 : index
    %c0_114 = arith.constant 0 : index
    %210 = vector.load %arg14[%c0_113, %c0_114] : memref<1x128xf32, #tpu.memory_space<vmem>>, vector<1x128xf32>
    tpu.vector_store %arg14[%c0_113, %c0_114], %209 {strides = array<i32>} : memref<1x128xf32, #tpu.memory_space<vmem>>, vector<1x128xf32>,
    return
  }
  func.func @transform_0(%arg0: i32) -> (i32, i32, i32) {
    %c0_i32 = arith.constant 0 : i32
    %c0_i32_0 = arith.constant 0 : i32
    %c0_i32_1 = arith.constant 0 : i32
    return %arg0, %c0_i32, %c0_i32_0 : i32, i32, i32
  }
  func.func @transform_1(%arg0: i32) -> (i32, i32) {
    %c0_i32 = arith.constant 0 : i32
    %c0_i32_0 = arith.constant 0 : i32
    %c0_i32_1 = arith.constant 0 : i32
    return %c0_i32, %c0_i32_0 : i32, i32
  }
  func.func @transform_2(%arg0: i32) -> (i32, i32) {
    %c0_i32 = arith.constant 0 : i32
    %c0_i32_0 = arith.constant 0 : i32
    %c0_i32_1 = arith.constant 0 : i32
    return %c0_i32, %c0_i32_0 : i32, i32
  }
  func.func @transform_3(%arg0: i32) -> (i32, i32) {
    %c0_i32 = arith.constant 0 : i32
    %c0_i32_0 = arith.constant 0 : i32
    %c0_i32_1 = arith.constant 0 : i32
    return %c0_i32, %c0_i32_0 : i32, i32
  }
  func.func @transform_4(%arg0: i32) -> (i32, i32) {
    %c0_i32 = arith.constant 0 : i32
    %c0_i32_0 = arith.constant 0 : i32
    %c0_i32_1 = arith.constant 0 : i32
    return %c0_i32, %c0_i32_0 : i32, i32
  }
  func.func @transform_5(%arg0: i32) -> (i32, i32, i32) {
    %c0_i32 = arith.constant 0 : i32
    %c0_i32_0 = arith.constant 0 : i32
    %c0_i32_1 = arith.constant 0 : i32
    %c0_i32_2 = arith.constant 0 : i32
    return %c0_i32, %c0_i32_0, %c0_i32_1 : i32, i32, i32
  }
  func.func @transform_6(%arg0: i32) -> (i32, i32) {
    %c0_i32 = arith.constant 0 : i32
    %c0_i32_0 = arith.constant 0 : i32
    %c0_i32_1 = arith.constant 0 : i32
    return %c0_i32, %c0_i32_0 : i32, i32
  }
  func.func @transform_7(%arg0: i32) -> (i32, i32, i32) {
    %c0_i32 = arith.constant 0 : i32
    %c0_i32_0 = arith.constant 0 : i32
    %c0_i32_1 = arith.constant 0 : i32
    %c0_i32_2 = arith.constant 0 : i32
    return %c0_i32, %c0_i32_0, %c0_i32_1 : i32, i32, i32
  }
  func.func @transform_8(%arg0: i32) -> (i32, i32) {
    %c0_i32 = arith.constant 0 : i32
    %c0_i32_0 = arith.constant 0 : i32
    %c0_i32_1 = arith.constant 0 : i32
    return %c0_i32, %c0_i32_0 : i32, i32
  }
  func.func @transform_9(%arg0: i32) -> (i32, i32, i32) {
    %c0_i32 = arith.constant 0 : i32
    %c0_i32_0 = arith.constant 0 : i32
    %c0_i32_1 = arith.constant 0 : i32
    %c0_i32_2 = arith.constant 0 : i32
    return %c0_i32, %c0_i32_0, %c0_i32_1 : i32, i32, i32
  }
  func.func @transform_10(%arg0: i32) -> (i32, i32) {
    %c0_i32 = arith.constant 0 : i32
    %c0_i32_0 = arith.constant 0 : i32
    %c0_i32_1 = arith.constant 0 : i32
    return %c0_i32, %c0_i32_0 : i32, i32
  }
  func.func @transform_11(%arg0: i32) -> (i32, i32) {
    %c0_i32 = arith.constant 0 : i32
    %c0_i32_0 = arith.constant 0 : i32
    %c0_i32_1 = arith.constant 0 : i32
    return %c0_i32, %c0_i32_0 : i32, i32
  }
  func.func @transform_12(%arg0: i32) -> (i32, i32) {
    %c0_i32 = arith.constant 0 : i32
    %c0_i32_0 = arith.constant 0 : i32
    %c0_i32_1 = arith.constant 0 : i32
    return %c0_i32, %c0_i32_0 : i32, i32
  }
  func.func @transform_13(%arg0: i32) -> (i32, i32) {
    %c0_i32 = arith.constant 0 : i32
    %c0_i32_0 = arith.constant 0 : i32
    return %arg0, %c0_i32 : i32, i32
  }
}

</mosaic_0001>

<bundles_post_ra>
// kernel: msp_forward.1
= control target key start
LH: loop header
LB: loop body
LE: loop exit
PB: predicated region body
PF: predicated region fallthrough
CT: control target
= control target key end

     0   :  { %vm84_vm0 = vcmask 130048   ;;  %s6808_s3 = inlined_call_operand.vmem [shape: f32[16,128], index: 3, kind: input, shape index: {}]   ;;  %s6809_s0 = inlined_call_operand.vmem [shape: f32[1,128,16], index: 0, kind: input, shape index: {}]   ;;  %s6810_s4 = inlined_call_operand.vmem [shape: f32[1,128], index: 4, kind: input, shape index: {}]   ;;  %s6811_s5 = inlined_call_operand.vmem [shape: f32[4,128,384], index: 5, kind: input, shape index: {}]   ;;  %s6812_s6 = inlined_call_operand.vmem [shape: f32[4,384], index: 6, kind: input, shape index: {}]   ;;  %s6813_s1 = inlined_call_operand.vmem [shape: f32[128,128], index: 1, kind: input, shape index: {}]   ;;  %s6814_s7 = inlined_call_operand.vmem [shape: f32[4,128,128], index: 7, kind: input, shape index: {}]   ;;  %s6815_s8 = inlined_call_operand.vmem [shape: f32[4,128], index: 8, kind: input, shape index: {}]   ;;  %s6816_s9 = inlined_call_operand.vmem [shape: f32[4,128,128], index: 9, kind: input, shape index: {}]   ;;  %s6817_s10 = inlined_call_operand.vmem [shape: f32[4,128], index: 10, kind: input, shape index: {}]   ;;  %s6818_s12 = inlined_call_operand.<no memory space> [shape: f32[1,1], index: 12, kind: input, shape index: {}]   ;;  %s6819_s2 = inlined_call_operand.vmem [shape: f32[128,128], index: 2, kind: input, shape index: {}]   ;;  %s6820_s11 = inlined_call_operand.vmem [shape: f32[1,128], index: 11, kind: input, shape index: {}]   ;;  %s6821_s13 = inlined_call_operand.vmem [shape: f32[1,128], index: 13, kind: output, shape index: {}]  }
   0x1   :  { %v79_v0 = vld [vmem:[%s6808_s3 + $0x8] sm:$0xff]  ;;  %v78_v1 = vld [vmem:[%s6808_s3] sm:$0xff]  ;;  %v64_v4 = vld [vmem:[%s6809_s0 + $0x10] sm:$0xff] }
   0x2   :  { %147 = vmatpush.msra.mxu0 %v79_v0  ;;  %v62_v2 = vld [vmem:[%s6809_s0] sm:$0xff]  ;;  %3637 = vmatpush.msra.mxu3 %v79_v0  ;;  %v63_v3 = vld [vmem:[%s6809_s0 + $0x8] sm:$0xff]  ;;  %v65_v5 = vld [vmem:[%s6809_s0 + $0x18] sm:$0xff] }
   0x3   :  { %v70_v6 = vld [vmem:[%s6809_s0 + $0x40] sm:$0xff]  ;;  %v243_v7 = vld [vmem:[%s6811_s5 + $0x168] sm:$0xff]  ;;  %v244_v8 = vld [vmem:[%s6811_s5 + $0x170] sm:$0xff] }
   0x4   :  { %148 = vmatpush.msra.mxu0 %v78_v1  ;;  %3638 = vmatpush.msra.mxu3 %v78_v1  ;;  %v245_v9 = vld [vmem:[%s6811_s5 + $0x178] sm:$0xff]  ;;  %v66_v10 = vld [vmem:[%s6809_s0 + $0x20] sm:$0xff]  ;;  %v71_v11 = vld [vmem:[%s6809_s0 + $0x48] sm:$0xff] }
   0x5   :  { %3378 = vmatmul.msk.f32.vlgmr.msra.gmra.mxu0 %vm84_vm0, %v62_v2  ;;  %3386 = vmatmul.msk.f32.vlgmr.msra.gmra.mxu3 %vm84_vm0, %v70_v6  ;;  %v240_v12 = vld [vmem:[%s6811_s5 + $0x150] sm:$0xff]  ;;  %v241_v13 = vld [vmem:[%s6811_s5 + $0x158] sm:$0xff]  ;;  %v242_v14 = vld [vmem:[%s6811_s5 + $0x160] sm:$0xff] }
   0x6   :  { %254 = vmatpush.msra.mxu1 %v243_v7  ;;  %319 = vmatpush.msra.mxu2 %v244_v8  ;;  %v237_v15 = vld [vmem:[%s6811_s5 + $0x138] sm:$0xff]  ;;  %v238_v16 = vld [vmem:[%s6811_s5 + $0x140] sm:$0xff]  ;;  %v239_v17 = vld [vmem:[%s6811_s5 + $0x148] sm:$0xff] }
   0x7   :  { %384 = vmatpush.msrb.mxu3 %v245_v9  ;;  %v234_v18 = vld [vmem:[%s6811_s5 + $0x120] sm:$0xff]  ;;  %v235_v19 = vld [vmem:[%s6811_s5 + $0x128] sm:$0xff]  ;;  %v236_v20 = vld [vmem:[%s6811_s5 + $0x130] sm:$0xff] }
   0x8   :  { %255 = vmatpush.msra.mxu1 %v240_v12  ;;  %320 = vmatpush.msra.mxu2 %v241_v13  ;;  %v67_v21 = vld [vmem:[%s6809_s0 + $0x28] sm:$0xff]  ;;  %v72_v23 = vld [vmem:[%s6809_s0 + $0x50] sm:$0xff]  ;;  %v233_v25 = vld [vmem:[%s6811_s5 + $0x118] sm:$0xff] }
   0x9   :  { %385 = vmatpush.msrb.mxu3 %v242_v14  ;;  %v231_v22 = vld [vmem:[%s6811_s5 + $0x108] sm:$0xff]  ;;  %v232_v24 = vld [vmem:[%s6811_s5 + $0x110] sm:$0xff]  ;;  %v229_v27 = vld [vmem:[%s6811_s5 + $0xf8] sm:$0xff] }
   0xa   :  { %256 = vmatpush.msra.mxu1 %v237_v15  ;;  %321 = vmatpush.msra.mxu2 %v238_v16  ;;  %v228_v26 = vld [vmem:[%s6811_s5 + $0xf0] sm:$0xff]  ;;  %v230_v28 = vld [vmem:[%s6811_s5 + $0x100] sm:$0xff]  ;;  %v225_v29 = vld [vmem:[%s6811_s5 + $0xd8] sm:$0xff] }
   0xb   :  { %386 = vmatpush.msrb.mxu3 %v239_v17  ;;  %v226_v30 = vld [vmem:[%s6811_s5 + $0xe0] sm:$0xff]  ;;  %v227_v31 = vld [vmem:[%s6811_s5 + $0xe8] sm:$0xff]  ;;  %v68_v34 = vld [vmem:[%s6809_s0 + $0x30] sm:$0xff] }
   0xc   :  { %257 = vmatpush.msra.mxu1 %v234_v18  ;;  %322 = vmatpush.msra.mxu2 %v235_v19  ;;  %v222_v32 = vld [vmem:[%s6811_s5 + $0xc0] sm:$0xff]  ;;  %v223_v33 = vld [vmem:[%s6811_s5 + $0xc8] sm:$0xff]  ;;  %v224_v35 = vld [vmem:[%s6811_s5 + $0xd0] sm:$0xff] }
   0xd   :  { %3379 = vmatmul.msk.f32.gmra.mxu0 %vm84_vm0, %v63_v3  ;;  %3387 = vmatmul.msk.f32.gmra.mxu3 %vm84_vm0, %v71_v11  ;;  %v73_v36 = vld [vmem:[%s6809_s0 + $0x58] sm:$0xff]  ;;  %v219_v37 = vld [vmem:[%s6811_s5 + $0xa8] sm:$0xff]  ;;  %v220_v38 = vld [vmem:[%s6811_s5 + $0xb0] sm:$0xff] }
   0xe   :  { %387 = vmatpush.msrb.mxu3 %v236_v20  ;;  %258 = vmatpush.msra.mxu1 %v231_v22  ;;  %v221_v39 = vld [vmem:[%s6811_s5 + $0xb8] sm:$0xff]  ;;  %v216_v40 = vld [vmem:[%s6811_s5 + $0x90] sm:$0xff]  ;;  %v218_v42 = vld [vmem:[%s6811_s5 + $0xa0] sm:$0xff] }
   0xf   :  { %323 = vmatpush.msra.mxu2 %v232_v24  ;;  %v217_v41 = vld [vmem:[%s6811_s5 + $0x98] sm:$0xff]  ;;  %v214_v44 = vld [vmem:[%s6811_s5 + $0x80] sm:$0xff]  ;;  %v215_v45 = vld [vmem:[%s6811_s5 + $0x88] sm:$0xff] }
  0x10   :  { %388 = vmatpush.msrb.mxu3 %v233_v25  ;;  %259 = vmatpush.msra.mxu1 %v228_v26  ;;  %v213_v43 = vld [vmem:[%s6811_s5 + $0x78] sm:$0xff]  ;;  %v210_v46 = vld [vmem:[%s6811_s5 + $0x60] sm:$0xff]  ;;  %v211_v48 = vld [vmem:[%s6811_s5 + $0x68] sm:$0xff] }
  0x11   :  { %324 = vmatpush.msra.mxu2 %v229_v27  ;;  %v69_v47 = vld [vmem:[%s6809_s0 + $0x38] sm:$0xff]  ;;  %v74_v49 = vld [vmem:[%s6809_s0 + $0x60] sm:$0xff]  ;;  %v207_v50 = vld [vmem:[%s6811_s5 + $0x48] sm:$0xff] }
  0x12   :  { %389 = vmatpush.msrb.mxu3 %v230_v28  ;;  %260 = vmatpush.msra.mxu1 %v225_v29  ;;  %v212_v51 = vld [vmem:[%s6811_s5 + $0x70] sm:$0xff]  ;;  %v209_v54 = vld [vmem:[%s6811_s5 + $0x58] sm:$0xff]  ;;  %v206_v56 = vld [vmem:[%s6811_s5 + $0x40] sm:$0xff] }
  0x13   :  { %325 = vmatpush.msra.mxu2 %v226_v30  ;;  %v208_v52 = vld [vmem:[%s6811_s5 + $0x50] sm:$0xff]  ;;  %v205_v55 = vld [vmem:[%s6811_s5 + $0x38] sm:$0xff]  ;;  %v75_v57 = vld [vmem:[%s6809_s0 + $0x68] sm:$0xff] }
  0x14   :  { %390 = vmatpush.msrb.mxu3 %v227_v31  ;;  %261 = vmatpush.msra.mxu1 %v222_v32  ;;  %v204_v53 = vld [vmem:[%s6811_s5 + $0x30] sm:$0xff]  ;;  %v77_v59 = vld [vmem:[%s6809_s0 + $0x78] sm:$0xff]  ;;  %v202_v61 = vld [vmem:[%s6811_s5 + $0x20] sm:$0xff] }
  0x15   :  { %3380 = vmatmul.msk.f32.gmra.mxu0 %vm84_vm0, %v64_v4  ;;  %3388 = vmatmul.msk.f32.gmra.mxu3 %vm84_vm0, %v72_v23  ;;  %v76_v58 = vld [vmem:[%s6809_s0 + $0x70] sm:$0xff]  ;;  %v201_v60 = vld [vmem:[%s6811_s5 + $0x18] sm:$0xff]  ;;  %v203_v62 = vld [vmem:[%s6811_s5 + $0x28] sm:$0xff] }
  0x16   :  { %326 = vmatpush.msra.mxu2 %v223_v33  ;;  %391 = vmatpush.msrb.mxu3 %v224_v35  ;;  %v198_v63 = vld [vmem:[%s6811_s5] sm:$0xff]  ;;  %v199_v0 = vld [vmem:[%s6811_s5 + $0x8] sm:$0xff]  ;;  %v200_v1 = vld [vmem:[%s6811_s5 + $0x10] sm:$0xff] }
  0x17   :  { %262 = vmatpush.msra.mxu1 %v219_v37  ;;  %v4245_v2 = vld [vmem:[%s6810_s4] ss:$0 sm:$0xff] }
  0x18   :  { %327 = vmatpush.msra.mxu2 %v220_v38  ;;  %392 = vmatpush.msrb.mxu3 %v221_v39 }
  0x19   :  { %263 = vmatpush.msra.mxu1 %v216_v40 }
  0x1a   :  { %328 = vmatpush.msra.mxu2 %v217_v41  ;;  %393 = vmatpush.msrb.mxu3 %v218_v42 }
  0x1b   :  { %264 = vmatpush.msra.mxu1 %v213_v43 }
  0x1c   :  { %329 = vmatpush.msra.mxu2 %v214_v44  ;;  %394 = vmatpush.msrb.mxu3 %v215_v45 }
  0x1d   :  { %3381 = vmatmul.msk.f32.gmra.mxu0 %vm84_vm0, %v65_v5  ;;  %3389 = vmatmul.msk.f32.gmra.mxu3 %vm84_vm0, %v73_v36 }
  0x1e   :  { %265 = vmatpush.msra.mxu1 %v210_v46  ;;  %330 = vmatpush.msra.mxu2 %v211_v48 }
  0x1f   :  { %395 = vmatpush.msrb.mxu3 %v212_v51 }
  0x20   :  { %266 = vmatpush.msra.mxu1 %v207_v50  ;;  %331 = vmatpush.msra.mxu2 %v208_v52 }
  0x21   :  { %396 = vmatpush.msrb.mxu3 %v209_v54 }
  0x22   :  { %267 = vmatpush.msra.mxu1 %v204_v53  ;;  %332 = vmatpush.msra.mxu2 %v205_v55 }
  0x23   :  { %397 = vmatpush.msrb.mxu3 %v206_v56 }
  0x24   :  { %268 = vmatpush.msra.mxu1 %v201_v60  ;;  %333 = vmatpush.msra.mxu2 %v202_v61 }
  0x25   :  { %3382 = vmatmul.msk.f32.gmra.mxu0 %vm84_vm0, %v66_v10  ;;  %3390 = vmatmul.msk.f32.gmra.mxu3 %vm84_vm0, %v74_v49 }
  0x26   :  { %398 = vmatpush.msrb.mxu3 %v203_v62  ;;  %269 = vmatpush.msra.mxu1 %v198_v63 }
  0x27   :  { %334 = vmatpush.msra.mxu2 %v199_v0 }
  0x28   :  { %399 = vmatpush.msrb.mxu3 %v200_v1  ;;  %v4370_v1 = vld [vmem:[%s6812_s6] ss:$4 sm:$0x7] }
  0x2d   :  { %3383 = vmatmul.msk.f32.gmra.mxu0 %vm84_vm0, %v67_v21  ;;  %3391 = vmatmul.msk.f32.gmra.mxu3 %vm84_vm0, %v75_v57 }
  0x35   :  { %3384 = vmatmul.msk.f32.gmra.mxu0 %vm84_vm0, %v68_v34  ;;  %3392 = vmatmul.msk.f32.gmra.mxu3 %vm84_vm0, %v76_v58 }
  0x3d   :  { %3385 = vmatmul.msk.f32.gmra.mxu0 %vm84_vm0, %v69_v47  ;;  %3393 = vmatmul.msk.f32.gmra.mxu3 %vm84_vm0, %v77_v59 }
  0x82   :  { %v150_v3 = vpop.f32.mrf.mxu0 }
  0x83   :  { %v4248_v4 = vadd.f32 %v4245_v2, %v150_v3 }
  0x85   :  { %270 = vmatmul.f32.vlgmr.msra.gmra.mxu1 %v4248_v4  ;;  %335 = vmatmul.f32.vlgmr.msra.gmra.mxu2 %v4248_v4 }
  0x86   :  { %400 = vmatmul.f32.vlgmr.msrb.gmra.mxu3 %v4248_v4 }
  0x88   :  { %v174_v15 = vpop.f32.mrf.mxu3 }
  0x89   :  { %v4296_v21 = vadd.f32 %v4245_v2, %v174_v15 }
  0x8a   :  { %v153_v5 = vpop.f32.mrf.mxu0 }
  0x8b   :  { %v4254_v6 = vadd.f32 %v4245_v2, %v153_v5  ;;  %v250_v5 = vperm.slane %v4370_v1, 2 }
  0x8d   :  { %273 = vmatmul.f32.gmra.mxu1 %v4254_v6  ;;  %338 = vmatmul.f32.gmra.mxu2 %v4254_v6 }
  0x8e   :  { %403 = vmatmul.f32.gmra.mxu3 %v4254_v6 }
  0x90   :  { %v177_v19 = vpop.f32.mrf.mxu3 }
  0x91   :  { %v4302_v23 = vadd.f32 %v4245_v2, %v177_v19 }
  0x92   :  { %v156_v7 = vpop.f32.mrf.mxu0 }
  0x93   :  { %v4260_v8 = vadd.f32 %v4245_v2, %v156_v7 }
  0x95   :  { %276 = vmatmul.f32.gmra.mxu1 %v4260_v8  ;;  %341 = vmatmul.f32.gmra.mxu2 %v4260_v8 }
  0x96   :  { %406 = vmatmul.f32.gmra.mxu3 %v4260_v8 }
  0x98   :  { %v180_v22 = vpop.f32.mrf.mxu3 }
  0x99   :  { %v4308_v25 = vadd.f32 %v4245_v2, %v180_v22 }
  0x9a   :  { %v159_v9 = vpop.f32.mrf.mxu0 }
  0x9b   :  { %v4266_v10 = vadd.f32 %v4245_v2, %v159_v9 }
  0x9d   :  { %279 = vmatmul.f32.gmra.mxu1 %v4266_v10  ;;  %344 = vmatmul.f32.gmra.mxu2 %v4266_v10 }
  0x9e   :  { %409 = vmatmul.f32.gmra.mxu3 %v4266_v10 }
  0xa0   :  { %v183_v24 = vpop.f32.mrf.mxu3 }
  0xa1   :  { %v4314_v27 = vadd.f32 %v4245_v2, %v183_v24 }
  0xa2   :  { %v162_v11 = vpop.f32.mrf.mxu0 }
  0xa3   :  { %v4272_v12 = vadd.f32 %v4245_v2, %v162_v11 }
  0xa5   :  { %282 = vmatmul.f32.gmra.mxu1 %v4272_v12  ;;  %347 = vmatmul.f32.gmra.mxu2 %v4272_v12 }
  0xa6   :  { %412 = vmatmul.f32.gmra.mxu3 %v4272_v12 }
  0xa8   :  { %v186_v26 = vpop.f32.mrf.mxu3 }
  0xa9   :  { %v4320_v28 = vadd.f32 %v4245_v2, %v186_v26 }
  0xaa   :  { %v165_v13 = vpop.f32.mrf.mxu0 }
  0xab   :  { %v4278_v14 = vadd.f32 %v4245_v2, %v165_v13 }
  0xad   :  { %285 = vmatmul.f32.gmra.mxu1 %v4278_v14  ;;  %350 = vmatmul.f32.gmra.mxu2 %v4278_v14 }
  0xae   :  { %415 = vmatmul.f32.gmra.mxu3 %v4278_v14 }
  0xb0   :  { %v189_v29 = vpop.f32.mrf.mxu3 }
  0xb1   :  { %v4326_v30 = vadd.f32 %v4245_v2, %v189_v29 }
  0xb2   :  { %v168_v16 = vpop.f32.mrf.mxu0 }
  0xb3   :  { %v4284_v17 = vadd.f32 %v4245_v2, %v168_v16 }
  0xb5   :  { %288 = vmatmul.f32.gmra.mxu1 %v4284_v17  ;;  %353 = vmatmul.f32.gmra.mxu2 %v4284_v17 }
  0xb6   :  { %418 = vmatmul.f32.gmra.mxu3 %v4284_v17 }
  0xb8   :  { %v192_v31 = vpop.f32.mrf.mxu3 }
  0xb9   :  { %v4332_v32 = vadd.f32 %v4245_v2, %v192_v31 }
  0xba   :  { %v171_v18 = vpop.f32.mrf.mxu0 }
  0xbb   :  { %v4290_v20 = vadd.f32 %v4245_v2, %v171_v18 }
  0xbd   :  { %291 = vmatmul.f32.gmra.mxu1 %v4290_v20  ;;  %356 = vmatmul.f32.gmra.mxu2 %v4290_v20 }
  0xbe   :  { %421 = vmatmul.f32.gmra.mxu3 %v4290_v20 }
  0xc0   :  { %v195_v33 = vpop.f32.mrf.mxu3 }
  0xc1   :  { %v4338_v34 = vadd.f32 %v4245_v2, %v195_v33  ;;  %v4373_v2 = vperm.slane %v4370_v1, 1 }
  0xc5   :  { %294 = vmatmul.f32.gmra.mxu1 %v4296_v21  ;;  %359 = vmatmul.f32.gmra.mxu2 %v4296_v21 }
  0xc6   :  { %424 = vmatmul.f32.gmra.mxu3 %v4296_v21 }
  0xcd   :  { %297 = vmatmul.f32.gmra.mxu1 %v4302_v23  ;;  %362 = vmatmul.f32.gmra.mxu2 %v4302_v23 }
  0xce   :  { %427 = vmatmul.f32.gmra.mxu3 %v4302_v23 }
  0xd5   :  { %300 = vmatmul.f32.gmra.mxu1 %v4308_v25  ;;  %365 = vmatmul.f32.gmra.mxu2 %v4308_v25 }
  0xd6   :  { %430 = vmatmul.f32.gmra.mxu3 %v4308_v25 }
  0xdd   :  { %303 = vmatmul.f32.gmra.mxu1 %v4314_v27  ;;  %368 = vmatmul.f32.gmra.mxu2 %v4314_v27 }
  0xde   :  { %433 = vmatmul.f32.gmra.mxu3 %v4314_v27 }
  0xe5   :  { %306 = vmatmul.f32.gmra.mxu1 %v4320_v28  ;;  %371 = vmatmul.f32.gmra.mxu2 %v4320_v28 }
  0xe6   :  { %436 = vmatmul.f32.gmra.mxu3 %v4320_v28 }
  0xed   :  { %309 = vmatmul.f32.gmra.mxu1 %v4326_v30  ;;  %374 = vmatmul.f32.gmra.mxu2 %v4326_v30 }
  0xee   :  { %439 = vmatmul.f32.gmra.mxu3 %v4326_v30 }
  0xf5   :  { %312 = vmatmul.f32.gmra.mxu1 %v4332_v32  ;;  %377 = vmatmul.f32.gmra.mxu2 %v4332_v32 }
  0xf6   :  { %442 = vmatmul.f32.gmra.mxu3 %v4332_v32 }
  0xfd   :  { %315 = vmatmul.f32.gmra.mxu1 %v4338_v34  ;;  %380 = vmatmul.f32.gmra.mxu2 %v4338_v34 }
  0xfe   :  { %445 = vmatmul.f32.gmra.mxu3 %v4338_v34 }
 0x108   :  { %v4343_v35 = vpop.f32.mrf.mxu2 }
 0x109   :  { %v4345_v36 = vpop.f32.mrf.mxu3 }
 0x110   :  { %v4347_v37 = vpop.f32.mrf.mxu2 }
 0x111   :  { %v4349_v38 = vpop.f32.mrf.mxu3 }
 0x118   :  { %v4351_v39 = vpop.f32.mrf.mxu2 }
 0x119   :  { %v4353_v40 = vpop.f32.mrf.mxu3 }
 0x120   :  { %v4355_v41 = vpop.f32.mrf.mxu2 }
 0x121   :  { %v4357_v42 = vpop.f32.mrf.mxu3 }
 0x128   :  { %v4359_v43 = vpop.f32.mrf.mxu2 }
 0x129   :  { %v413_v44 = vpop.f32.mrf.mxu3 }
 0x130   :  { %v4361_v45 = vpop.f32.mrf.mxu2 }
 0x131   :  { %v416_v46 = vpop.f32.mrf.mxu3 }
 0x138   :  { %v4363_v47 = vpop.f32.mrf.mxu2 }
 0x139   :  { %v419_v48 = vpop.f32.mrf.mxu3 }
 0x140   :  { %v4365_v49 = vpop.f32.mrf.mxu2 }
 0x141   :  { %v422_v50 = vpop.f32.mrf.mxu3 }
 0x148   :  { %v360_v51 = vpop.f32.mrf.mxu2 }
 0x149   :  { %v425_v52 = vpop.f32.mrf.mxu3 }
 0x14a   :  { %v426_v31 = vadd.f32 %v425_v52, %v250_v5  ;;  %v408_v52 = vadd.f32 %v4353_v40, %v250_v5 }
 0x150   :  { %v363_v53 = vpop.f32.mrf.mxu2 }
 0x151   :  { %v428_v54 = vpop.f32.mrf.mxu3 }
 0x152   :  { %v429_v29 = vadd.f32 %v428_v54, %v250_v5  ;;  %v411_v54 = vadd.f32 %v4357_v42, %v250_v5  ;;  %v355_v42 = vadd.f32 %v4363_v47, %v4373_v2  ;;  %v340_v47 = vadd.f32 %v4347_v37, %v4373_v2 }
 0x158   :  { %v366_v55 = vpop.f32.mrf.mxu2 }
 0x159   :  { %v431_v56 = vpop.f32.mrf.mxu3 }
 0x15a   :  { %v432_v24 = vadd.f32 %v431_v56, %v250_v5  ;;  %v414_v56 = vadd.f32 %v413_v44, %v250_v5  ;;  %v358_v44 = vadd.f32 %v4365_v49, %v4373_v2  ;;  %v343_v49 = vadd.f32 %v4351_v39, %v4373_v2 }
 0x160   :  { %v369_v57 = vpop.f32.mrf.mxu2 }
 0x161   :  { %v434_v58 = vpop.f32.mrf.mxu3  ;;  %v370_v33 = vadd.f32 %v369_v57, %v4373_v2 }
 0x162   :  { %v435_v22 = vadd.f32 %v434_v58, %v250_v5  ;;  %v417_v58 = vadd.f32 %v416_v46, %v250_v5  ;;  %v402_v46 = vadd.f32 %v4345_v36, %v250_v5  ;;  %v346_v36 = vadd.f32 %v4355_v41, %v4373_v2 }
 0x168   :  { %v372_v59 = vpop.f32.mrf.mxu2 }
 0x169   :  { %v437_v60 = vpop.f32.mrf.mxu3  ;;  %v373_v26 = vadd.f32 %v372_v59, %v4373_v2  ;;  %v364_v59 = vadd.f32 %v363_v53, %v4373_v2 }
 0x16a   :  { %v438_v18 = vadd.f32 %v437_v60, %v250_v5  ;;  %v420_v60 = vadd.f32 %v419_v48, %v250_v5  ;;  %v405_v48 = vadd.f32 %v4349_v38, %v250_v5  ;;  %v349_v38 = vadd.f32 %v4359_v43, %v4373_v2 }
 0x16b   :  { %v337_v43 = vadd.f32 %v4343_v35, %v4373_v2 }
 0x170   :  { %v375_v61 = vpop.f32.mrf.mxu2 }
 0x171   :  { %v440_v62 = vpop.f32.mrf.mxu3  ;;  %v376_v19 = vadd.f32 %v375_v61, %v4373_v2  ;;  %v367_v61 = vadd.f32 %v366_v55, %v4373_v2  ;;  %v271_v55 = vpop.f32.mrf.mxu1 }
 0x172   :  { %v441_v16 = vadd.f32 %v440_v62, %v250_v5  ;;  %v423_v62 = vadd.f32 %v422_v50, %v250_v5  ;;  %v361_v50 = vadd.f32 %v360_v51, %v4373_v2  ;;  %v352_v51 = vadd.f32 %v4361_v45, %v4373_v2 }
 0x173   :  { %v248_v45 = vperm.slane %v4370_v1, 0 }
 0x178   :  { %v378_v63 = vpop.f32.mrf.mxu2 }
 0x179   :  { %v443_v0 = vpop.f32.mrf.mxu3  ;;  %v379_v15 = vadd.f32 %v378_v63, %v4373_v2  ;;  %v274_v40 = vpop.f32.mrf.mxu1  ;;  %v272_v63 = vadd.f32 %v271_v55, %v248_v45  ;;  %v48_v55 = vld [vmem:[%s6813_s1 + $0x10] sm:$0xff] }
 0x17a   :  { %v444_v13 = vadd.f32 %v443_v0, %v250_v5  ;;  %v275_v0 = vadd.f32 %v274_v40, %v248_v45 }
 0x180   :  { %v381_v3 = vpop.f32.mrf.mxu2 }
 0x181   :  { %v446_v7 = vpop.f32.mrf.mxu3  ;;  %v382_v9 = vadd.f32 %v381_v3, %v4373_v2  ;;  %v277_v53 = vpop.f32.mrf.mxu1 }
 0x182   :  { %v447_v11 = vadd.f32 %v446_v7, %v250_v5  ;;  %v278_v3 = vadd.f32 %v277_v53, %v248_v45 }
 0x183   :  { %449 = vmatpush.xpose.msrb.mxu0 %v382_v9 }
 0x184   :  { %658 = vmatpush.msrb.mxu1 %v447_v11 }
 0x186   :  { %659 = vmatpush.msrb.mxu1 %v444_v13 }
 0x187   :  { %450 = vmatpush.xpose.msrb.mxu0 %v379_v15 }
 0x188   :  { %660 = vmatpush.msrb.mxu1 %v441_v16 }
 0x189   :  { %v280_v57 = vpop.f32.mrf.mxu1 }
 0x18a   :  { %661 = vmatpush.msrb.mxu1 %v438_v18  ;;  %v281_v39 = vadd.f32 %v280_v57, %v248_v45  ;;  %v52_v57 = vld [vmem:[%s6813_s1 + $0x30] sm:$0xff] }
 0x18b   :  { %451 = vmatpush.xpose.msrb.mxu0 %v376_v19 }
 0x18c   :  { %662 = vmatpush.msrb.mxu1 %v435_v22 }
 0x18e   :  { %663 = vmatpush.msrb.mxu1 %v432_v24 }
 0x18f   :  { %452 = vmatpush.xpose.msrb.mxu0 %v373_v26 }
 0x190   :  { %664 = vmatpush.msrb.mxu1 %v429_v29 }
 0x191   :  { %v283_v41 = vpop.f32.mrf.mxu1 }
 0x192   :  { %665 = vmatpush.msrb.mxu1 %v426_v31  ;;  %v284_v37 = vadd.f32 %v283_v41, %v248_v45  ;;  %v53_v41 = vld [vmem:[%s6813_s1 + $0x38] sm:$0xff] }
 0x193   :  { %453 = vmatpush.xpose.msrb.mxu0 %v370_v33 }
 0x194   :  { %666 = vmatpush.msrb.mxu1 %v423_v62 }
 0x196   :  { %667 = vmatpush.msrb.mxu1 %v420_v60 }
 0x197   :  { %454 = vmatpush.xpose.msrb.mxu0 %v367_v61 }
 0x198   :  { %668 = vmatpush.msrb.mxu1 %v417_v58 }
 0x199   :  { %v286_v5 = vpop.f32.mrf.mxu1 }
 0x19a   :  { %669 = vmatpush.msrb.mxu1 %v414_v56  ;;  %v287_v1 = vadd.f32 %v286_v5, %v248_v45  ;;  %v46_v56 = vld [vmem:[%s6813_s1] sm:$0xff] }
 0x19b   :  { %455 = vmatpush.xpose.msrb.mxu0 %v364_v59 }
 0x19c   :  { %670 = vmatpush.msrb.mxu1 %v411_v54 }
 0x19e   :  { %671 = vmatpush.msrb.mxu1 %v408_v52  ;;  %v47_v52 = vld [vmem:[%s6813_s1 + $0x8] sm:$0xff] }
 0x19f   :  { %456 = vmatpush.xpose.msrb.mxu0 %v361_v50 }
 0x1a0   :  { %672 = vmatpush.msrb.mxu1 %v405_v48 }
 0x1a1   :  { %v289_v7 = vpop.f32.mrf.mxu1 }
 0x1a2   :  { %673 = vmatpush.msrb.mxu1 %v402_v46  ;;  %v290_v13 = vadd.f32 %v289_v7, %v248_v45 }
 0x1a3   :  { %457 = vmatpush.xpose.msrb.mxu0 %v358_v44 }
 0x1a7   :  { %458 = vmatpush.xpose.msrb.mxu0 %v355_v42  ;;  %v49_v42 = vld [vmem:[%s6813_s1 + $0x18] sm:$0xff] }
 0x1a9   :  { %v292_v9 = vpop.f32.mrf.mxu1 }
 0x1aa   :  { %v293_v35 = vadd.f32 %v292_v9, %v248_v45 }
 0x1ab   :  { %459 = vmatpush.xpose.msrb.mxu0 %v352_v51 }
 0x1af   :  { %460 = vmatpush.xpose.msrb.mxu0 %v349_v38  ;;  %v50_v38 = vld [vmem:[%s6813_s1 + $0x20] sm:$0xff] }
 0x1b1   :  { %v295_v11 = vpop.f32.mrf.mxu1 }
 0x1b2   :  { %v296_v15 = vadd.f32 %v295_v11, %v248_v45 }
 0x1b3   :  { %461 = vmatpush.xpose.msrb.mxu0 %v346_v36 }
 0x1b7   :  { %462 = vmatpush.xpose.msrb.mxu0 %v343_v49  ;;  %v51_v49 = vld [vmem:[%s6813_s1 + $0x28] sm:$0xff] }
 0x1b9   :  { %v298_v2 = vpop.f32.mrf.mxu1 }
 0x1ba   :  { %v299_v18 = vadd.f32 %v298_v2, %v248_v45  ;;  %v54_v2 = vld [vmem:[%s6813_s1 + $0x40] sm:$0xff] }
 0x1bb   :  { %463 = vmatpush.xpose.msrb.mxu0 %v340_v47 }
 0x1bf   :  { %464 = vmatpush.xpose.msrb.mxu0 %v337_v43 }
 0x1c1   :  { %v301_v16 = vpop.f32.mrf.mxu1 }
 0x1c2   :  { %465 = vmatmul.f32.vlgmr.msrb.gmra.mxu0 %v272_v63  ;;  %v302_v22 = vadd.f32 %v301_v16, %v248_v45 }
 0x1c9   :  { %v304_v19 = vpop.f32.mrf.mxu1 }
 0x1ca   :  { %468 = vmatmul.f32.gmra.mxu0 %v275_v0  ;;  %v305_v26 = vadd.f32 %v304_v19, %v248_v45 }
 0x1d1   :  { %v307_v24 = vpop.f32.mrf.mxu1 }
 0x1d2   :  { %471 = vmatmul.f32.gmra.mxu0 %v278_v3  ;;  %v308_v29 = vadd.f32 %v307_v24, %v248_v45 }
 0x1d9   :  { %v310_v31 = vpop.f32.mrf.mxu1 }
 0x1da   :  { %474 = vmatmul.f32.gmra.mxu0 %v281_v39  ;;  %v311_v33 = vadd.f32 %v310_v31, %v248_v45 }
 0x1e1   :  { %v313_v62 = vpop.f32.mrf.mxu1 }
 0x1e2   :  { %477 = vmatmul.f32.gmra.mxu0 %v284_v37  ;;  %v314_v60 = vadd.f32 %v313_v62, %v248_v45 }
 0x1e9   :  { %v316_v61 = vpop.f32.mrf.mxu1 }
 0x1ea   :  { %480 = vmatmul.f32.gmra.mxu0 %v287_v1  ;;  %v317_v58 = vadd.f32 %v316_v61, %v248_v45 }
 0x1f2   :  { %483 = vmatmul.f32.gmra.mxu0 %v290_v13 }
 0x1fa   :  { %486 = vmatmul.f32.gmra.mxu0 %v293_v35 }
 0x202   :  { %489 = vmatmul.f32.gmra.mxu0 %v296_v15 }
 0x20a   :  { %492 = vmatmul.f32.gmra.mxu0 %v299_v18 }
 0x212   :  { %495 = vmatmul.f32.gmra.mxu0 %v302_v22 }
 0x21a   :  { %498 = vmatmul.f32.gmra.mxu0 %v305_v26  ;;  %v55_v26 = vld [vmem:[%s6813_s1 + $0x48] sm:$0xff] }
 0x222   :  { %501 = vmatmul.f32.gmra.mxu0 %v308_v29 }
 0x22a   :  { %504 = vmatmul.f32.gmra.mxu0 %v311_v33 }
 0x232   :  { %507 = vmatmul.f32.gmra.mxu0 %v314_v60 }
 0x23a   :  { %510 = vmatmul.f32.gmra.mxu0 %v317_v58  ;;  %v56_v58 = vld [vmem:[%s6813_s1 + $0x50] sm:$0xff] }
 0x23f   :  { %v466_v59 = vpop.f32.mrf.mxu0 }
 0x240   :  { %v467_v54 = vadd.f32 %v466_v59, %v46_v56 }
 0x242   :  { %514 = vmax.xlane.f32.xlu0 %v467_v54 }
 0x247   :  { %v469_v50 = vpop.f32.mrf.mxu0 }
 0x248   :  { %v470_v48 = vadd.f32 %v469_v50, %v47_v52 }
 0x24a   :  { %516 = vmax.xlane.f32.xlu0 %v470_v48 }
 0x24f   :  { %v472_v46 = vpop.f32.mrf.mxu0 }
 0x250   :  { %v473_v44 = vadd.f32 %v472_v46, %v48_v55 }
 0x252   :  { %518 = vmax.xlane.f32.xlu1 %v473_v44 }
 0x257   :  { %v475_v40 = vpop.f32.mrf.mxu0 }
 0x258   :  { %v476_v51 = vadd.f32 %v475_v40, %v49_v42 }
 0x25a   :  { %520 = vmax.xlane.f32.xlu1 %v476_v51 }
 0x25f   :  { %v478_v36 = vpop.f32.mrf.mxu0 }
 0x260   :  { %v479_v53 = vadd.f32 %v478_v36, %v50_v38  ;;  %v58_v38 = vld [vmem:[%s6813_s1 + $0x60] sm:$0xff] }
 0x262   :  { %522 = vmax.xlane.f32.xlu2 %v479_v53 }
 0x267   :  { %v481_v47 = vpop.f32.mrf.mxu0 }
 0x268   :  { %v482_v45 = vadd.f32 %v481_v47, %v51_v49 }
 0x26a   :  { %524 = vmax.xlane.f32.xlu2 %v482_v45 }
 0x26f   :  { %v484_v43 = vpop.f32.mrf.mxu0 }
 0x270   :  { %v4426_v63 = vadd.f32 %v484_v43, %v52_v57  ;;  %v59_v43 = vld [vmem:[%s6813_s1 + $0x68] sm:$0xff] }
 0x272   :  { %526 = vmax.xlane.f32.xlu0 %v4426_v63 }
 0x277   :  { %v487_v0 = vpop.f32.mrf.mxu0 }
 0x278   :  { %v4432_v3 = vadd.f32 %v487_v0, %v53_v41 }
 0x27a   :  { %528 = vmax.xlane.f32.xlu2 %v4432_v3 }
 0x27f   :  { %v490_v39 = vpop.f32.mrf.mxu0 }
 0x280   :  { %v4441_v18 = vadd.f32 %v490_v39, %v54_v2 }
 0x287   :  { %v493_v13 = vpop.f32.mrf.mxu0 }
 0x288   :  { %v4450_v33 = vadd.f32 %v493_v13, %v55_v26  ;;  %v61_v13 = vld [vmem:[%s6813_s1 + $0x78] sm:$0xff] }
 0x28f   :  { %v496_v24 = vpop.f32.mrf.mxu0 }
 0x297   :  { %v499_v61 = vpop.f32.mrf.mxu0 }
 0x29f   :  { %v502_v46 = vpop.f32.mrf.mxu0 }
 0x2a0   :  { %v4478_v49 = vadd.f32 %v502_v46, %v58_v38 }
 0x2b5   :  { %v515_v5 = vpop.xlane.xlu0 %514 }
 0x2b6   :  { %v546_v7 = vsub.f32 %v467_v54, %v515_v5  ;;  %v4459_v54 = vadd.f32 %v496_v24, %v56_v58 }
 0x2b8   :  { %v562_v37 = vmul.f32 1.442695, %v546_v7 }
 0x2ba   :  { %3651 = vpow2.f32 %v562_v37  ;;  %v60_v37 = vld [vmem:[%s6813_s1 + $0x70] sm:$0xff] }
 0x2bd   :  { %v517_v9 = vpop.xlane.xlu0 %516 }
 0x2be   :  { %v547_v1 = vsub.f32 %v470_v48, %v517_v9  ;;  %v57_v48 = vld [vmem:[%s6813_s1 + $0x58] sm:$0xff] }
 0x2bf   :  { %v4468_v42 = vadd.f32 %v499_v61, %v57_v48 }
 0x2c0   :  { %v4435_v11 = vpop.eup %3651  ;;  %v564_v35 = vmul.f32 1.442695, %v547_v1 }
 0x2c1   :  { %594 = vadd.xlane.f32.xlu1 %v4435_v11 }
 0x2c2   :  { %3653 = vpow2.f32 %v564_v35 }
 0x2c5   :  { %v519_v15 = vpop.xlane.xlu1 %518 }
 0x2c6   :  { %v548_v16 = vsub.f32 %v473_v44, %v519_v15 }
 0x2c8   :  { %v4443_v19 = vpop.eup %3653  ;;  %v566_v22 = vmul.f32 1.442695, %v548_v16 }
 0x2c9   :  { %530 = vmax.xlane.f32.xlu1 %v4441_v18  ;;  %596 = vadd.xlane.f32.xlu0 %v4443_v19 }
 0x2ca   :  { %3655 = vpow2.f32 %v566_v22 }
 0x2cd   :  { %v521_v29 = vpop.xlane.xlu1 %520 }
 0x2ce   :  { %v549_v31 = vsub.f32 %v476_v51, %v521_v29 }
 0x2d0   :  { %v4452_v62 = vpop.eup %3655  ;;  %v568_v60 = vmul.f32 1.442695, %v549_v31 }
 0x2d1   :  { %598 = vadd.xlane.f32.xlu2 %v4452_v62  ;;  %532 = vmax.xlane.f32.xlu0 %v4450_v33 }
 0x2d2   :  { %3657 = vpow2.f32 %v568_v60 }
 0x2d5   :  { %v523_v56 = vpop.xlane.xlu2 %522 }
 0x2d6   :  { %v550_v59 = vsub.f32 %v479_v53, %v523_v56 }
 0x2d8   :  { %v4461_v52 = vpop.eup %3657  ;;  %v570_v50 = vmul.f32 1.442695, %v550_v59 }
 0x2d9   :  { %534 = vmax.xlane.f32.xlu2 %v4459_v54  ;;  %600 = vadd.xlane.f32.xlu1 %v4461_v52 }
 0x2da   :  { %3659 = vpow2.f32 %v570_v50 }
 0x2dd   :  { %v525_v55 = vpop.xlane.xlu2 %524 }
 0x2de   :  { %v551_v44 = vsub.f32 %v482_v45, %v525_v55  ;;  %v505_v45 = vpop.f32.mrf.mxu0 }
 0x2df   :  { %v4488_v5 = vadd.f32 %v505_v45, %v59_v43 }
 0x2e0   :  { %v4470_v40 = vpop.eup %3659  ;;  %v572_v51 = vmul.f32 1.442695, %v551_v44 }
 0x2e1   :  { %536 = vmax.xlane.f32.xlu1 %v4468_v42  ;;  %602 = vadd.xlane.f32.xlu0 %v4470_v40 }
 0x2e2   :  { %3661 = vpow2.f32 %v572_v51 }
 0x2e5   :  { %v527_v36 = vpop.xlane.xlu0 %526 }
 0x2e6   :  { %v552_v53 = vsub.f32 %v4426_v63, %v527_v36  ;;  %v508_v7 = vpop.f32.mrf.mxu0 }
 0x2e7   :  { %v4497_v9 = vadd.f32 %v508_v7, %v60_v37  ;;  %v769_v7 = vld [vmem:[%s6814_s7 + $0x70] sm:$0xff] }
 0x2e8   :  { %v4480_v47 = vpop.eup %3661  ;;  %v574_v57 = vmul.f32 1.442695, %v552_v53 }
 0x2e9   :  { %604 = vadd.xlane.f32.xlu2 %v4480_v47  ;;  %538 = vmax.xlane.f32.xlu0 %v4478_v49 }
 0x2ea   :  { %3663 = vpow2.f32 %v574_v57 }
 0x2ed   :  { %v529_v41 = vpop.xlane.xlu2 %528 }
 0x2ee   :  { %v553_v0 = vsub.f32 %v4432_v3, %v529_v41  ;;  %v511_v3 = vpop.f32.mrf.mxu0 }
 0x2ef   :  { %v4506_v35 = vadd.f32 %v511_v3, %v61_v13 }
 0x2f0   :  { %v4490_v63 = vpop.eup %3663  ;;  %v576_v39 = vmul.f32 1.442695, %v553_v0 }
 0x2f1   :  { %540 = vmax.xlane.f32.xlu2 %v4488_v5  ;;  %606 = vadd.xlane.f32.xlu1 %v4490_v63 }
 0x2f2   :  { %3665 = vpow2.f32 %v576_v39  ;;  %v770_v39 = vld [vmem:[%s6814_s7 + $0x78] sm:$0xff] }
 0x2f3   :  { %773 = vmatpush.msrb.mxu2 %v770_v39 }
 0x2f5   :  { %774 = vmatpush.msrb.mxu2 %v769_v7 }
 0x2f8   :  { %v4499_v1 = vpop.eup %3665 }
 0x2f9   :  { %608 = vadd.xlane.f32.xlu0 %v4499_v1  ;;  %542 = vmax.xlane.f32.xlu1 %v4497_v9 }
 0x301   :  { %544 = vmax.xlane.f32.xlu0 %v4506_v35 }
 0x334   :  { %v595_v2 = vpop.xlane.xlu1 %594 }
 0x335   :  { %3667 = vrcp.f32 %v595_v2  ;;  %v767_v2 = vld [vmem:[%s6814_s7 + $0x60] sm:$0xff] }
 0x33b   :  { %v3668_v15 = vpop.eup %3667 }
 0x33c   :  { %v531_v16 = vpop.xlane.xlu1 %530  ;;  %v597_v22 = vpop.xlane.xlu0 %596  ;;  %v642_v24 = vmul.f32 %v3668_v15, %v4435_v11 }
 0x33d   :  { %v554_v26 = vsub.f32 %v4441_v18, %v531_v16  ;;  %3669 = vrcp.f32 %v597_v22  ;;  %v766_v16 = vld [vmem:[%s6814_s7 + $0x58] sm:$0xff] }
 0x33e   :  { %674 = vmatmul.f32.vlgmr.msrb.gmra.mxu1 %v642_v24 }
 0x33f   :  { %v578_v29 = vmul.f32 1.442695, %v554_v26 }
 0x341   :  { %3671 = vpow2.f32 %v578_v29 }
 0x343   :  { %v3670_v31 = vpop.eup %3669 }
 0x344   :  { %v599_v60 = vpop.xlane.xlu2 %598  ;;  %v533_v61 = vpop.xlane.xlu0 %532  ;;  %v643_v58 = vmul.f32 %v3670_v31, %v4443_v19 }
 0x345   :  { %3673 = vrcp.f32 %v599_v60  ;;  %v555_v56 = vsub.f32 %v4450_v33, %v533_v61  ;;  %v763_v61 = vld [vmem:[%s6814_s7 + $0x40] sm:$0xff] }
 0x346   :  { %677 = vmatmul.f32.gmra.mxu1 %v643_v58 }
 0x347   :  { %v4513_v59 = vpop.eup %3671  ;;  %v580_v50 = vmul.f32 1.442695, %v555_v56  ;;  %v762_v56 = vld [vmem:[%s6814_s7 + $0x38] sm:$0xff] }
 0x348   :  { %610 = vadd.xlane.f32.xlu2 %v4513_v59 }
 0x349   :  { %3675 = vpow2.f32 %v580_v50 }
 0x34b   :  { %v3674_v11 = vpop.eup %3673 }
 0x34c   :  { %v535_v18 = vpop.xlane.xlu2 %534  ;;  %v601_v48 = vpop.xlane.xlu1 %600  ;;  %v644_v55 = vmul.f32 %v3674_v11, %v4452_v62 }
 0x34d   :  { %v556_v46 = vsub.f32 %v4459_v54, %v535_v18  ;;  %3677 = vrcp.f32 %v601_v48 }
 0x34e   :  { %680 = vmatmul.f32.gmra.mxu1 %v644_v55 }
 0x34f   :  { %v4518_v19 = vpop.eup %3675  ;;  %v582_v44 = vmul.f32 1.442695, %v556_v46  ;;  %v759_v46 = vld [vmem:[%s6814_s7 + $0x20] sm:$0xff] }
 0x350   :  { %612 = vadd.xlane.f32.xlu1 %v4518_v19 }
 0x351   :  { %3679 = vpow2.f32 %v582_v44 }
 0x353   :  { %v3678_v33 = vpop.eup %3677 }
 0x354   :  { %v537_v51 = vpop.xlane.xlu1 %536  ;;  %v603_v38 = vpop.xlane.xlu0 %602  ;;  %v645_v36 = vmul.f32 %v3678_v33, %v4461_v52  ;;  %v758_v33 = vld [vmem:[%s6814_s7 + $0x18] sm:$0xff] }
 0x355   :  { %v557_v53 = vsub.f32 %v4468_v42, %v537_v51  ;;  %3681 = vrcp.f32 %v603_v38 }
 0x356   :  { %683 = vmatmul.f32.gmra.mxu1 %v645_v36  ;;  %v756_v36 = vld [vmem:[%s6814_s7 + $0x8] sm:$0xff] }
 0x357   :  { %v4523_v62 = vpop.eup %3679  ;;  %v584_v54 = vmul.f32 1.442695, %v557_v53  ;;  %v755_v53 = vld [vmem:[%s6814_s7] sm:$0xff] }
 0x358   :  { %614 = vadd.xlane.f32.xlu2 %v4523_v62 }
 0x359   :  { %3683 = vpow2.f32 %v584_v54 }
 0x35b   :  { %v3682_v45 = vpop.eup %3681 }
 0x35c   :  { %v605_v57 = vpop.xlane.xlu2 %604  ;;  %v539_v43 = vpop.xlane.xlu0 %538  ;;  %v646_v41 = vmul.f32 %v3682_v45, %v4470_v40  ;;  %v768_v40 = vld [vmem:[%s6814_s7 + $0x68] sm:$0xff] }
 0x35d   :  { %3685 = vrcp.f32 %v605_v57  ;;  %v558_v0 = vsub.f32 %v4478_v49, %v539_v43  ;;  %775 = vmatpush.msrb.mxu2 %v768_v40 }
 0x35e   :  { %686 = vmatmul.f32.gmra.mxu1 %v646_v41 }
 0x35f   :  { %v4528_v52 = vpop.eup %3683  ;;  %v586_v42 = vmul.f32 1.442695, %v558_v0  ;;  %776 = vmatpush.msrb.mxu2 %v767_v2 }
 0x360   :  { %616 = vadd.xlane.f32.xlu0 %v4528_v52 }
 0x361   :  { %3687 = vpow2.f32 %v586_v42  ;;  %777 = vmatpush.msrb.mxu2 %v766_v16 }
 0x363   :  { %v3686_v49 = vpop.eup %3685 }
 0x364   :  { %v541_v37 = vpop.xlane.xlu2 %540  ;;  %v607_v3 = vpop.xlane.xlu1 %606  ;;  %v647_v13 = vmul.f32 %v3686_v49, %v4480_v47  ;;  %v765_v47 = vld [vmem:[%s6814_s7 + $0x50] sm:$0xff] }
 0x365   :  { %v559_v15 = vsub.f32 %v4488_v5, %v541_v37  ;;  %3689 = vrcp.f32 %v607_v3  ;;  %v764_v5 = vld [vmem:[%s6814_s7 + $0x48] sm:$0xff]  ;;  %778 = vmatpush.msrb.mxu2 %v765_v47 }
 0x366   :  { %689 = vmatmul.f32.gmra.mxu1 %v647_v13 }
 0x367   :  { %v4548_v22 = vpop.eup %3687  ;;  %v588_v24 = vmul.f32 1.442695, %v559_v15  ;;  %779 = vmatpush.msrb.mxu2 %v764_v5 }
 0x368   :  { %618 = vadd.xlane.f32.xlu1 %v4548_v22 }
 0x369   :  { %3691 = vpow2.f32 %v588_v24  ;;  %780 = vmatpush.msrb.mxu2 %v763_v61 }
 0x36b   :  { %v3690_v26 = vpop.eup %3689  ;;  %781 = vmatpush.msrb.mxu2 %v762_v56 }
 0x36c   :  { %v543_v29 = vpop.xlane.xlu1 %542  ;;  %v609_v31 = vpop.xlane.xlu0 %608  ;;  %v648_v60 = vmul.f32 %v3690_v26, %v4490_v63  ;;  %v761_v63 = vld [vmem:[%s6814_s7 + $0x30] sm:$0xff] }
 0x36d   :  { %v560_v58 = vsub.f32 %v4497_v9, %v543_v29  ;;  %3693 = vrcp.f32 %v609_v31  ;;  %v760_v9 = vld [vmem:[%s6814_s7 + $0x28] sm:$0xff]  ;;  %782 = vmatpush.msrb.mxu2 %v761_v63  ;;  %v868_v31 = vld [vmem:[%s6816_s9 + $0x70] sm:$0xff] }
 0x36e   :  { %692 = vmatmul.f32.gmra.mxu1 %v648_v60  ;;  %v867_v60 = vld [vmem:[%s6816_s9 + $0x68] sm:$0xff] }
 0x36f   :  { %v4565_v50 = vpop.eup %3691  ;;  %v590_v11 = vmul.f32 1.442695, %v560_v58  ;;  %783 = vmatpush.msrb.mxu2 %v760_v9  ;;  %v864_v9 = vld [vmem:[%s6816_s9 + $0x50] sm:$0xff] }
 0x370   :  { %620 = vadd.xlane.f32.xlu2 %v4565_v50 }
 0x371   :  { %3695 = vpow2.f32 %v590_v11  ;;  %784 = vmatpush.msrb.mxu2 %v759_v46 }
 0x373   :  { %v3694_v18 = vpop.eup %3693  ;;  %785 = vmatpush.msrb.mxu2 %v758_v33 }
 0x374   :  { %v545_v48 = vpop.xlane.xlu0 %544  ;;  %v649_v55 = vmul.f32 %v3694_v18, %v4499_v1 }
 0x375   :  { %v561_v44 = vsub.f32 %v4506_v35, %v545_v48  ;;  %v757_v35 = vld [vmem:[%s6814_s7 + $0x10] sm:$0xff]  ;;  %v862_v48 = vld [vmem:[%s6816_s9 + $0x40] sm:$0xff] }
 0x376   :  { %695 = vmatmul.f32.gmra.mxu1 %v649_v55  ;;  %786 = vmatpush.msrb.mxu2 %v757_v35  ;;  %v860_v35 = vld [vmem:[%s6816_s9 + $0x30] sm:$0xff] }
 0x377   :  { %v4582_v51 = vpop.eup %3695  ;;  %v592_v38 = vmul.f32 1.442695, %v561_v44 }
 0x378   :  { %622 = vadd.xlane.f32.xlu0 %v4582_v51  ;;  %787 = vmatpush.msrb.mxu2 %v756_v36 }
 0x379   :  { %3697 = vpow2.f32 %v592_v38 }
 0x37a   :  { %788 = vmatpush.msrb.mxu2 %v755_v53  ;;  %v858_v53 = vld [vmem:[%s6816_s9 + $0x20] sm:$0xff] }
 0x37f   :  { %v4585_v1 = vpop.eup %3697 }
 0x380   :  { %624 = vadd.xlane.f32.xlu1 %v4585_v1 }
 0x3bb   :  { %v675_v54 = vpop.f32.mrf.mxu1  ;;  %v611_v45 = vpop.xlane.xlu2 %610 }
 0x3bc   :  { %v723_v57 = vmax.f32 %v675_v54, 0.0  ;;  %3699 = vrcp.f32 %v611_v45 }
 0x3be   :  { %v4598_v43 = vadd.f32 %v723_v57, %v4248_v4 }
 0x3c0   :  { %789 = vmatmul.f32.vlgmr.msrb.gmra.mxu2 %v4598_v43 }
 0x3c2   :  { %v3700_v41 = vpop.eup %3699 }
 0x3c3   :  { %v678_v0 = vpop.f32.mrf.mxu1  ;;  %v613_v42 = vpop.xlane.xlu1 %612  ;;  %v650_v39 = vmul.f32 %v3700_v41, %v4513_v59 }
 0x3c4   :  { %v724_v7 = vmax.f32 %v678_v0, 0.0  ;;  %3701 = vrcp.f32 %v613_v42 }
 0x3c5   :  { %698 = vmatmul.f32.gmra.mxu1 %v650_v39 }
 0x3c6   :  { %v4603_v40 = vadd.f32 %v724_v7, %v4254_v6 }
 0x3c8   :  { %792 = vmatmul.f32.gmra.mxu2 %v4603_v40 }
 0x3ca   :  { %v3702_v49 = vpop.eup %3701 }
 0x3cb   :  { %v615_v37 = vpop.xlane.xlu2 %614  ;;  %v681_v3 = vpop.f32.mrf.mxu1  ;;  %v651_v4 = vmul.f32 %v3702_v49, %v4518_v19  ;;  %v855_v49 = vld [vmem:[%s6816_s9 + $0x8] sm:$0xff] }
 0x3cc   :  { %3703 = vrcp.f32 %v615_v37  ;;  %v725_v13 = vmax.f32 %v681_v3, 0.0 }
 0x3cd   :  { %701 = vmatmul.f32.gmra.mxu1 %v651_v4 }
 0x3ce   :  { %v4608_v2 = vadd.f32 %v725_v13, %v4260_v8 }
 0x3d0   :  { %795 = vmatmul.f32.gmra.mxu2 %v4608_v2 }
 0x3d2   :  { %v3704_v59 = vpop.eup %3703 }
 0x3d3   :  { %v684_v15 = vpop.f32.mrf.mxu1  ;;  %v617_v16 = vpop.xlane.xlu0 %616  ;;  %v652_v6 = vmul.f32 %v3704_v59, %v4523_v62  ;;  %v869_v62 = vld [vmem:[%s6816_s9 + $0x78] sm:$0xff] }
 0x3d4   :  { %v726_v24 = vmax.f32 %v684_v15, 0.0  ;;  %3705 = vrcp.f32 %v617_v16  ;;  %872 = vmatpush.msra.mxu3 %v869_v62 }
 0x3d5   :  { %704 = vmatmul.f32.gmra.mxu1 %v652_v6 }
 0x3d6   :  { %v4613_v47 = vadd.f32 %v726_v24, %v4266_v10  ;;  %873 = vmatpush.msra.mxu3 %v868_v31 }
 0x3d8   :  { %798 = vmatmul.f32.gmra.mxu2 %v4613_v47  ;;  %874 = vmatpush.msra.mxu3 %v867_v60 }
 0x3da   :  { %v3706_v19 = vpop.eup %3705 }
 0x3db   :  { %v687_v5 = vpop.f32.mrf.mxu1  ;;  %v619_v26 = vpop.xlane.xlu1 %618  ;;  %v653_v8 = vmul.f32 %v3706_v19, %v4528_v52  ;;  %v866_v52 = vld [vmem:[%s6816_s9 + $0x60] sm:$0xff] }
 0x3dc   :  { %v727_v29 = vmax.f32 %v687_v5, 0.0  ;;  %3707 = vrcp.f32 %v619_v26  ;;  %875 = vmatpush.msra.mxu3 %v866_v52 }
 0x3dd   :  { %707 = vmatmul.f32.gmra.mxu1 %v653_v8 }
 0x3de   :  { %v4624_v10 = vadd.f32 %v727_v29, %v4272_v12  ;;  %v865_v12 = vld [vmem:[%s6816_s9 + $0x58] sm:$0xff] }
 0x3df   :  { %876 = vmatpush.msra.mxu3 %v865_v12  ;;  %v3440_v12 = vld [vmem:[%s6811_s5 + $0x2f0] sm:$0xff] }
 0x3e0   :  { %801 = vmatmul.f32.gmra.mxu2 %v4624_v10  ;;  %1092 = vmatpush.msra.mxu1 %v3440_v12 }
 0x3e1   :  { %877 = vmatpush.msra.mxu3 %v864_v9  ;;  %v3437_v9 = vld [vmem:[%s6811_s5 + $0x2d8] sm:$0xff] }
 0x3e2   :  { %v3708_v61 = vpop.eup %3707  ;;  %1093 = vmatpush.msra.mxu1 %v3437_v9 }
 0x3e3   :  { %v621_v58 = vpop.xlane.xlu2 %620  ;;  %v690_v56 = vpop.f32.mrf.mxu1  ;;  %v654_v11 = vmul.f32 %v3708_v61, %v4548_v22  ;;  %v863_v22 = vld [vmem:[%s6816_s9 + $0x48] sm:$0xff] }
 0x3e4   :  { %3709 = vrcp.f32 %v621_v58  ;;  %v728_v63 = vmax.f32 %v690_v56, 0.0  ;;  %878 = vmatpush.msra.mxu3 %v863_v22  ;;  %v3438_v22 = vld [vmem:[%s6811_s5 + $0x2e0] sm:$0xff] }
 0x3e5   :  { %710 = vmatmul.f32.gmra.mxu1 %v654_v11 }
 0x3e6   :  { %v4641_v18 = vadd.f32 %v728_v63, %v4278_v14  ;;  %v861_v14 = vld [vmem:[%s6816_s9 + $0x38] sm:$0xff]  ;;  %879 = vmatpush.msra.mxu3 %v862_v48 }
 0x3e7   :  { %v3441_v63 = vld [vmem:[%s6811_s5 + $0x2f8] sm:$0xff] }
 0x3e8   :  { %804 = vmatmul.f32.gmra.mxu2 %v4641_v18  ;;  %880 = vmatpush.msra.mxu3 %v861_v14  ;;  %v3435_v14 = vld [vmem:[%s6811_s5 + $0x2c8] sm:$0xff] }
 0x3e9   :  { %1157 = vmatpush.msra.mxu2 %v3441_v63  ;;  %v3406_v63 = vld [vmem:[%s6811_s5 + $0x1e0] sm:$0xff] }
 0x3ea   :  { %v3710_v55 = vpop.eup %3709  ;;  %881 = vmatpush.msra.mxu3 %v860_v35  ;;  %v3430_v35 = vld [vmem:[%s6811_s5 + $0x2a0] sm:$0xff] }
 0x3eb   :  { %v693_v46 = vpop.f32.mrf.mxu1  ;;  %v623_v44 = vpop.xlane.xlu0 %622  ;;  %v655_v33 = vmul.f32 %v3710_v55, %v4565_v50  ;;  %v859_v50 = vld [vmem:[%s6816_s9 + $0x28] sm:$0xff]  ;;  %v3433_v55 = vld [vmem:[%s6811_s5 + $0x2b8] sm:$0xff]  ;;  %1158 = vmatpush.msra.mxu2 %v3438_v22 }
 0x3ec   :  { %v729_v38 = vmax.f32 %v693_v46, 0.0  ;;  %3711 = vrcp.f32 %v623_v44  ;;  %882 = vmatpush.msra.mxu3 %v859_v50  ;;  %v3434_v46 = vld [vmem:[%s6811_s5 + $0x2c0] sm:$0xff] }
 0x3ed   :  { %713 = vmatmul.f32.gmra.mxu1 %v655_v33  ;;  %1159 = vmatpush.msra.mxu2 %v3435_v14  ;;  %v3404_v14 = vld [vmem:[%s6811_s5 + $0x1d0] sm:$0xff] }
 0x3ee   :  { %v4658_v36 = vadd.f32 %v729_v38, %v4284_v17  ;;  %v857_v17 = vld [vmem:[%s6816_s9 + $0x18] sm:$0xff]  ;;  %883 = vmatpush.msra.mxu3 %v858_v53  ;;  %1094 = vmatpush.msra.mxu1 %v3434_v46  ;;  %v3431_v53 = vld [vmem:[%s6811_s5 + $0x2a8] sm:$0xff] }
 0x3f0   :  { %807 = vmatmul.f32.gmra.mxu2 %v4658_v36  ;;  %884 = vmatpush.msra.mxu3 %v857_v17  ;;  %v3424_v17 = vld [vmem:[%s6811_s5 + $0x270] sm:$0xff] }
 0x3f1   :  { %1095 = vmatpush.msra.mxu1 %v3431_v53  ;;  %v3402_v53 = vld [vmem:[%s6811_s5 + $0x1c0] sm:$0xff] }
 0x3f2   :  { %v3712_v54 = vpop.eup %3711 }
 0x3f3   :  { %v696_v45 = vpop.f32.mrf.mxu1  ;;  %v625_v57 = vpop.xlane.xlu1 %624  ;;  %v656_v41 = vmul.f32 %v3712_v54, %v4582_v51  ;;  %v856_v51 = vld [vmem:[%s6816_s9 + $0x10] sm:$0xff] }
 0x3f4   :  { %v730_v0 = vmax.f32 %v696_v45, 0.0  ;;  %3713 = vrcp.f32 %v625_v57  ;;  %885 = vmatpush.msra.mxu3 %v856_v51  ;;  %v3432_v45 = vld [vmem:[%s6811_s5 + $0x2b0] sm:$0xff]  ;;  %v3427_v57 = vld [vmem:[%s6811_s5 + $0x288] sm:$0xff]  ;;  %v3421_v51 = vld [vmem:[%s6811_s5 + $0x258] sm:$0xff] }
 0x3f5   :  { %716 = vmatmul.f32.gmra.mxu1 %v656_v41  ;;  %v3429_v41 = vld [vmem:[%s6811_s5 + $0x298] sm:$0xff]  ;;  %1160 = vmatpush.msra.mxu2 %v3432_v45  ;;  %v3398_v45 = vld [vmem:[%s6811_s5 + $0x1a0] sm:$0xff] }
 0x3f6   :  { %v4672_v42 = vadd.f32 %v730_v0, %v4290_v20  ;;  %886 = vmatpush.msra.mxu3 %v855_v49  ;;  %v854_v20 = vld [vmem:[%s6816_s9] sm:$0xff]  ;;  %v3425_v0 = vld [vmem:[%s6811_s5 + $0x278] sm:$0xff] }
 0x3f7   :  { %1161 = vmatpush.msra.mxu2 %v3429_v41  ;;  %v3395_v41 = vld [vmem:[%s6811_s5 + $0x188] sm:$0xff] }
 0x3f8   :  { %810 = vmatmul.f32.gmra.mxu2 %v4672_v42  ;;  %887 = vmatpush.msra.mxu3 %v854_v20 }
 0x3fa   :  { %v3714_v39 = vpop.eup %3713 }
 0x3fb   :  { %v657_v7 = vmul.f32 %v3714_v39, %v4585_v1  ;;  %v4688_v1 = vld [vmem:[%s6815_s8] ss:$0 sm:$0xff] }
 0x3fd   :  { %719 = vmatmul.f32.gmra.mxu1 %v657_v7  ;;  %v3426_v7 = vld [vmem:[%s6811_s5 + $0x280] sm:$0xff] }
 0x3fe   :  { %1162 = vmatpush.msra.mxu2 %v3426_v7 }
 0x442   :  { %v699_v37 = vpop.f32.mrf.mxu1 }
 0x443   :  { %v731_v3 = vmax.f32 %v699_v37, 0.0  ;;  %v790_v4 = vpop.f32.mrf.mxu2  ;;  %v3422_v37 = vld [vmem:[%s6811_s5 + $0x260] sm:$0xff] }
 0x444   :  { %v791_v13 = vadd.f32 %v4688_v1, %v790_v4  ;;  %v3418_v4 = vld [vmem:[%s6811_s5 + $0x240] sm:$0xff] }
 0x445   :  { %v4692_v59 = vadd.f32 %v731_v3, %v4296_v21 }
 0x446   :  { %v838_v15 = vmax.f32 %v791_v13, 0.0 }
 0x447   :  { %813 = vmatmul.f32.gmra.mxu2 %v4692_v59 }
 0x448   :  { %888 = vmatmul.f32.vlgmr.msra.gmra.mxu3 %v838_v15  ;;  %v3423_v15 = vld [vmem:[%s6811_s5 + $0x268] sm:$0xff] }
 0x449   :  { %1163 = vmatpush.msra.mxu2 %v3423_v15 }
 0x44a   :  { %v702_v16 = vpop.f32.mrf.mxu1 }
 0x44b   :  { %v732_v6 = vmax.f32 %v702_v16, 0.0  ;;  %v793_v24 = vpop.f32.mrf.mxu2 }
 0x44c   :  { %v794_v19 = vadd.f32 %v4688_v1, %v793_v24  ;;  %v3415_v24 = vld [vmem:[%s6811_s5 + $0x228] sm:$0xff] }
 0x44d   :  { %v4697_v5 = vadd.f32 %v732_v6, %v4302_v23  ;;  %v3419_v6 = vld [vmem:[%s6811_s5 + $0x248] sm:$0xff] }
 0x44e   :  { %v839_v26 = vmax.f32 %v794_v19, 0.0  ;;  %v3416_v19 = vld [vmem:[%s6811_s5 + $0x230] sm:$0xff] }
 0x44f   :  { %816 = vmatmul.f32.gmra.mxu2 %v4697_v5 }
 0x450   :  { %891 = vmatmul.f32.gmra.mxu3 %v839_v26  ;;  %v3412_v26 = vld [vmem:[%s6811_s5 + $0x210] sm:$0xff] }
 0x452   :  { %v705_v8 = vpop.f32.mrf.mxu1 }
 0x453   :  { %v733_v29 = vmax.f32 %v705_v8, 0.0  ;;  %v796_v21 = vpop.f32.mrf.mxu2  ;;  %v3417_v8 = vld [vmem:[%s6811_s5 + $0x238] sm:$0xff] }
 0x454   :  { %v797_v62 = vadd.f32 %v4688_v1, %v796_v21  ;;  %v3413_v21 = vld [vmem:[%s6811_s5 + $0x218] sm:$0xff] }
 0x455   :  { %v4702_v31 = vadd.f32 %v733_v29, %v4308_v25  ;;  %v3439_v25 = vld [vmem:[%s6811_s5 + $0x2e8] sm:$0xff] }
 0x456   :  { %v840_v60 = vmax.f32 %v797_v62, 0.0  ;;  %1027 = vmatpush.msra.mxu0 %v3439_v25  ;;  %v3409_v62 = vld [vmem:[%s6811_s5 + $0x1f8] sm:$0xff]  ;;  %v3411_v25 = vld [vmem:[%s6811_s5 + $0x208] sm:$0xff] }
 0x457   :  { %819 = vmatmul.f32.gmra.mxu2 %v4702_v31 }
 0x458   :  { %894 = vmatmul.f32.gmra.mxu3 %v840_v60 }
 0x45a   :  { %v708_v52 = vpop.f32.mrf.mxu1 }
 0x45b   :  { %v734_v61 = vmax.f32 %v708_v52, 0.0  ;;  %v799_v23 = vpop.f32.mrf.mxu2 }
 0x45c   :  { %v800_v58 = vadd.f32 %v4688_v1, %v799_v23 }
 0x45d   :  { %v4707_v56 = vadd.f32 %v734_v61, %v4314_v27  ;;  %v3436_v27 = vld [vmem:[%s6811_s5 + $0x2d0] sm:$0xff]  ;;  %v3414_v61 = vld [vmem:[%s6811_s5 + $0x220] sm:$0xff] }
 0x45e   :  { %v841_v11 = vmax.f32 %v800_v58, 0.0  ;;  %1028 = vmatpush.msra.mxu0 %v3436_v27  ;;  %v3410_v58 = vld [vmem:[%s6811_s5 + $0x200] sm:$0xff]  ;;  %v3407_v27 = vld [vmem:[%s6811_s5 + $0x1e8] sm:$0xff] }
 0x45f   :  { %822 = vmatmul.f32.gmra.mxu2 %v4707_v56 }
 0x460   :  { %897 = vmatmul.f32.gmra.mxu3 %v841_v11  ;;  %1029 = vmatpush.msra.mxu0 %v3433_v55 }
 0x462   :  { %v711_v48 = vpop.f32.mrf.mxu1  ;;  %1030 = vmatpush.msra.mxu0 %v3430_v35  ;;  %v3401_v35 = vld [vmem:[%s6811_s5 + $0x1b8] sm:$0xff] }
 0x463   :  { %v735_v44 = vmax.f32 %v711_v48, 0.0  ;;  %v802_v33 = vpop.f32.mrf.mxu2 }
 0x464   :  { %v803_v38 = vadd.f32 %v4688_v1, %v802_v33  ;;  %1031 = vmatpush.msra.mxu0 %v3427_v57  ;;  %v3403_v33 = vld [vmem:[%s6811_s5 + $0x1c8] sm:$0xff] }
 0x465   :  { %v4742_v50 = vadd.f32 %v735_v44, %v4320_v28  ;;  %v3428_v28 = vld [vmem:[%s6811_s5 + $0x290] sm:$0xff]  ;;  %v3399_v57 = vld [vmem:[%s6811_s5 + $0x1a8] sm:$0xff] }
 0x466   :  { %v842_v54 = vmax.f32 %v803_v38, 0.0  ;;  %1096 = vmatpush.msra.mxu1 %v3428_v28  ;;  %1032 = vmatpush.msra.mxu0 %v3424_v17  ;;  %v3405_v38 = vld [vmem:[%s6811_s5 + $0x1d8] sm:$0xff]  ;;  %v3394_v28 = vld [vmem:[%s6811_s5 + $0x180] sm:$0xff]  ;;  %v3396_v17 = vld [vmem:[%s6811_s5 + $0x190] sm:$0xff] }
 0x467   :  { %825 = vmatmul.f32.gmra.mxu2 %v4742_v50 }
 0x468   :  { %900 = vmatmul.f32.gmra.mxu3 %v842_v54  ;;  %1097 = vmatpush.msra.mxu1 %v3425_v0  ;;  %v3397_v54 = vld [vmem:[%s6811_s5 + $0x198] sm:$0xff]  ;;  %v4877_v0 = vld [vmem:[%s6817_s10] ss:$0 sm:$0xff] }
 0x469   :  { %1033 = vmatpush.msra.mxu0 %v3421_v51 }
 0x46a   :  { %v714_v39 = vpop.f32.mrf.mxu1  ;;  %1098 = vmatpush.msra.mxu1 %v3422_v37 }
 0x46b   :  { %v736_v49 = vmax.f32 %v714_v39, 0.0  ;;  %v805_v20 = vpop.f32.mrf.mxu2  ;;  %1034 = vmatpush.msra.mxu0 %v3418_v4 }
 0x46c   :  { %v806_v3 = vadd.f32 %v4688_v1, %v805_v20  ;;  %1099 = vmatpush.msra.mxu1 %v3419_v6 }
 0x46d   :  { %v4780_v13 = vadd.f32 %v736_v49, %v4326_v30  ;;  %v3420_v30 = vld [vmem:[%s6811_s5 + $0x250] sm:$0xff]  ;;  %1035 = vmatpush.msra.mxu0 %v3415_v24 }
 0x46e   :  { %v843_v16 = vmax.f32 %v806_v3, 0.0  ;;  %1164 = vmatpush.msra.mxu2 %v3420_v30  ;;  %1100 = vmatpush.msra.mxu1 %v3416_v19 }
 0x46f   :  { %828 = vmatmul.f32.gmra.mxu2 %v4780_v13  ;;  %1036 = vmatpush.msra.mxu0 %v3412_v26 }
 0x470   :  { %903 = vmatmul.f32.gmra.mxu3 %v843_v16  ;;  %1165 = vmatpush.msra.mxu2 %v3417_v8 }
 0x471   :  { %1101 = vmatpush.msra.mxu1 %v3413_v21  ;;  %1037 = vmatpush.msra.mxu0 %v3409_v62 }
 0x472   :  { %v717_v29 = vpop.f32.mrf.mxu1  ;;  %1166 = vmatpush.msra.mxu2 %v3414_v61 }
 0x473   :  { %v737_v60 = vmax.f32 %v717_v29, 0.0  ;;  %v808_v52 = vpop.f32.mrf.mxu2  ;;  %1102 = vmatpush.msra.mxu1 %v3410_v58  ;;  %1038 = vmatpush.msra.mxu0 %v3406_v63 }
 0x474   :  { %v809_v23 = vadd.f32 %v4688_v1, %v808_v52  ;;  %1167 = vmatpush.msra.mxu2 %v3411_v25 }
 0x475   :  { %v4818_v11 = vadd.f32 %v737_v60, %v4332_v32  ;;  %v3408_v32 = vld [vmem:[%s6811_s5 + $0x1f0] sm:$0xff]  ;;  %1103 = vmatpush.msra.mxu1 %v3407_v27  ;;  %1039 = vmatpush.msra.mxu0 %v3403_v33 }
 0x476   :  { %v844_v12 = vmax.f32 %v809_v23, 0.0  ;;  %1168 = vmatpush.msra.mxu2 %v3408_v32 }
 0x477   :  { %831 = vmatmul.f32.gmra.mxu2 %v4818_v11  ;;  %1104 = vmatpush.msra.mxu1 %v3404_v14 }
 0x478   :  { %906 = vmatmul.f32.gmra.mxu3 %v844_v12  ;;  %1169 = vmatpush.msra.mxu2 %v3405_v38 }
 0x479   :  { %1105 = vmatpush.msra.mxu1 %v3401_v35 }
 0x47a   :  { %v720_v9 = vpop.f32.mrf.mxu1  ;;  %1170 = vmatpush.msra.mxu2 %v3402_v53 }
 0x47b   :  { %v738_v22 = vmax.f32 %v720_v9, 0.0  ;;  %v811_v48 = vpop.f32.mrf.mxu2  ;;  %1106 = vmatpush.msra.mxu1 %v3398_v45 }
 0x47c   :  { %v812_v55 = vadd.f32 %v4688_v1, %v811_v48  ;;  %1171 = vmatpush.msra.mxu2 %v3399_v57 }
 0x47d   :  { %v4835_v46 = vadd.f32 %v738_v22, %v4338_v34  ;;  %v3400_v34 = vld [vmem:[%s6811_s5 + $0x1b0] sm:$0xff]  ;;  %1107 = vmatpush.msra.mxu1 %v3395_v41 }
 0x47e   :  { %v845_v44 = vmax.f32 %v812_v55, 0.0  ;;  %1040 = vmatpush.msra.mxu0 %v3400_v34  ;;  %1172 = vmatpush.msra.mxu2 %v3396_v17 }
 0x47f   :  { %834 = vmatmul.f32.gmra.mxu2 %v4835_v46 }
 0x480   :  { %909 = vmatmul.f32.gmra.mxu3 %v845_v44  ;;  %1041 = vmatpush.msra.mxu0 %v3397_v54 }
 0x482   :  { %1042 = vmatpush.msra.mxu0 %v3394_v28 }
 0x4ca   :  { %v814_v39 = vpop.f32.mrf.mxu2 }
 0x4cb   :  { %v815_v7 = vadd.f32 %v4688_v1, %v814_v39  ;;  %v889_v51 = vpop.f32.mrf.mxu3 }
 0x4cc   :  { %v890_v49 = vadd.f32 %v4877_v0, %v889_v51 }
 0x4cd   :  { %v846_v20 = vmax.f32 %v815_v7, 0.0 }
 0x4ce   :  { %v937_v37 = vmax.f32 %v890_v49, 0.0 }
 0x4cf   :  { %912 = vmatmul.f32.gmra.mxu3 %v846_v20 }
 0x4d0   :  { %v4882_v3 = vadd.f32 %v937_v37, %v4598_v43 }
 0x4d2   :  { %v817_v4 = vpop.f32.mrf.mxu2  ;;  %1043 = vmatmul.f32.vlgmr.msra.gmra.mxu0 %v4882_v3  ;;  %1108 = vmatmul.f32.vlgmr.msra.gmra.mxu1 %v4882_v3 }
 0x4d3   :  { %v818_v15 = vadd.f32 %v4688_v1, %v817_v4  ;;  %1173 = vmatmul.f32.vlgmr.msra.gmra.mxu2 %v4882_v3  ;;  %v892_v16 = vpop.f32.mrf.mxu3 }
 0x4d4   :  { %v893_v6 = vadd.f32 %v4877_v0, %v892_v16 }
 0x4d5   :  { %v847_v24 = vmax.f32 %v818_v15, 0.0 }
 0x4d6   :  { %v938_v30 = vmax.f32 %v893_v6, 0.0 }
 0x4d7   :  { %915 = vmatmul.f32.gmra.mxu3 %v847_v24 }
 0x4d8   :  { %v4890_v19 = vadd.f32 %v938_v30, %v4603_v40 }
 0x4da   :  { %v820_v43 = vpop.f32.mrf.mxu2  ;;  %1046 = vmatmul.f32.gmra.mxu0 %v4890_v19  ;;  %1111 = vmatmul.f32.gmra.mxu1 %v4890_v19 }
 0x4db   :  { %v821_v26 = vadd.f32 %v4688_v1, %v820_v43  ;;  %1176 = vmatmul.f32.gmra.mxu2 %v4890_v19  ;;  %v895_v8 = vpop.f32.mrf.mxu3 }
 0x4dc   :  { %v896_v29 = vadd.f32 %v4877_v0, %v895_v8 }
 0x4dd   :  { %v848_v21 = vmax.f32 %v821_v26, 0.0 }
 0x4de   :  { %v939_v62 = vmax.f32 %v896_v29, 0.0 }
 0x4df   :  { %918 = vmatmul.f32.gmra.mxu3 %v848_v21 }
 0x4e0   :  { %v4898_v60 = vadd.f32 %v939_v62, %v4608_v2 }
 0x4e2   :  { %v823_v40 = vpop.f32.mrf.mxu2  ;;  %1049 = vmatmul.f32.gmra.mxu0 %v4898_v60  ;;  %1114 = vmatmul.f32.gmra.mxu1 %v4898_v60 }
 0x4e3   :  { %v824_v52 = vadd.f32 %v4688_v1, %v823_v40  ;;  %1179 = vmatmul.f32.gmra.mxu2 %v4898_v60  ;;  %v898_v61 = vpop.f32.mrf.mxu3 }
 0x4e4   :  { %v899_v23 = vadd.f32 %v4877_v0, %v898_v61 }
 0x4e5   :  { %v849_v58 = vmax.f32 %v824_v52, 0.0 }
 0x4e6   :  { %v940_v25 = vmax.f32 %v899_v23, 0.0 }
 0x4e7   :  { %921 = vmatmul.f32.gmra.mxu3 %v849_v58 }
 0x4e8   :  { %v4906_v12 = vadd.f32 %v940_v25, %v4613_v47 }
 0x4ea   :  { %v826_v2 = vpop.f32.mrf.mxu2  ;;  %1052 = vmatmul.f32.gmra.mxu0 %v4906_v12  ;;  %1117 = vmatmul.f32.gmra.mxu1 %v4906_v12 }
 0x4eb   :  { %v827_v63 = vadd.f32 %v4688_v1, %v826_v2  ;;  %1182 = vmatmul.f32.gmra.mxu2 %v4906_v12  ;;  %v901_v27 = vpop.f32.mrf.mxu3 }
 0x4ec   :  { %v902_v32 = vadd.f32 %v4877_v0, %v901_v27 }
 0x4ed   :  { %v850_v9 = vmax.f32 %v827_v63, 0.0 }
 0x4ee   :  { %v941_v22 = vmax.f32 %v902_v32, 0.0 }
 0x4ef   :  { %924 = vmatmul.f32.gmra.mxu3 %v850_v9 }
 0x4f0   :  { %v4914_v48 = vadd.f32 %v941_v22, %v4624_v10 }
 0x4f2   :  { %v829_v47 = vpop.f32.mrf.mxu2  ;;  %1055 = vmatmul.f32.gmra.mxu0 %v4914_v48  ;;  %1120 = vmatmul.f32.gmra.mxu1 %v4914_v48 }
 0x4f3   :  { %v830_v55 = vadd.f32 %v4688_v1, %v829_v47  ;;  %1185 = vmatmul.f32.gmra.mxu2 %v4914_v48  ;;  %v904_v44 = vpop.f32.mrf.mxu3 }
 0x4f4   :  { %v905_v33 = vadd.f32 %v4877_v0, %v904_v44 }
 0x4f5   :  { %v851_v14 = vmax.f32 %v830_v55, 0.0 }
 0x4f6   :  { %v942_v38 = vmax.f32 %v905_v33, 0.0 }
 0x4f7   :  { %927 = vmatmul.f32.gmra.mxu3 %v851_v14 }
 0x4f8   :  { %v4922_v34 = vadd.f32 %v942_v38, %v4641_v18 }
 0x4fa   :  { %v832_v10 = vpop.f32.mrf.mxu2  ;;  %1058 = vmatmul.f32.gmra.mxu0 %v4922_v34  ;;  %1123 = vmatmul.f32.gmra.mxu1 %v4922_v34 }
 0x4fb   :  { %v833_v35 = vadd.f32 %v4688_v1, %v832_v10  ;;  %1188 = vmatmul.f32.gmra.mxu2 %v4922_v34  ;;  %v907_v53 = vpop.f32.mrf.mxu3 }
 0x4fc   :  { %v908_v54 = vadd.f32 %v4877_v0, %v907_v53 }
 0x4fd   :  { %v852_v45 = vmax.f32 %v833_v35, 0.0 }
 0x4fe   :  { %v943_v57 = vmax.f32 %v908_v54, 0.0 }
 0x4ff   :  { %930 = vmatmul.f32.gmra.mxu3 %v852_v45 }
 0x500   :  { %v4930_v28 = vadd.f32 %v943_v57, %v4658_v36 }
 0x502   :  { %v835_v18 = vpop.f32.mrf.mxu2  ;;  %1061 = vmatmul.f32.gmra.mxu0 %v4930_v28  ;;  %1126 = vmatmul.f32.gmra.mxu1 %v4930_v28 }
 0x503   :  { %v836_v41 = vadd.f32 %v4688_v1, %v835_v18  ;;  %1191 = vmatmul.f32.gmra.mxu2 %v4930_v28  ;;  %v910_v17 = vpop.f32.mrf.mxu3 }
 0x504   :  { %v911_v39 = vadd.f32 %v4877_v0, %v910_v17 }
 0x505   :  { %v853_v7 = vmax.f32 %v836_v41, 0.0 }
 0x506   :  { %v944_v51 = vmax.f32 %v911_v39, 0.0 }
 0x507   :  { %933 = vmatmul.f32.gmra.mxu3 %v853_v7 }
 0x508   :  { %v4938_v49 = vadd.f32 %v944_v51, %v4672_v42 }
 0x50a   :  { %1064 = vmatmul.f32.gmra.mxu0 %v4938_v49  ;;  %1129 = vmatmul.f32.gmra.mxu1 %v4938_v49 }
 0x50b   :  { %1194 = vmatmul.f32.gmra.mxu2 %v4938_v49 }
 0x54f   :  { %v4989_v2 = vpop.f32.mrf.mxu1 }
 0x552   :  { %v913_v36 = vpop.f32.mrf.mxu3 }
 0x553   :  { %v914_v1 = vadd.f32 %v4877_v0, %v913_v36 }
 0x555   :  { %v945_v20 = vmax.f32 %v914_v1, 0.0 }
 0x556   :  { %v4995_v32 = vpop.f32.mrf.mxu2 }
 0x557   :  { %v4945_v37 = vadd.f32 %v945_v20, %v4692_v59 }
 0x559   :  { %1067 = vmatmul.f32.gmra.mxu0 %v4945_v37  ;;  %1132 = vmatmul.f32.gmra.mxu1 %v4945_v37 }
 0x55a   :  { %1197 = vmatmul.f32.gmra.mxu2 %v4945_v37  ;;  %v916_v42 = vpop.f32.mrf.mxu3 }
 0x55b   :  { %v917_v4 = vadd.f32 %v4877_v0, %v916_v42 }
 0x55d   :  { %v946_v15 = vmax.f32 %v917_v4, 0.0 }
 0x55e   :  { %v5005_v22 = vpop.f32.mrf.mxu2 }
 0x55f   :  { %v4952_v16 = vadd.f32 %v946_v15, %v4697_v5  ;;  %v5026_v15 = vld [vmem:[%s6812_s6 + $0x1] ss:$4 sm:$0x7] }
 0x561   :  { %1070 = vmatmul.f32.gmra.mxu0 %v4952_v16  ;;  %1135 = vmatmul.f32.gmra.mxu1 %v4952_v16 }
 0x562   :  { %1200 = vmatmul.f32.gmra.mxu2 %v4952_v16  ;;  %v919_v59 = vpop.f32.mrf.mxu3 }
 0x563   :  { %v920_v6 = vadd.f32 %v4877_v0, %v919_v59  ;;  %v5029_v59 = vperm.slane %v5026_v15, 1 }
 0x565   :  { %v947_v24 = vmax.f32 %v920_v6, 0.0 }
 0x566   :  { %v5009_v55 = vpop.f32.mrf.mxu2 }
 0x567   :  { %v4959_v30 = vadd.f32 %v947_v24, %v4702_v31 }
 0x569   :  { %1073 = vmatmul.f32.gmra.mxu0 %v4959_v30  ;;  %1138 = vmatmul.f32.gmra.mxu1 %v4959_v30 }
 0x56a   :  { %1203 = vmatmul.f32.gmra.mxu2 %v4959_v30  ;;  %v922_v5 = vpop.f32.mrf.mxu3 }
 0x56b   :  { %v923_v43 = vadd.f32 %v4877_v0, %v922_v5 }
 0x56d   :  { %v948_v26 = vmax.f32 %v923_v43, 0.0 }
 0x56e   :  { %v5013_v44 = vpop.f32.mrf.mxu2 }
 0x56f   :  { %v4966_v8 = vadd.f32 %v948_v26, %v4707_v56  ;;  %v1023_v26 = vperm.slane %v5026_v15, 2 }
 0x571   :  { %1076 = vmatmul.f32.gmra.mxu0 %v4966_v8  ;;  %1141 = vmatmul.f32.gmra.mxu1 %v4966_v8 }
 0x572   :  { %1206 = vmatmul.f32.gmra.mxu2 %v4966_v8  ;;  %v925_v31 = vpop.f32.mrf.mxu3 }
 0x573   :  { %v926_v29 = vadd.f32 %v4877_v0, %v925_v31 }
 0x575   :  { %v949_v21 = vmax.f32 %v926_v29, 0.0 }
 0x576   :  { %v1186_v33 = vpop.f32.mrf.mxu2 }
 0x577   :  { %v4973_v62 = vadd.f32 %v949_v21, %v4742_v50 }
 0x579   :  { %1079 = vmatmul.f32.gmra.mxu0 %v4973_v62  ;;  %1144 = vmatmul.f32.gmra.mxu1 %v4973_v62 }
 0x57a   :  { %1209 = vmatmul.f32.gmra.mxu2 %v4973_v62  ;;  %v928_v56 = vpop.f32.mrf.mxu3 }
 0x57b   :  { %v929_v40 = vadd.f32 %v4877_v0, %v928_v56 }
 0x57d   :  { %v950_v52 = vmax.f32 %v929_v40, 0.0 }
 0x57e   :  { %v1189_v38 = vpop.f32.mrf.mxu2 }
 0x57f   :  { %v4980_v61 = vadd.f32 %v950_v52, %v4780_v13 }
 0x581   :  { %1082 = vmatmul.f32.gmra.mxu0 %v4980_v61  ;;  %1147 = vmatmul.f32.gmra.mxu1 %v4980_v61 }
 0x582   :  { %1212 = vmatmul.f32.gmra.mxu2 %v4980_v61  ;;  %v931_v50 = vpop.f32.mrf.mxu3 }
 0x583   :  { %v932_v23 = vadd.f32 %v4877_v0, %v931_v50 }
 0x585   :  { %v951_v58 = vmax.f32 %v932_v23, 0.0 }
 0x586   :  { %v1192_v35 = vpop.f32.mrf.mxu2 }
 0x587   :  { %v4987_v25 = vadd.f32 %v951_v58, %v4818_v11  ;;  %v5002_v11 = vpop.f32.mrf.mxu1 }
 0x589   :  { %1085 = vmatmul.f32.gmra.mxu0 %v4987_v25  ;;  %1150 = vmatmul.f32.gmra.mxu1 %v4987_v25 }
 0x58a   :  { %1215 = vmatmul.f32.gmra.mxu2 %v4987_v25  ;;  %v934_v13 = vpop.f32.mrf.mxu3 }
 0x58b   :  { %v935_v63 = vadd.f32 %v4877_v0, %v934_v13 }
 0x58d   :  { %v952_v27 = vmax.f32 %v935_v63, 0.0 }
 0x58e   :  { %v1195_v54 = vpop.f32.mrf.mxu2 }
 0x58f   :  { %v4998_v9 = vadd.f32 %v952_v27, %v4835_v46  ;;  %v5007_v47 = vpop.f32.mrf.mxu1 }
 0x591   :  { %1088 = vmatmul.f32.gmra.mxu0 %v4998_v9  ;;  %1153 = vmatmul.f32.gmra.mxu1 %v4998_v9 }
 0x592   :  { %1218 = vmatmul.f32.gmra.mxu2 %v4998_v9 }
 0x597   :  { %v5011_v0 = vpop.f32.mrf.mxu1 }
 0x59f   :  { %v5015_v46 = vpop.f32.mrf.mxu1 }
 0x5a7   :  { %v5017_v14 = vpop.f32.mrf.mxu1 }
 0x5af   :  { %v5019_v10 = vpop.f32.mrf.mxu1 }
 0x5b7   :  { %v5021_v53 = vpop.f32.mrf.mxu1 }
 0x5d6   :  { %v1133_v45 = vpop.f32.mrf.mxu1 }
 0x5dd   :  { %v1198_v57 = vpop.f32.mrf.mxu2 }
 0x5de   :  { %v1136_v18 = vpop.f32.mrf.mxu1 }
 0x5e5   :  { %v1201_v41 = vpop.f32.mrf.mxu2 }
 0x5e6   :  { %v1139_v17 = vpop.f32.mrf.mxu1  ;;  %v1202_v63 = vadd.f32 %v1201_v41, %v1023_v26  ;;  %v1184_v41 = vadd.f32 %v5013_v44, %v1023_v26  ;;  %v1125_v44 = vadd.f32 %v5017_v14, %v5029_v59  ;;  %v1021_v14 = vperm.slane %v5026_v15, 0 }
 0x5e7   :  { %v1140_v27 = vadd.f32 %v1139_v17, %v5029_v59  ;;  %v1181_v17 = vadd.f32 %v5009_v55, %v1023_v26  ;;  %v1122_v55 = vadd.f32 %v5015_v46, %v5029_v59 }
 0x5ed   :  { %v1204_v39 = vpop.f32.mrf.mxu2 }
 0x5ee   :  { %v1142_v7 = vpop.f32.mrf.mxu1  ;;  %v1205_v13 = vadd.f32 %v1204_v39, %v1023_v26  ;;  %v1134_v39 = vadd.f32 %v1133_v45, %v5029_v59 }
 0x5ef   :  { %v1143_v58 = vadd.f32 %v1142_v7, %v5029_v59  ;;  %v1187_v7 = vadd.f32 %v1186_v33, %v1023_v26  ;;  %v1175_v33 = vadd.f32 %v4995_v32, %v1023_v26  ;;  %v1116_v32 = vadd.f32 %v5007_v47, %v5029_v59 }
 0x5f5   :  { %v1207_v51 = vpop.f32.mrf.mxu2 }
 0x5f6   :  { %v1145_v36 = vpop.f32.mrf.mxu1  ;;  %v1208_v23 = vadd.f32 %v1207_v51, %v1023_v26  ;;  %v1190_v51 = vadd.f32 %v1189_v38, %v1023_v26  ;;  %v1128_v38 = vadd.f32 %v5019_v10, %v5029_v59  ;;  %v1113_v10 = vadd.f32 %v5002_v11, %v5029_v59 }
 0x5f7   :  { %v1146_v52 = vadd.f32 %v1145_v36, %v5029_v59  ;;  %v1137_v36 = vadd.f32 %v1136_v18, %v5029_v59  ;;  %v1110_v18 = vadd.f32 %v4989_v2, %v5029_v59 }
 0x5fd   :  { %v1210_v1 = vpop.f32.mrf.mxu2 }
 0x5fe   :  { %v1148_v20 = vpop.f32.mrf.mxu1  ;;  %v1211_v50 = vadd.f32 %v1210_v1, %v1023_v26  ;;  %v1193_v1 = vadd.f32 %v1192_v35, %v1023_v26  ;;  %v1178_v35 = vadd.f32 %v5005_v22, %v1023_v26  ;;  %v1119_v22 = vadd.f32 %v5011_v0, %v5029_v59 }
 0x5ff   :  { %v1149_v21 = vadd.f32 %v1148_v20, %v5029_v59  ;;  %v1199_v20 = vadd.f32 %v1198_v57, %v1023_v26  ;;  %v1044_v57 = vpop.f32.mrf.mxu0 }
 0x605   :  { %v1213_v42 = vpop.f32.mrf.mxu2 }
 0x606   :  { %v1151_v4 = vpop.f32.mrf.mxu1  ;;  %v1214_v40 = vadd.f32 %v1213_v42, %v1023_v26  ;;  %v1196_v42 = vadd.f32 %v1195_v54, %v1023_v26  ;;  %v1131_v54 = vadd.f32 %v5021_v53, %v5029_v59 }
 0x607   :  { %v1152_v43 = vadd.f32 %v1151_v4, %v5029_v59  ;;  %v1047_v45 = vpop.f32.mrf.mxu0  ;;  %v1045_v4 = vadd.f32 %v1044_v57, %v1021_v14  ;;  %v3910_v57 = vld [vmem:[%s6813_s1 + $0x8] sm:$0xff] }
 0x608   :  { %v1048_v0 = vadd.f32 %v1047_v45, %v1021_v14 }
 0x60d   :  { %v1216_v6 = vpop.f32.mrf.mxu2 }
 0x60e   :  { %v1154_v24 = vpop.f32.mrf.mxu1  ;;  %v1217_v56 = vadd.f32 %v1216_v6, %v1023_v26 }
 0x60f   :  { %v1155_v5 = vadd.f32 %v1154_v24, %v5029_v59  ;;  %v1050_v53 = vpop.f32.mrf.mxu0 }
 0x610   :  { %v1051_v24 = vadd.f32 %v1050_v53, %v1021_v14 }
 0x611   :  { %1222 = vmatpush.xpose.msrb.mxu3 %v1155_v5 }
 0x615   :  { %v1219_v31 = vpop.f32.mrf.mxu2  ;;  %1223 = vmatpush.xpose.msrb.mxu3 %v1152_v43 }
 0x616   :  { %v1220_v29 = vadd.f32 %v1219_v31, %v1023_v26 }
 0x617   :  { %v1053_v46 = vpop.f32.mrf.mxu0 }
 0x618   :  { %1431 = vmatpush.msrb.mxu0 %v1220_v29  ;;  %v1054_v5 = vadd.f32 %v1053_v46, %v1021_v14  ;;  %v3915_v46 = vld [vmem:[%s6813_s1 + $0x30] sm:$0xff] }
 0x619   :  { %1224 = vmatpush.xpose.msrb.mxu3 %v1149_v21 }
 0x61a   :  { %1432 = vmatpush.msrb.mxu0 %v1217_v56 }
 0x61c   :  { %1433 = vmatpush.msrb.mxu0 %v1214_v40 }
 0x61d   :  { %1225 = vmatpush.xpose.msrb.mxu3 %v1146_v52 }
 0x61e   :  { %1434 = vmatpush.msrb.mxu0 %v1211_v50 }
 0x61f   :  { %v1056_v6 = vpop.f32.mrf.mxu0 }
 0x620   :  { %1435 = vmatpush.msrb.mxu0 %v1208_v23  ;;  %v1057_v11 = vadd.f32 %v1056_v6, %v1021_v14  ;;  %v3916_v6 = vld [vmem:[%s6813_s1 + $0x38] sm:$0xff] }
 0x621   :  { %1226 = vmatpush.xpose.msrb.mxu3 %v1143_v58 }
 0x622   :  { %1436 = vmatpush.msrb.mxu0 %v1205_v13 }
 0x624   :  { %1437 = vmatpush.msrb.mxu0 %v1202_v63 }
 0x625   :  { %1227 = vmatpush.xpose.msrb.mxu3 %v1140_v27 }
 0x626   :  { %1438 = vmatpush.msrb.mxu0 %v1199_v20 }
 0x627   :  { %v1059_v47 = vpop.f32.mrf.mxu0 }
 0x628   :  { %1439 = vmatpush.msrb.mxu0 %v1196_v42  ;;  %v1060_v15 = vadd.f32 %v1059_v47, %v1021_v14 }
 0x629   :  { %1228 = vmatpush.xpose.msrb.mxu3 %v1137_v36 }
 0x62a   :  { %1440 = vmatpush.msrb.mxu0 %v1193_v1 }
 0x62c   :  { %1441 = vmatpush.msrb.mxu0 %v1190_v51 }
 0x62d   :  { %1229 = vmatpush.xpose.msrb.mxu3 %v1134_v39  ;;  %v3909_v39 = vld [vmem:[%s6813_s1] sm:$0xff] }
 0x62e   :  { %1442 = vmatpush.msrb.mxu0 %v1187_v7 }
 0x62f   :  { %v1062_v43 = vpop.f32.mrf.mxu0 }
 0x630   :  { %1443 = vmatpush.msrb.mxu0 %v1184_v41  ;;  %v1063_v2 = vadd.f32 %v1062_v43, %v1021_v14 }
 0x631   :  { %1230 = vmatpush.xpose.msrb.mxu3 %v1131_v54 }
 0x632   :  { %1444 = vmatpush.msrb.mxu0 %v1181_v17 }
 0x634   :  { %1445 = vmatpush.msrb.mxu0 %v1178_v35  ;;  %v3911_v35 = vld [vmem:[%s6813_s1 + $0x10] sm:$0xff] }
 0x635   :  { %1231 = vmatpush.xpose.msrb.mxu3 %v1128_v38 }
 0x636   :  { %1446 = vmatpush.msrb.mxu0 %v1175_v33 }
 0x637   :  { %v1065_v26 = vpop.f32.mrf.mxu0 }
 0x638   :  { %v1066_v59 = vadd.f32 %v1065_v26, %v1021_v14 }
 0x639   :  { %1232 = vmatpush.xpose.msrb.mxu3 %v1125_v44  ;;  %v3912_v44 = vld [vmem:[%s6813_s1 + $0x18] sm:$0xff] }
 0x63d   :  { %1233 = vmatpush.xpose.msrb.mxu3 %v1122_v55 }
 0x63f   :  { %v1068_v31 = vpop.f32.mrf.mxu0 }
 0x640   :  { %v1069_v21 = vadd.f32 %v1068_v31, %v1021_v14 }
 0x641   :  { %1234 = vmatpush.xpose.msrb.mxu3 %v1119_v22  ;;  %v3913_v22 = vld [vmem:[%s6813_s1 + $0x20] sm:$0xff] }
 0x645   :  { %1235 = vmatpush.xpose.msrb.mxu3 %v1116_v32 }
 0x647   :  { %v1071_v29 = vpop.f32.mrf.mxu0 }
 0x648   :  { %v1072_v40 = vadd.f32 %v1071_v29, %v1021_v14 }
 0x649   :  { %1236 = vmatpush.xpose.msrb.mxu3 %v1113_v10  ;;  %v3914_v10 = vld [vmem:[%s6813_s1 + $0x28] sm:$0xff] }
 0x64d   :  { %1237 = vmatpush.xpose.msrb.mxu3 %v1110_v18 }
 0x64f   :  { %v1074_v56 = vpop.f32.mrf.mxu0 }
 0x650   :  { %1238 = vmatmul.f32.vlgmr.msrb.gmra.mxu3 %v1045_v4  ;;  %v1075_v50 = vadd.f32 %v1074_v56, %v1021_v14  ;;  %v3917_v56 = vld [vmem:[%s6813_s1 + $0x40] sm:$0xff] }
 0x657   :  { %v1077_v52 = vpop.f32.mrf.mxu0 }
 0x658   :  { %1241 = vmatmul.f32.gmra.mxu3 %v1048_v0  ;;  %v1078_v58 = vadd.f32 %v1077_v52, %v1021_v14 }
 0x65f   :  { %v1080_v23 = vpop.f32.mrf.mxu0 }
 0x660   :  { %1244 = vmatmul.f32.gmra.mxu3 %v1051_v24  ;;  %v1081_v13 = vadd.f32 %v1080_v23, %v1021_v14 }
 0x667   :  { %v1083_v63 = vpop.f32.mrf.mxu0 }
 0x668   :  { %1247 = vmatmul.f32.gmra.mxu3 %v1054_v5  ;;  %v1084_v27 = vadd.f32 %v1083_v63, %v1021_v14  ;;  %v3918_v63 = vld [vmem:[%s6813_s1 + $0x48] sm:$0xff] }
 0x66f   :  { %v1086_v20 = vpop.f32.mrf.mxu0 }
 0x670   :  { %1250 = vmatmul.f32.gmra.mxu3 %v1057_v11  ;;  %v1087_v42 = vadd.f32 %v1086_v20, %v1021_v14 }
 0x677   :  { %v1089_v36 = vpop.f32.mrf.mxu0 }
 0x678   :  { %1253 = vmatmul.f32.gmra.mxu3 %v1060_v15  ;;  %v1090_v1 = vadd.f32 %v1089_v36, %v1021_v14 }
 0x680   :  { %1256 = vmatmul.f32.gmra.mxu3 %v1063_v2 }
 0x688   :  { %1259 = vmatmul.f32.gmra.mxu3 %v1066_v59 }
 0x690   :  { %1262 = vmatmul.f32.gmra.mxu3 %v1069_v21 }
 0x698   :  { %1265 = vmatmul.f32.gmra.mxu3 %v1072_v40 }
 0x6a0   :  { %1268 = vmatmul.f32.gmra.mxu3 %v1075_v50 }
 0x6a8   :  { %1271 = vmatmul.f32.gmra.mxu3 %v1078_v58 }
 0x6b0   :  { %1274 = vmatmul.f32.gmra.mxu3 %v1081_v13 }
 0x6b8   :  { %1277 = vmatmul.f32.gmra.mxu3 %v1084_v27 }
 0x6c0   :  { %1280 = vmatmul.f32.gmra.mxu3 %v1087_v42 }
 0x6c8   :  { %1283 = vmatmul.f32.gmra.mxu3 %v1090_v1 }
 0x6d3   :  { %v1239_v51 = vpop.f32.mrf.mxu3 }
 0x6d4   :  { %v1240_v7 = vadd.f32 %v3909_v39, %v1239_v51  ;;  %v3919_v39 = vld [vmem:[%s6813_s1 + $0x50] sm:$0xff] }
 0x6d6   :  { %1287 = vmax.xlane.f32.xlu2 %v1240_v7 }
 0x6db   :  { %v1242_v41 = vpop.f32.mrf.mxu3 }
 0x6dc   :  { %v1243_v54 = vadd.f32 %v3910_v57, %v1242_v41 }
 0x6de   :  { %1289 = vmax.xlane.f32.xlu0 %v1243_v54 }
 0x6e3   :  { %v1245_v17 = vpop.f32.mrf.mxu3 }
 0x6e4   :  { %v1246_v38 = vadd.f32 %v3911_v35, %v1245_v17 }
 0x6e6   :  { %1291 = vmax.xlane.f32.xlu1 %v1246_v38 }
 0x6eb   :  { %v1248_v33 = vpop.f32.mrf.mxu3 }
 0x6ec   :  { %v1249_v45 = vadd.f32 %v3912_v44, %v1248_v33 }
 0x6ee   :  { %1293 = vmax.xlane.f32.xlu2 %v1249_v45 }
 0x6f3   :  { %v1251_v55 = vpop.f32.mrf.mxu3 }
 0x6f4   :  { %v1252_v53 = vadd.f32 %v3913_v22, %v1251_v55 }
 0x6f6   :  { %1295 = vmax.xlane.f32.xlu0 %v1252_v53 }
 0x6fb   :  { %v1254_v32 = vpop.f32.mrf.mxu3 }
 0x6fc   :  { %v1255_v14 = vadd.f32 %v3914_v10, %v1254_v32 }
 0x6fe   :  { %1297 = vmax.xlane.f32.xlu1 %v1255_v14 }
 0x703   :  { %v1257_v18 = vpop.f32.mrf.mxu3 }
 0x704   :  { %v5082_v4 = vadd.f32 %v3915_v46, %v1257_v18 }
 0x706   :  { %1299 = vmax.xlane.f32.xlu2 %v5082_v4 }
 0x70b   :  { %v1260_v0 = vpop.f32.mrf.mxu3 }
 0x70c   :  { %v5088_v24 = vadd.f32 %v3916_v6, %v1260_v0 }
 0x70e   :  { %1301 = vmax.xlane.f32.xlu1 %v5088_v24 }
 0x713   :  { %v1263_v5 = vpop.f32.mrf.mxu3 }
 0x714   :  { %v5097_v40 = vadd.f32 %v3917_v56, %v1263_v5 }
 0x71b   :  { %v1266_v2 = vpop.f32.mrf.mxu3 }
 0x71c   :  { %v5106_v27 = vadd.f32 %v3918_v63, %v1266_v2  ;;  %v3924_v2 = vld [vmem:[%s6813_s1 + $0x78] sm:$0xff] }
 0x723   :  { %v1269_v23 = vpop.f32.mrf.mxu3 }
 0x72b   :  { %v1272_v36 = vpop.f32.mrf.mxu3 }
 0x733   :  { %v1275_v17 = vpop.f32.mrf.mxu3 }
 0x749   :  { %v1288_v47 = vpop.xlane.xlu2 %1287 }
 0x74a   :  { %v1319_v43 = vsub.f32 %v1240_v7, %v1288_v47  ;;  %v5115_v7 = vadd.f32 %v3919_v39, %v1269_v23 }
 0x74c   :  { %v1335_v11 = vmul.f32 1.442695, %v1319_v43 }
 0x74e   :  { %3715 = vpow2.f32 %v1335_v11  ;;  %v3923_v11 = vld [vmem:[%s6813_s1 + $0x70] sm:$0xff] }
 0x751   :  { %v1290_v26 = vpop.xlane.xlu0 %1289 }
 0x752   :  { %v1320_v15 = vsub.f32 %v1243_v54, %v1290_v26 }
 0x754   :  { %v5091_v31 = vpop.eup %3715  ;;  %v1337_v59 = vmul.f32 1.442695, %v1320_v15 }
 0x755   :  { %1367 = vadd.xlane.f32.xlu0 %v5091_v31 }
 0x756   :  { %3717 = vpow2.f32 %v1337_v59 }
 0x759   :  { %v1292_v29 = vpop.xlane.xlu1 %1291 }
 0x75a   :  { %v1321_v21 = vsub.f32 %v1246_v38, %v1292_v29  ;;  %v3920_v38 = vld [vmem:[%s6813_s1 + $0x58] sm:$0xff] }
 0x75b   :  { %v5124_v33 = vadd.f32 %v3920_v38, %v1272_v36 }
 0x75c   :  { %v5099_v52 = vpop.eup %3717  ;;  %v1339_v50 = vmul.f32 1.442695, %v1321_v21 }
 0x75d   :  { %1369 = vadd.xlane.f32.xlu2 %v5099_v52  ;;  %1303 = vmax.xlane.f32.xlu0 %v5097_v40 }
 0x75e   :  { %3719 = vpow2.f32 %v1339_v50 }
 0x761   :  { %v1294_v58 = vpop.xlane.xlu2 %1293 }
 0x762   :  { %v1322_v13 = vsub.f32 %v1249_v45, %v1294_v58 }
 0x764   :  { %v5108_v20 = vpop.eup %3719  ;;  %v1341_v42 = vmul.f32 1.442695, %v1322_v13 }
 0x765   :  { %1371 = vadd.xlane.f32.xlu1 %v5108_v20  ;;  %1305 = vmax.xlane.f32.xlu2 %v5106_v27 }
 0x766   :  { %3721 = vpow2.f32 %v1341_v42 }
 0x769   :  { %v1296_v1 = vpop.xlane.xlu0 %1295 }
 0x76a   :  { %v1323_v51 = vsub.f32 %v1252_v53, %v1296_v1  ;;  %v3921_v53 = vld [vmem:[%s6813_s1 + $0x60] sm:$0xff] }
 0x76b   :  { %v5134_v32 = vadd.f32 %v3921_v53, %v1275_v17 }
 0x76c   :  { %v5117_v41 = vpop.eup %3721  ;;  %v1343_v57 = vmul.f32 1.442695, %v1323_v51 }
 0x76d   :  { %1307 = vmax.xlane.f32.xlu1 %v5115_v7  ;;  %1373 = vadd.xlane.f32.xlu0 %v5117_v41 }
 0x76e   :  { %3723 = vpow2.f32 %v1343_v57 }
 0x771   :  { %v1298_v54 = vpop.xlane.xlu1 %1297 }
 0x772   :  { %v1324_v35 = vsub.f32 %v1255_v14, %v1298_v54  ;;  %v1278_v14 = vpop.f32.mrf.mxu3 }
 0x774   :  { %v5126_v44 = vpop.eup %3723  ;;  %v1345_v45 = vmul.f32 1.442695, %v1324_v35 }
 0x775   :  { %1375 = vadd.xlane.f32.xlu2 %v5126_v44  ;;  %1309 = vmax.xlane.f32.xlu0 %v5124_v33 }
 0x776   :  { %3725 = vpow2.f32 %v1345_v45 }
 0x779   :  { %v1300_v55 = vpop.xlane.xlu2 %1299 }
 0x77a   :  { %v1325_v22 = vsub.f32 %v5082_v4, %v1300_v55  ;;  %v3922_v4 = vld [vmem:[%s6813_s1 + $0x68] sm:$0xff]  ;;  %v1281_v43 = vpop.f32.mrf.mxu3 }
 0x77b   :  { %v5144_v6 = vadd.f32 %v3922_v4, %v1278_v14 }
 0x77c   :  { %v5136_v10 = vpop.eup %3725  ;;  %v1347_v18 = vmul.f32 1.442695, %v1325_v22 }
 0x77d   :  { %1377 = vadd.xlane.f32.xlu1 %v5136_v10  ;;  %1311 = vmax.xlane.f32.xlu2 %v5134_v32 }
 0x77e   :  { %3727 = vpow2.f32 %v1347_v18 }
 0x781   :  { %v1302_v46 = vpop.xlane.xlu1 %1301 }
 0x782   :  { %v1326_v0 = vsub.f32 %v5088_v24, %v1302_v46  ;;  %v5153_v24 = vadd.f32 %v3923_v11, %v1281_v43  ;;  %v1284_v15 = vpop.f32.mrf.mxu3  ;;  %v3457_v43 = vld [vmem:[%s6814_s7 + $0xf0] sm:$0xff] }
 0x783   :  { %v5162_v59 = vadd.f32 %v3924_v2, %v1284_v15 }
 0x784   :  { %v5146_v47 = vpop.eup %3727  ;;  %v1349_v5 = vmul.f32 1.442695, %v1326_v0 }
 0x785   :  { %1313 = vmax.xlane.f32.xlu1 %v5144_v6  ;;  %1379 = vadd.xlane.f32.xlu0 %v5146_v47 }
 0x786   :  { %3729 = vpow2.f32 %v1349_v5  ;;  %v3458_v5 = vld [vmem:[%s6814_s7 + $0xf8] sm:$0xff] }
 0x787   :  { %1547 = vmatpush.msrb.mxu1 %v3458_v5 }
 0x789   :  { %1548 = vmatpush.msrb.mxu1 %v3457_v43 }
 0x78c   :  { %v5155_v26 = vpop.eup %3729 }
 0x78d   :  { %1381 = vadd.xlane.f32.xlu2 %v5155_v26  ;;  %1315 = vmax.xlane.f32.xlu0 %v5153_v24 }
 0x795   :  { %1317 = vmax.xlane.f32.xlu2 %v5162_v59 }
 0x7c8   :  { %v1368_v29 = vpop.xlane.xlu0 %1367 }
 0x7c9   :  { %3731 = vrcp.f32 %v1368_v29  ;;  %v3455_v29 = vld [vmem:[%s6814_s7 + $0xe0] sm:$0xff] }
 0x7cf   :  { %v3732_v21 = vpop.eup %3731 }
 0x7d0   :  { %v1415_v56 = vmul.f32 %v3732_v21, %v5091_v31  ;;  %v1304_v50 = vpop.xlane.xlu0 %1303  ;;  %v1370_v23 = vpop.xlane.xlu2 %1369 }
 0x7d1   :  { %v1327_v58 = vsub.f32 %v5097_v40, %v1304_v50  ;;  %3733 = vrcp.f32 %v1370_v23 }
 0x7d2   :  { %1447 = vmatmul.f32.vlgmr.msrb.gmra.mxu0 %v1415_v56  ;;  %v3454_v56 = vld [vmem:[%s6814_s7 + $0xd8] sm:$0xff] }
 0x7d3   :  { %v1351_v13 = vmul.f32 1.442695, %v1327_v58 }
 0x7d5   :  { %3735 = vpow2.f32 %v1351_v13 }
 0x7d7   :  { %v3734_v63 = vpop.eup %3733 }
 0x7d8   :  { %v1372_v42 = vpop.xlane.xlu1 %1371  ;;  %v1306_v36 = vpop.xlane.xlu2 %1305  ;;  %v1416_v1 = vmul.f32 %v3734_v63, %v5099_v52 }
 0x7d9   :  { %3737 = vrcp.f32 %v1372_v42  ;;  %v1328_v51 = vsub.f32 %v5106_v27, %v1306_v36  ;;  %v3451_v36 = vld [vmem:[%s6814_s7 + $0xc0] sm:$0xff] }
 0x7da   :  { %1450 = vmatmul.f32.gmra.mxu0 %v1416_v1 }
 0x7db   :  { %v5169_v39 = vpop.eup %3735  ;;  %v1353_v31 = vmul.f32 1.442695, %v1328_v51  ;;  %v3450_v51 = vld [vmem:[%s6814_s7 + $0xb8] sm:$0xff] }
 0x7dc   :  { %1383 = vadd.xlane.f32.xlu1 %v5169_v39 }
 0x7dd   :  { %3739 = vpow2.f32 %v1353_v31 }
 0x7df   :  { %v3738_v40 = vpop.eup %3737 }
 0x7e0   :  { %v1308_v57 = vpop.xlane.xlu1 %1307  ;;  %v1374_v54 = vpop.xlane.xlu0 %1373  ;;  %v1417_v17 = vmul.f32 %v3738_v40, %v5108_v20 }
 0x7e1   :  { %v1329_v35 = vsub.f32 %v5115_v7, %v1308_v57  ;;  %3741 = vrcp.f32 %v1374_v54 }
 0x7e2   :  { %1453 = vmatmul.f32.gmra.mxu0 %v1417_v17 }
 0x7e3   :  { %v5174_v52 = vpop.eup %3739  ;;  %v1355_v38 = vmul.f32 1.442695, %v1329_v35  ;;  %v3447_v35 = vld [vmem:[%s6814_s7 + $0xa0] sm:$0xff] }
 0x7e4   :  { %1385 = vadd.xlane.f32.xlu0 %v5174_v52 }
 0x7e5   :  { %3743 = vpow2.f32 %v1355_v38 }
 0x7e7   :  { %v3742_v27 = vpop.eup %3741 }
 0x7e8   :  { %v1310_v45 = vpop.xlane.xlu0 %1309  ;;  %v1376_v55 = vpop.xlane.xlu2 %1375  ;;  %v1418_v22 = vmul.f32 %v3742_v27, %v5117_v41  ;;  %v3446_v27 = vld [vmem:[%s6814_s7 + $0x98] sm:$0xff] }
 0x7e9   :  { %v1330_v53 = vsub.f32 %v5124_v33, %v1310_v45  ;;  %3745 = vrcp.f32 %v1376_v55 }
 0x7ea   :  { %1456 = vmatmul.f32.gmra.mxu0 %v1418_v22  ;;  %v3444_v22 = vld [vmem:[%s6814_s7 + $0x88] sm:$0xff] }
 0x7eb   :  { %v5179_v20 = vpop.eup %3743  ;;  %v1357_v7 = vmul.f32 1.442695, %v1330_v53  ;;  %v3443_v53 = vld [vmem:[%s6814_s7 + $0x80] sm:$0xff] }
 0x7ec   :  { %1387 = vadd.xlane.f32.xlu1 %v5179_v20 }
 0x7ed   :  { %3747 = vpow2.f32 %v1357_v7 }
 0x7ef   :  { %v3746_v14 = vpop.eup %3745 }
 0x7f0   :  { %v1378_v18 = vpop.xlane.xlu1 %1377  ;;  %v1312_v46 = vpop.xlane.xlu2 %1311  ;;  %v1419_v0 = vmul.f32 %v3746_v14, %v5126_v44  ;;  %v3456_v44 = vld [vmem:[%s6814_s7 + $0xe8] sm:$0xff] }
 0x7f1   :  { %3749 = vrcp.f32 %v1378_v18  ;;  %v1331_v4 = vsub.f32 %v5134_v32, %v1312_v46  ;;  %1549 = vmatpush.msrb.mxu1 %v3456_v44 }
 0x7f2   :  { %1459 = vmatmul.f32.gmra.mxu0 %v1419_v0 }
 0x7f3   :  { %v5184_v41 = vpop.eup %3747  ;;  %v1359_v33 = vmul.f32 1.442695, %v1331_v4  ;;  %1550 = vmatpush.msrb.mxu1 %v3455_v29 }
 0x7f4   :  { %1389 = vadd.xlane.f32.xlu2 %v5184_v41 }
 0x7f5   :  { %3751 = vpow2.f32 %v1359_v33  ;;  %1551 = vmatpush.msrb.mxu1 %v3454_v56 }
 0x7f7   :  { %v3750_v32 = vpop.eup %3749 }
 0x7f8   :  { %v1314_v11 = vpop.xlane.xlu1 %1313  ;;  %v1380_v15 = vpop.xlane.xlu0 %1379  ;;  %v1420_v2 = vmul.f32 %v3750_v32, %v5136_v10  ;;  %v3453_v10 = vld [vmem:[%s6814_s7 + $0xd0] sm:$0xff] }
 0x7f9   :  { %v1332_v21 = vsub.f32 %v5144_v6, %v1314_v11  ;;  %3753 = vrcp.f32 %v1380_v15  ;;  %v3452_v6 = vld [vmem:[%s6814_s7 + $0xc8] sm:$0xff]  ;;  %1552 = vmatpush.msrb.mxu1 %v3453_v10 }
 0x7fa   :  { %1462 = vmatmul.f32.gmra.mxu0 %v1420_v2 }
 0x7fb   :  { %v5204_v50 = vpop.eup %3751  ;;  %v1361_v23 = vmul.f32 1.442695, %v1332_v21  ;;  %1553 = vmatpush.msrb.mxu1 %v3452_v6 }
 0x7fc   :  { %1391 = vadd.xlane.f32.xlu0 %v5204_v50 }
 0x7fd   :  { %3755 = vpow2.f32 %v1361_v23  ;;  %1554 = vmatpush.msrb.mxu1 %v3451_v36 }
 0x7ff   :  { %v3754_v58 = vpop.eup %3753  ;;  %1555 = vmatpush.msrb.mxu1 %v3450_v51 }
 0x800   :  { %v1316_v13 = vpop.xlane.xlu0 %1315  ;;  %v1382_v63 = vpop.xlane.xlu2 %1381  ;;  %v1421_v42 = vmul.f32 %v3754_v58, %v5146_v47  ;;  %v3449_v47 = vld [vmem:[%s6814_s7 + $0xb0] sm:$0xff] }
 0x801   :  { %v1333_v1 = vsub.f32 %v5153_v24, %v1316_v13  ;;  %3757 = vrcp.f32 %v1382_v63  ;;  %v3448_v24 = vld [vmem:[%s6814_s7 + $0xa8] sm:$0xff]  ;;  %1556 = vmatpush.msrb.mxu1 %v3449_v47  ;;  %v3473_v63 = vld [vmem:[%s6816_s9 + $0xf0] sm:$0xff] }
 0x802   :  { %1465 = vmatmul.f32.gmra.mxu0 %v1421_v42  ;;  %v3472_v42 = vld [vmem:[%s6816_s9 + $0xe8] sm:$0xff] }
 0x803   :  { %v5221_v31 = vpop.eup %3755  ;;  %v1363_v40 = vmul.f32 1.442695, %v1333_v1  ;;  %1557 = vmatpush.msrb.mxu1 %v3448_v24  ;;  %v3469_v24 = vld [vmem:[%s6816_s9 + $0xd0] sm:$0xff] }
 0x804   :  { %1393 = vadd.xlane.f32.xlu1 %v5221_v31 }
 0x805   :  { %3759 = vpow2.f32 %v1363_v40  ;;  %1558 = vmatpush.msrb.mxu1 %v3447_v35 }
 0x807   :  { %v3758_v57 = vpop.eup %3757  ;;  %1559 = vmatpush.msrb.mxu1 %v3446_v27 }
 0x808   :  { %v1318_v54 = vpop.xlane.xlu2 %1317  ;;  %v1422_v17 = vmul.f32 %v3758_v57, %v5155_v26  ;;  %v3445_v26 = vld [vmem:[%s6814_s7 + $0x90] sm:$0xff] }
 0x809   :  { %v1334_v38 = vsub.f32 %v5162_v59, %v1318_v54  ;;  %1560 = vmatpush.msrb.mxu1 %v3445_v26  ;;  %v3467_v54 = vld [vmem:[%s6816_s9 + $0xc0] sm:$0xff]  ;;  %v3465_v26 = vld [vmem:[%s6816_s9 + $0xb0] sm:$0xff] }
 0x80a   :  { %1468 = vmatmul.f32.gmra.mxu0 %v1422_v17 }
 0x80b   :  { %v5238_v45 = vpop.eup %3759  ;;  %v1365_v55 = vmul.f32 1.442695, %v1334_v38  ;;  %1561 = vmatpush.msrb.mxu1 %v3444_v22 }
 0x80c   :  { %1395 = vadd.xlane.f32.xlu2 %v5238_v45 }
 0x80d   :  { %3761 = vpow2.f32 %v1365_v55  ;;  %1562 = vmatpush.msrb.mxu1 %v3443_v53  ;;  %v3463_v53 = vld [vmem:[%s6816_s9 + $0xa0] sm:$0xff] }
 0x813   :  { %v5244_v59 = vpop.eup %3761 }
 0x814   :  { %1397 = vadd.xlane.f32.xlu0 %v5244_v59 }
 0x84f   :  { %v1384_v7 = vpop.xlane.xlu1 %1383  ;;  %v1448_v14 = vpop.f32.mrf.mxu0 }
 0x850   :  { %3763 = vrcp.f32 %v1384_v7  ;;  %v1496_v18 = vmax.f32 %v1448_v14, 0.0 }
 0x852   :  { %v5254_v46 = vadd.f32 %v1496_v18, %v4882_v3 }
 0x854   :  { %1563 = vmatmul.f32.vlgmr.msrb.gmra.mxu1 %v5254_v46 }
 0x856   :  { %v3764_v0 = vpop.eup %3763 }
 0x857   :  { %v1386_v4 = vpop.xlane.xlu0 %1385  ;;  %v1451_v33 = vpop.f32.mrf.mxu0  ;;  %v1423_v5 = vmul.f32 %v3764_v0, %v5169_v39 }
 0x858   :  { %3765 = vrcp.f32 %v1386_v4  ;;  %v1497_v43 = vmax.f32 %v1451_v33, 0.0 }
 0x859   :  { %1471 = vmatmul.f32.gmra.mxu0 %v1423_v5 }
 0x85a   :  { %v5259_v44 = vadd.f32 %v1497_v43, %v4890_v19 }
 0x85c   :  { %1566 = vmatmul.f32.gmra.mxu1 %v5259_v44 }
 0x85e   :  { %v3766_v32 = vpop.eup %3765 }
 0x85f   :  { %v1388_v11 = vpop.xlane.xlu1 %1387  ;;  %v1454_v15 = vpop.f32.mrf.mxu0  ;;  %v1424_v3 = vmul.f32 %v3766_v32, %v5174_v52  ;;  %v3460_v32 = vld [vmem:[%s6816_s9 + $0x88] sm:$0xff] }
 0x860   :  { %3767 = vrcp.f32 %v1388_v11  ;;  %v1498_v2 = vmax.f32 %v1454_v15, 0.0 }
 0x861   :  { %1474 = vmatmul.f32.gmra.mxu0 %v1424_v3 }
 0x862   :  { %v5264_v29 = vadd.f32 %v1498_v2, %v4898_v60 }
 0x864   :  { %1569 = vmatmul.f32.gmra.mxu1 %v5264_v29 }
 0x866   :  { %v3768_v39 = vpop.eup %3767 }
 0x867   :  { %v1457_v21 = vpop.f32.mrf.mxu0  ;;  %v1390_v56 = vpop.xlane.xlu2 %1389  ;;  %v1425_v19 = vmul.f32 %v3768_v39, %v5179_v20  ;;  %v3474_v20 = vld [vmem:[%s6816_s9 + $0xf8] sm:$0xff] }
 0x868   :  { %v1499_v23 = vmax.f32 %v1457_v21, 0.0  ;;  %3769 = vrcp.f32 %v1390_v56  ;;  %1647 = vmatpush.msrb.mxu2 %v3474_v20 }
 0x869   :  { %1477 = vmatmul.f32.gmra.mxu0 %v1425_v19 }
 0x86a   :  { %v5269_v10 = vadd.f32 %v1499_v23, %v4906_v12  ;;  %1648 = vmatpush.msrb.mxu2 %v3473_v63 }
 0x86c   :  { %1572 = vmatmul.f32.gmra.mxu1 %v5269_v10  ;;  %1649 = vmatpush.msrb.mxu2 %v3472_v42 }
 0x86e   :  { %v3770_v52 = vpop.eup %3769 }
 0x86f   :  { %v1392_v6 = vpop.xlane.xlu0 %1391  ;;  %v1460_v58 = vpop.f32.mrf.mxu0  ;;  %v1426_v60 = vmul.f32 %v3770_v52, %v5184_v41  ;;  %v3471_v41 = vld [vmem:[%s6816_s9 + $0xe0] sm:$0xff] }
 0x870   :  { %3771 = vrcp.f32 %v1392_v6  ;;  %v1500_v13 = vmax.f32 %v1460_v58, 0.0  ;;  %1650 = vmatpush.msrb.mxu2 %v3471_v41 }
 0x871   :  { %1480 = vmatmul.f32.gmra.mxu0 %v1426_v60 }
 0x872   :  { %v5280_v12 = vadd.f32 %v1500_v13, %v4914_v48  ;;  %v3470_v48 = vld [vmem:[%s6816_s9 + $0xd8] sm:$0xff] }
 0x873   :  { %1651 = vmatpush.msrb.mxu2 %v3470_v48 }
 0x874   :  { %1575 = vmatmul.f32.gmra.mxu1 %v5280_v12 }
 0x875   :  { %1652 = vmatpush.msrb.mxu2 %v3469_v24  ;;  %v3521_v24 = vld [vmem:[%s6811_s5 + $0x470] sm:$0xff] }
 0x876   :  { %v3772_v36 = vpop.eup %3771  ;;  %1867 = vmatpush.msra.mxu0 %v3521_v24  ;;  %v3492_v24 = vld [vmem:[%s6811_s5 + $0x388] sm:$0xff] }
 0x877   :  { %v1394_v1 = vpop.xlane.xlu1 %1393  ;;  %v1463_v51 = vpop.f32.mrf.mxu0  ;;  %v1427_v40 = vmul.f32 %v3772_v36, %v5204_v50  ;;  %v3468_v50 = vld [vmem:[%s6816_s9 + $0xc8] sm:$0xff] }
 0x878   :  { %3773 = vrcp.f32 %v1394_v1  ;;  %v1501_v47 = vmax.f32 %v1463_v51, 0.0  ;;  %1653 = vmatpush.msrb.mxu2 %v3468_v50  ;;  %v3522_v50 = vld [vmem:[%s6811_s5 + $0x478] sm:$0xff] }
 0x879   :  { %1483 = vmatmul.f32.gmra.mxu0 %v1427_v40  ;;  %1932 = vmatpush.msra.mxu1 %v3522_v50  ;;  %v3488_v50 = vld [vmem:[%s6811_s5 + $0x368] sm:$0xff] }
 0x87a   :  { %v5297_v57 = vadd.f32 %v1501_v47, %v4922_v34  ;;  %v3466_v34 = vld [vmem:[%s6816_s9 + $0xb8] sm:$0xff]  ;;  %1654 = vmatpush.msrb.mxu2 %v3467_v54 }
 0x87c   :  { %1578 = vmatmul.f32.gmra.mxu1 %v5297_v57  ;;  %1655 = vmatpush.msrb.mxu2 %v3466_v34  ;;  %v3515_v34 = vld [vmem:[%s6811_s5 + $0x440] sm:$0xff] }
 0x87e   :  { %v3774_v17 = vpop.eup %3773  ;;  %1656 = vmatpush.msrb.mxu2 %v3465_v26 }
 0x87f   :  { %v1466_v35 = vpop.f32.mrf.mxu0  ;;  %v1396_v38 = vpop.xlane.xlu2 %1395  ;;  %v1428_v27 = vmul.f32 %v3774_v17, %v5221_v31  ;;  %v3464_v31 = vld [vmem:[%s6816_s9 + $0xa8] sm:$0xff]  ;;  %v3518_v17 = vld [vmem:[%s6811_s5 + $0x458] sm:$0xff] }
 0x880   :  { %v1502_v55 = vmax.f32 %v1466_v35, 0.0  ;;  %3775 = vrcp.f32 %v1396_v38  ;;  %1657 = vmatpush.msrb.mxu2 %v3464_v31  ;;  %v3519_v35 = vld [vmem:[%s6811_s5 + $0x460] sm:$0xff]  ;;  %v3514_v38 = vld [vmem:[%s6811_s5 + $0x438] sm:$0xff]  ;;  %1868 = vmatpush.msra.mxu0 %v3518_v17 }
 0x881   :  { %1486 = vmatmul.f32.gmra.mxu0 %v1428_v27  ;;  %1933 = vmatpush.msra.mxu1 %v3519_v35  ;;  %v3511_v31 = vld [vmem:[%s6811_s5 + $0x420] sm:$0xff] }
 0x882   :  { %v5314_v22 = vadd.f32 %v1502_v55, %v4930_v28  ;;  %v3462_v28 = vld [vmem:[%s6816_s9 + $0x98] sm:$0xff]  ;;  %1658 = vmatpush.msrb.mxu2 %v3463_v53  ;;  %v3516_v55 = vld [vmem:[%s6811_s5 + $0x448] sm:$0xff]  ;;  %1869 = vmatpush.msra.mxu0 %v3515_v34  ;;  %v3485_v34 = vld [vmem:[%s6811_s5 + $0x350] sm:$0xff] }
 0x883   :  { %v3512_v53 = vld [vmem:[%s6811_s5 + $0x428] sm:$0xff]  ;;  %1934 = vmatpush.msra.mxu1 %v3516_v55  ;;  %v3486_v55 = vld [vmem:[%s6811_s5 + $0x358] sm:$0xff] }
 0x884   :  { %1581 = vmatmul.f32.gmra.mxu1 %v5314_v22  ;;  %1659 = vmatpush.msrb.mxu2 %v3462_v28 }
 0x885   :  { %1870 = vmatpush.msra.mxu0 %v3512_v53  ;;  %v3478_v53 = vld [vmem:[%s6811_s5 + $0x318] sm:$0xff] }
 0x886   :  { %v3776_v7 = vpop.eup %3775 }
 0x887   :  { %v1469_v14 = vpop.f32.mrf.mxu0  ;;  %v1398_v18 = vpop.xlane.xlu0 %1397  ;;  %v1429_v0 = vmul.f32 %v3776_v7, %v5238_v45  ;;  %v3461_v45 = vld [vmem:[%s6816_s9 + $0x90] sm:$0xff] }
 0x888   :  { %v1503_v4 = vmax.f32 %v1469_v14, 0.0  ;;  %3777 = vrcp.f32 %v1398_v18  ;;  %1660 = vmatpush.msrb.mxu2 %v3461_v45  ;;  %v3513_v18 = vld [vmem:[%s6811_s5 + $0x430] sm:$0xff]  ;;  %v3506_v45 = vld [vmem:[%s6811_s5 + $0x3f8] sm:$0xff] }
 0x889   :  { %1489 = vmatmul.f32.gmra.mxu0 %v1429_v0  ;;  %v3508_v0 = vld [vmem:[%s6811_s5 + $0x408] sm:$0xff]  ;;  %1935 = vmatpush.msra.mxu1 %v3513_v18 }
 0x88a   :  { %v5328_v33 = vadd.f32 %v1503_v4, %v4938_v49  ;;  %1661 = vmatpush.msrb.mxu2 %v3460_v32  ;;  %v3459_v49 = vld [vmem:[%s6816_s9 + $0x80] sm:$0xff]  ;;  %v3509_v4 = vld [vmem:[%s6811_s5 + $0x410] sm:$0xff]  ;;  %v3480_v18 = vld [vmem:[%s6811_s5 + $0x328] sm:$0xff] }
 0x88b   :  { %1871 = vmatpush.msra.mxu0 %v3509_v4  ;;  %v3507_v32 = vld [vmem:[%s6811_s5 + $0x400] sm:$0xff]  ;;  %v3477_v4 = vld [vmem:[%s6811_s5 + $0x310] sm:$0xff] }
 0x88c   :  { %1584 = vmatmul.f32.gmra.mxu1 %v5328_v33  ;;  %1662 = vmatpush.msrb.mxu2 %v3459_v49 }
 0x88d   :  { %1872 = vmatpush.msra.mxu0 %v3506_v45 }
 0x88e   :  { %v3778_v5 = vpop.eup %3777 }
 0x88f   :  { %v1430_v43 = vmul.f32 %v3778_v5, %v5244_v59  ;;  %v5344_v59 = vld [vmem:[%s6815_s8 + $0x1] ss:$0 sm:$0xff] }
 0x891   :  { %1492 = vmatmul.f32.gmra.mxu0 %v1430_v43  ;;  %v3505_v43 = vld [vmem:[%s6811_s5 + $0x3f0] sm:$0xff] }
 0x8d1   :  { %v1564_v11 = vpop.f32.mrf.mxu1 }
 0x8d2   :  { %v1565_v15 = vadd.f32 %v5344_v59, %v1564_v11  ;;  %v3502_v11 = vld [vmem:[%s6811_s5 + $0x3d8] sm:$0xff] }
 0x8d4   :  { %v1612_v3 = vmax.f32 %v1565_v15, 0.0  ;;  %v3503_v15 = vld [vmem:[%s6811_s5 + $0x3e0] sm:$0xff] }
 0x8d5   :  { %1873 = vmatpush.msra.mxu0 %v3503_v15 }
 0x8d6   :  { %v1472_v2 = vpop.f32.mrf.mxu0  ;;  %1663 = vmatmul.f32.vlgmr.msrb.gmra.mxu2 %v1612_v3 }
 0x8d7   :  { %v1504_v39 = vmax.f32 %v1472_v2, 0.0  ;;  %v3504_v2 = vld [vmem:[%s6811_s5 + $0x3e8] sm:$0xff] }
 0x8d9   :  { %v5348_v21 = vadd.f32 %v1504_v39, %v4945_v37  ;;  %v1567_v56 = vpop.f32.mrf.mxu1  ;;  %v3499_v39 = vld [vmem:[%s6811_s5 + $0x3c0] sm:$0xff] }
 0x8da   :  { %v1568_v19 = vadd.f32 %v5344_v59, %v1567_v56 }
 0x8db   :  { %1587 = vmatmul.f32.gmra.mxu1 %v5348_v21 }
 0x8dc   :  { %v1613_v23 = vmax.f32 %v1568_v19, 0.0 }
 0x8de   :  { %v1475_v52 = vpop.f32.mrf.mxu0  ;;  %1666 = vmatmul.f32.gmra.mxu2 %v1613_v23  ;;  %v3500_v23 = vld [vmem:[%s6811_s5 + $0x3c8] sm:$0xff] }
 0x8df   :  { %v1505_v6 = vmax.f32 %v1475_v52, 0.0  ;;  %v3501_v52 = vld [vmem:[%s6811_s5 + $0x3d0] sm:$0xff]  ;;  %1874 = vmatpush.msra.mxu0 %v3500_v23 }
 0x8e1   :  { %v5353_v58 = vadd.f32 %v1505_v6, %v4952_v16  ;;  %v1570_v60 = vpop.f32.mrf.mxu1 }
 0x8e2   :  { %v1571_v13 = vadd.f32 %v5344_v59, %v1570_v60  ;;  %v3496_v60 = vld [vmem:[%s6811_s5 + $0x3a8] sm:$0xff] }
 0x8e3   :  { %1590 = vmatmul.f32.gmra.mxu1 %v5353_v58 }
 0x8e4   :  { %v1614_v20 = vmax.f32 %v1571_v13, 0.0 }
 0x8e6   :  { %v1478_v37 = vpop.f32.mrf.mxu0  ;;  %1669 = vmatmul.f32.gmra.mxu2 %v1614_v20  ;;  %v3498_v20 = vld [vmem:[%s6811_s5 + $0x3b8] sm:$0xff] }
 0x8e7   :  { %v1506_v63 = vmax.f32 %v1478_v37, 0.0  ;;  %v3493_v37 = vld [vmem:[%s6811_s5 + $0x390] sm:$0xff] }
 0x8e9   :  { %v5358_v42 = vadd.f32 %v1506_v63, %v4959_v30  ;;  %v1573_v41 = vpop.f32.mrf.mxu1  ;;  %v3520_v30 = vld [vmem:[%s6811_s5 + $0x468] sm:$0xff]  ;;  %v3494_v63 = vld [vmem:[%s6811_s5 + $0x398] sm:$0xff] }
 0x8ea   :  { %v1574_v36 = vadd.f32 %v5344_v59, %v1573_v41  ;;  %1802 = vmatpush.msra.mxu3 %v3520_v30 }
 0x8eb   :  { %1593 = vmatmul.f32.gmra.mxu1 %v5358_v42 }
 0x8ec   :  { %v1615_v1 = vmax.f32 %v1574_v36, 0.0  ;;  %v3495_v36 = vld [vmem:[%s6811_s5 + $0x3a0] sm:$0xff] }
 0x8ee   :  { %v1481_v16 = vpop.f32.mrf.mxu0  ;;  %1672 = vmatmul.f32.gmra.mxu2 %v1615_v1  ;;  %v3490_v1 = vld [vmem:[%s6811_s5 + $0x378] sm:$0xff] }
 0x8ef   :  { %v1507_v51 = vmax.f32 %v1481_v16, 0.0 }
 0x8f1   :  { %v5363_v40 = vadd.f32 %v1507_v51, %v4966_v8  ;;  %v1576_v48 = vpop.f32.mrf.mxu1  ;;  %v3517_v8 = vld [vmem:[%s6811_s5 + $0x450] sm:$0xff]  ;;  %v3491_v51 = vld [vmem:[%s6811_s5 + $0x380] sm:$0xff] }
 0x8f2   :  { %v1577_v47 = vadd.f32 %v5344_v59, %v1576_v48  ;;  %1803 = vmatpush.msra.mxu3 %v3517_v8  ;;  %v3487_v48 = vld [vmem:[%s6811_s5 + $0x360] sm:$0xff] }
 0x8f3   :  { %1596 = vmatmul.f32.gmra.mxu1 %v5363_v40 }
 0x8f4   :  { %v1616_v54 = vmax.f32 %v1577_v47, 0.0  ;;  %1804 = vmatpush.msra.mxu3 %v3514_v38 }
 0x8f6   :  { %v1484_v27 = vpop.f32.mrf.mxu0  ;;  %1675 = vmatmul.f32.gmra.mxu2 %v1616_v54  ;;  %1805 = vmatpush.msra.mxu3 %v3511_v31  ;;  %v3483_v31 = vld [vmem:[%s6811_s5 + $0x340] sm:$0xff] }
 0x8f7   :  { %v1508_v26 = vmax.f32 %v1484_v27, 0.0  ;;  %v3484_v27 = vld [vmem:[%s6811_s5 + $0x348] sm:$0xff] }
 0x8f8   :  { %1806 = vmatpush.msra.mxu3 %v3508_v0  ;;  %v3475_v0 = vld [vmem:[%s6811_s5 + $0x300] sm:$0xff] }
 0x8f9   :  { %v5401_v7 = vadd.f32 %v1508_v26, %v4973_v62  ;;  %v1579_v14 = vpop.f32.mrf.mxu1  ;;  %v3510_v62 = vld [vmem:[%s6811_s5 + $0x418] sm:$0xff] }
 0x8fa   :  { %v1580_v28 = vadd.f32 %v5344_v59, %v1579_v14  ;;  %1936 = vmatpush.msra.mxu1 %v3510_v62  ;;  %1807 = vmatpush.msra.mxu3 %v3505_v43  ;;  %v3482_v26 = vld [vmem:[%s6811_s5 + $0x338] sm:$0xff]  ;;  %v3479_v14 = vld [vmem:[%s6811_s5 + $0x320] sm:$0xff] }
 0x8fb   :  { %1599 = vmatmul.f32.gmra.mxu1 %v5401_v7  ;;  %v5533_v62 = vld [vmem:[%s6817_s10 + $0x1] ss:$0 sm:$0xff] }
 0x8fc   :  { %v1617_v5 = vmax.f32 %v1580_v28, 0.0  ;;  %1937 = vmatpush.msra.mxu1 %v3507_v32  ;;  %1808 = vmatpush.msra.mxu3 %v3502_v11  ;;  %v3476_v28 = vld [vmem:[%s6811_s5 + $0x308] sm:$0xff] }
 0x8fe   :  { %v1487_v49 = vpop.f32.mrf.mxu0  ;;  %1678 = vmatmul.f32.gmra.mxu2 %v1617_v5  ;;  %1938 = vmatpush.msra.mxu1 %v3504_v2 }
 0x8ff   :  { %v1509_v3 = vmax.f32 %v1487_v49, 0.0  ;;  %1809 = vmatpush.msra.mxu3 %v3499_v39 }
 0x900   :  { %1939 = vmatpush.msra.mxu1 %v3501_v52 }
 0x901   :  { %v5439_v56 = vadd.f32 %v1509_v3, %v4980_v61  ;;  %v1582_v19 = vpop.f32.mrf.mxu1  ;;  %v3497_v61 = vld [vmem:[%s6811_s5 + $0x3b0] sm:$0xff]  ;;  %1810 = vmatpush.msra.mxu3 %v3496_v60 }
 0x902   :  { %v1583_v6 = vadd.f32 %v5344_v59, %v1582_v19  ;;  %1875 = vmatpush.msra.mxu0 %v3497_v61  ;;  %1940 = vmatpush.msra.mxu1 %v3498_v20 }
 0x903   :  { %1602 = vmatmul.f32.gmra.mxu1 %v5439_v56  ;;  %1811 = vmatpush.msra.mxu3 %v3493_v37 }
 0x904   :  { %v1618_v13 = vmax.f32 %v1583_v6, 0.0  ;;  %1876 = vmatpush.msra.mxu0 %v3494_v63  ;;  %1941 = vmatpush.msra.mxu1 %v3495_v36 }
 0x905   :  { %1812 = vmatpush.msra.mxu3 %v3490_v1 }
 0x906   :  { %v1490_v41 = vpop.f32.mrf.mxu0  ;;  %1681 = vmatmul.f32.gmra.mxu2 %v1618_v13  ;;  %1877 = vmatpush.msra.mxu0 %v3491_v51 }
 0x907   :  { %v1510_v16 = vmax.f32 %v1490_v41, 0.0  ;;  %1813 = vmatpush.msra.mxu3 %v3487_v48  ;;  %1942 = vmatpush.msra.mxu1 %v3492_v24 }
 0x908   :  { %1878 = vmatpush.msra.mxu0 %v3488_v50 }
 0x909   :  { %v5477_v47 = vadd.f32 %v1510_v16, %v4987_v25  ;;  %v1585_v30 = vpop.f32.mrf.mxu1  ;;  %v3489_v25 = vld [vmem:[%s6811_s5 + $0x370] sm:$0xff]  ;;  %1814 = vmatpush.msra.mxu3 %v3484_v27 }
 0x90a   :  { %v1586_v54 = vadd.f32 %v5344_v59, %v1585_v30  ;;  %1943 = vmatpush.msra.mxu1 %v3489_v25  ;;  %1879 = vmatpush.msra.mxu0 %v3485_v34 }
 0x90b   :  { %1605 = vmatmul.f32.gmra.mxu1 %v5477_v47 }
 0x90c   :  { %v1619_v8 = vmax.f32 %v1586_v54, 0.0  ;;  %1944 = vmatpush.msra.mxu1 %v3486_v55  ;;  %1880 = vmatpush.msra.mxu0 %v3482_v26 }
 0x90e   :  { %v1493_v17 = vpop.f32.mrf.mxu0  ;;  %1684 = vmatmul.f32.gmra.mxu2 %v1619_v8  ;;  %1945 = vmatpush.msra.mxu1 %v3483_v31 }
 0x90f   :  { %v1511_v35 = vmax.f32 %v1493_v17, 0.0  ;;  %1881 = vmatpush.msra.mxu0 %v3479_v14 }
 0x910   :  { %1946 = vmatpush.msra.mxu1 %v3480_v18 }
 0x911   :  { %v5491_v38 = vadd.f32 %v1511_v35, %v4998_v9  ;;  %v3481_v9 = vld [vmem:[%s6811_s5 + $0x330] sm:$0xff]  ;;  %1882 = vmatpush.msra.mxu0 %v3476_v28 }
 0x912   :  { %1815 = vmatpush.msra.mxu3 %v3481_v9  ;;  %1947 = vmatpush.msra.mxu1 %v3477_v4 }
 0x913   :  { %1608 = vmatmul.f32.gmra.mxu1 %v5491_v38 }
 0x914   :  { %1816 = vmatpush.msra.mxu3 %v3478_v53 }
 0x916   :  { %1817 = vmatpush.msra.mxu3 %v3475_v0 }
 0x958   :  { %v1588_v5 = vpop.f32.mrf.mxu1 }
 0x959   :  { %v1589_v43 = vadd.f32 %v5344_v59, %v1588_v5  ;;  %v1664_v45 = vpop.f32.mrf.mxu2 }
 0x95a   :  { %v1665_v32 = vadd.f32 %v5533_v62, %v1664_v45 }
 0x95b   :  { %v1620_v49 = vmax.f32 %v1589_v43, 0.0 }
 0x95c   :  { %v1712_v11 = vmax.f32 %v1665_v32, 0.0 }
 0x95d   :  { %1687 = vmatmul.f32.gmra.mxu2 %v1620_v49 }
 0x95e   :  { %v5538_v15 = vadd.f32 %v1712_v11, %v5254_v46 }
 0x960   :  { %v1591_v3 = vpop.f32.mrf.mxu1  ;;  %1818 = vmatmul.f32.vlgmr.msra.gmra.mxu3 %v5538_v15  ;;  %1883 = vmatmul.f32.vlgmr.msra.gmra.mxu0 %v5538_v15 }
 0x961   :  { %v1592_v2 = vadd.f32 %v5344_v59, %v1591_v3  ;;  %1948 = vmatmul.f32.vlgmr.msra.gmra.mxu1 %v5538_v15  ;;  %v1667_v39 = vpop.f32.mrf.mxu2 }
 0x962   :  { %v1668_v19 = vadd.f32 %v5533_v62, %v1667_v39 }
 0x963   :  { %v1621_v23 = vmax.f32 %v1592_v2, 0.0 }
 0x964   :  { %v1713_v52 = vmax.f32 %v1668_v19, 0.0 }
 0x965   :  { %1690 = vmatmul.f32.gmra.mxu2 %v1621_v23 }
 0x966   :  { %v5546_v6 = vadd.f32 %v1713_v52, %v5259_v44 }
 0x968   :  { %v1594_v46 = vpop.f32.mrf.mxu1  ;;  %1821 = vmatmul.f32.gmra.mxu3 %v5546_v6  ;;  %1886 = vmatmul.f32.gmra.mxu0 %v5546_v6 }
 0x969   :  { %v1595_v60 = vadd.f32 %v5344_v59, %v1594_v46  ;;  %1951 = vmatmul.f32.gmra.mxu1 %v5546_v6  ;;  %v1670_v61 = vpop.f32.mrf.mxu2 }
 0x96a   :  { %v1671_v13 = vadd.f32 %v5533_v62, %v1670_v61 }
 0x96b   :  { %v1622_v20 = vmax.f32 %v1595_v60, 0.0 }
 0x96c   :  { %v1714_v37 = vmax.f32 %v1671_v13, 0.0 }
 0x96d   :  { %1693 = vmatmul.f32.gmra.mxu2 %v1622_v20 }
 0x96e   :  { %v5554_v63 = vadd.f32 %v1714_v37, %v5264_v29 }
 0x970   :  { %v1597_v44 = vpop.f32.mrf.mxu1  ;;  %1824 = vmatmul.f32.gmra.mxu3 %v5554_v63  ;;  %1889 = vmatmul.f32.gmra.mxu0 %v5554_v63 }
 0x971   :  { %v1598_v41 = vadd.f32 %v5344_v59, %v1597_v44  ;;  %1954 = vmatmul.f32.gmra.mxu1 %v5554_v63  ;;  %v1673_v36 = vpop.f32.mrf.mxu2 }
 0x972   :  { %v1674_v1 = vadd.f32 %v5533_v62, %v1673_v36 }
 0x973   :  { %v1623_v16 = vmax.f32 %v1598_v41, 0.0 }
 0x974   :  { %v1715_v51 = vmax.f32 %v1674_v1, 0.0 }
 0x975   :  { %1696 = vmatmul.f32.gmra.mxu2 %v1623_v16 }
 0x976   :  { %v5562_v48 = vadd.f32 %v1715_v51, %v5269_v10 }
 0x978   :  { %v1600_v29 = vpop.f32.mrf.mxu1  ;;  %1827 = vmatmul.f32.gmra.mxu3 %v5562_v48  ;;  %1892 = vmatmul.f32.gmra.mxu0 %v5562_v48 }
 0x979   :  { %v1601_v30 = vadd.f32 %v5344_v59, %v1600_v29  ;;  %1957 = vmatmul.f32.gmra.mxu1 %v5562_v48  ;;  %v1676_v24 = vpop.f32.mrf.mxu2 }
 0x97a   :  { %v1677_v50 = vadd.f32 %v5533_v62, %v1676_v24 }
 0x97b   :  { %v1624_v54 = vmax.f32 %v1601_v30, 0.0 }
 0x97c   :  { %v1716_v25 = vmax.f32 %v1677_v50, 0.0 }
 0x97d   :  { %1699 = vmatmul.f32.gmra.mxu2 %v1624_v54 }
 0x97e   :  { %v5570_v8 = vadd.f32 %v1716_v25, %v5280_v12 }
 0x980   :  { %v1603_v10 = vpop.f32.mrf.mxu1  ;;  %1830 = vmatmul.f32.gmra.mxu3 %v5570_v8  ;;  %1895 = vmatmul.f32.gmra.mxu0 %v5570_v8 }
 0x981   :  { %v1604_v17 = vadd.f32 %v5344_v59, %v1603_v10  ;;  %1960 = vmatmul.f32.gmra.mxu1 %v5570_v8  ;;  %v1679_v35 = vpop.f32.mrf.mxu2 }
 0x982   :  { %v1680_v27 = vadd.f32 %v5533_v62, %v1679_v35 }
 0x983   :  { %v1625_v34 = vmax.f32 %v1604_v17, 0.0 }
 0x984   :  { %v1717_v55 = vmax.f32 %v1680_v27, 0.0 }
 0x985   :  { %1702 = vmatmul.f32.gmra.mxu2 %v1625_v34 }
 0x986   :  { %v5578_v9 = vadd.f32 %v1717_v55, %v5297_v57 }
 0x988   :  { %v1606_v12 = vpop.f32.mrf.mxu1  ;;  %1833 = vmatmul.f32.gmra.mxu3 %v5578_v9  ;;  %1898 = vmatmul.f32.gmra.mxu0 %v5578_v9 }
 0x989   :  { %v1607_v26 = vadd.f32 %v5344_v59, %v1606_v12  ;;  %1963 = vmatmul.f32.gmra.mxu1 %v5578_v9  ;;  %v1682_v31 = vpop.f32.mrf.mxu2 }
 0x98a   :  { %v1683_v53 = vadd.f32 %v5533_v62, %v1682_v31 }
 0x98b   :  { %v1626_v14 = vmax.f32 %v1607_v26, 0.0 }
 0x98c   :  { %v1718_v18 = vmax.f32 %v1683_v53, 0.0 }
 0x98d   :  { %1705 = vmatmul.f32.gmra.mxu2 %v1626_v14 }
 0x98e   :  { %v5586_v0 = vadd.f32 %v1718_v18, %v5314_v22 }
 0x990   :  { %v1609_v57 = vpop.f32.mrf.mxu1  ;;  %1836 = vmatmul.f32.gmra.mxu3 %v5586_v0  ;;  %1901 = vmatmul.f32.gmra.mxu0 %v5586_v0 }
 0x991   :  { %v1610_v28 = vadd.f32 %v5344_v59, %v1609_v57  ;;  %1966 = vmatmul.f32.gmra.mxu1 %v5586_v0  ;;  %v1685_v4 = vpop.f32.mrf.mxu2 }
 0x992   :  { %v1686_v5 = vadd.f32 %v5533_v62, %v1685_v4 }
 0x993   :  { %v1627_v43 = vmax.f32 %v1610_v28, 0.0 }
 0x994   :  { %v1719_v45 = vmax.f32 %v1686_v5, 0.0 }
 0x995   :  { %1708 = vmatmul.f32.gmra.mxu2 %v1627_v43 }
 0x996   :  { %v5594_v32 = vadd.f32 %v1719_v45, %v5328_v33 }
 0x998   :  { %1839 = vmatmul.f32.gmra.mxu3 %v5594_v32  ;;  %1904 = vmatmul.f32.gmra.mxu0 %v5594_v32 }
 0x999   :  { %1969 = vmatmul.f32.gmra.mxu1 %v5594_v32 }
 0x9dd   :  { %v5645_v29 = vpop.f32.mrf.mxu0 }
 0x9de   :  { %v5647_v30 = vpop.f32.mrf.mxu1 }
 0x9e0   :  { %v1688_v22 = vpop.f32.mrf.mxu2 }
 0x9e1   :  { %v1689_v59 = vadd.f32 %v5533_v62, %v1688_v22 }
 0x9e3   :  { %v1720_v49 = vmax.f32 %v1689_v59, 0.0 }
 0x9e5   :  { %v5601_v11 = vadd.f32 %v1720_v49, %v5348_v21 }
 0x9e6   :  { %v5661_v25 = vpop.f32.mrf.mxu1 }
 0x9e7   :  { %1842 = vmatmul.f32.gmra.mxu3 %v5601_v11  ;;  %1907 = vmatmul.f32.gmra.mxu0 %v5601_v11 }
 0x9e8   :  { %1972 = vmatmul.f32.gmra.mxu1 %v5601_v11  ;;  %v1691_v33 = vpop.f32.mrf.mxu2 }
 0x9e9   :  { %v1692_v3 = vadd.f32 %v5533_v62, %v1691_v33 }
 0x9eb   :  { %v1721_v2 = vmax.f32 %v1692_v3, 0.0 }
 0x9ed   :  { %v5608_v39 = vadd.f32 %v1721_v2, %v5353_v58 }
 0x9ee   :  { %v5665_v17 = vpop.f32.mrf.mxu1 }
 0x9ef   :  { %1845 = vmatmul.f32.gmra.mxu3 %v5608_v39  ;;  %1910 = vmatmul.f32.gmra.mxu0 %v5608_v39 }
 0x9f0   :  { %1975 = vmatmul.f32.gmra.mxu1 %v5608_v39  ;;  %v1694_v21 = vpop.f32.mrf.mxu2 }
 0x9f1   :  { %v1695_v19 = vadd.f32 %v5533_v62, %v1694_v21  ;;  %v5682_v21 = vld [vmem:[%s6812_s6 + $0x2] ss:$4 sm:$0x7] }
 0x9f3   :  { %v1722_v23 = vmax.f32 %v1695_v19, 0.0  ;;  %v5685_v19 = vperm.slane %v5682_v21, 1 }
 0x9f5   :  { %v5615_v52 = vadd.f32 %v1722_v23, %v5358_v42  ;;  %v1798_v23 = vperm.slane %v5682_v21, 2 }
 0x9f7   :  { %1848 = vmatmul.f32.gmra.mxu3 %v5615_v52  ;;  %1913 = vmatmul.f32.gmra.mxu0 %v5615_v52 }
 0x9f8   :  { %1978 = vmatmul.f32.gmra.mxu1 %v5615_v52  ;;  %v1697_v58 = vpop.f32.mrf.mxu2 }
 0x9f9   :  { %v1698_v46 = vadd.f32 %v5533_v62, %v1697_v58 }
 0x9fb   :  { %v1723_v60 = vmax.f32 %v1698_v46, 0.0 }
 0x9fd   :  { %v5622_v61 = vadd.f32 %v1723_v60, %v5363_v40 }
 0x9ff   :  { %1851 = vmatmul.f32.gmra.mxu3 %v5622_v61  ;;  %1916 = vmatmul.f32.gmra.mxu0 %v5622_v61 }
 0xa00   :  { %1981 = vmatmul.f32.gmra.mxu1 %v5622_v61  ;;  %v1700_v42 = vpop.f32.mrf.mxu2 }
 0xa01   :  { %v1701_v13 = vadd.f32 %v5533_v62, %v1700_v42 }
 0xa03   :  { %v1724_v20 = vmax.f32 %v1701_v13, 0.0 }
 0xa05   :  { %v5629_v37 = vadd.f32 %v1724_v20, %v5401_v7 }
 0xa07   :  { %1854 = vmatmul.f32.gmra.mxu3 %v5629_v37  ;;  %1919 = vmatmul.f32.gmra.mxu0 %v5629_v37 }
 0xa08   :  { %1984 = vmatmul.f32.gmra.mxu1 %v5629_v37  ;;  %v1703_v40 = vpop.f32.mrf.mxu2 }
 0xa09   :  { %v1704_v44 = vadd.f32 %v5533_v62, %v1703_v40 }
 0xa0b   :  { %v1725_v41 = vmax.f32 %v1704_v44, 0.0 }
 0xa0d   :  { %v5636_v36 = vadd.f32 %v1725_v41, %v5439_v56 }
 0xa0f   :  { %1857 = vmatmul.f32.gmra.mxu3 %v5636_v36  ;;  %1922 = vmatmul.f32.gmra.mxu0 %v5636_v36 }
 0xa10   :  { %1987 = vmatmul.f32.gmra.mxu1 %v5636_v36  ;;  %v1706_v7 = vpop.f32.mrf.mxu2 }
 0xa11   :  { %v1707_v1 = vadd.f32 %v5533_v62, %v1706_v7 }
 0xa13   :  { %v1726_v16 = vmax.f32 %v1707_v1, 0.0 }
 0xa15   :  { %v5643_v51 = vadd.f32 %v1726_v16, %v5477_v47  ;;  %v5658_v47 = vpop.f32.mrf.mxu0 }
 0xa17   :  { %1860 = vmatmul.f32.gmra.mxu3 %v5643_v51  ;;  %1925 = vmatmul.f32.gmra.mxu0 %v5643_v51 }
 0xa18   :  { %1990 = vmatmul.f32.gmra.mxu1 %v5643_v51  ;;  %v1709_v56 = vpop.f32.mrf.mxu2 }
 0xa19   :  { %v1710_v24 = vadd.f32 %v5533_v62, %v1709_v56  ;;  %v5669_v62 = vpop.f32.mrf.mxu1 }
 0xa1b   :  { %v1727_v50 = vmax.f32 %v1710_v24, 0.0 }
 0xa1d   :  { %v5654_v54 = vadd.f32 %v1727_v50, %v5491_v38  ;;  %v5663_v10 = vpop.f32.mrf.mxu0 }
 0xa1f   :  { %1863 = vmatmul.f32.gmra.mxu3 %v5654_v54  ;;  %1928 = vmatmul.f32.gmra.mxu0 %v5654_v54 }
 0xa20   :  { %1993 = vmatmul.f32.gmra.mxu1 %v5654_v54 }
 0xa21   :  { %v1961_v27 = vpop.f32.mrf.mxu1 }
 0xa25   :  { %v5667_v35 = vpop.f32.mrf.mxu0 }
 0xa29   :  { %v1964_v55 = vpop.f32.mrf.mxu1 }
 0xa2d   :  { %v5671_v38 = vpop.f32.mrf.mxu0 }
 0xa31   :  { %v1967_v26 = vpop.f32.mrf.mxu1 }
 0xa35   :  { %v5673_v34 = vpop.f32.mrf.mxu0 }
 0xa39   :  { %v1970_v53 = vpop.f32.mrf.mxu1 }
 0xa3d   :  { %v5675_v12 = vpop.f32.mrf.mxu0 }
 0xa45   :  { %v5677_v31 = vpop.f32.mrf.mxu0 }
 0xa64   :  { %v1908_v14 = vpop.f32.mrf.mxu0 }
 0xa65   :  { %v1973_v18 = vpop.f32.mrf.mxu1 }
 0xa66   :  { %v1974_v24 = vadd.f32 %v1973_v18, %v1798_v23  ;;  %v1956_v18 = vadd.f32 %v5665_v17, %v1798_v23  ;;  %v1900_v17 = vadd.f32 %v5673_v34, %v5685_v19  ;;  %v1796_v34 = vperm.slane %v5682_v21, 0 }
 0xa6c   :  { %v1911_v57 = vpop.f32.mrf.mxu0 }
 0xa6d   :  { %v1976_v28 = vpop.f32.mrf.mxu1 }
 0xa6e   :  { %v1977_v56 = vadd.f32 %v1976_v28, %v1798_v23  ;;  %v1912_v28 = vadd.f32 %v1911_v57, %v5685_v19  ;;  %v1906_v57 = vadd.f32 %v5677_v31, %v5685_v19  ;;  %v1891_v31 = vadd.f32 %v5663_v10, %v5685_v19 }
 0xa74   :  { %v1914_v4 = vpop.f32.mrf.mxu0 }
 0xa75   :  { %v1979_v5 = vpop.f32.mrf.mxu1 }
 0xa76   :  { %v1980_v1 = vadd.f32 %v1979_v5, %v1798_v23  ;;  %v1962_v5 = vadd.f32 %v1961_v27, %v1798_v23  ;;  %v1819_v27 = vpop.f32.mrf.mxu3 }
 0xa7c   :  { %v1917_v43 = vpop.f32.mrf.mxu0 }
 0xa7d   :  { %v1982_v45 = vpop.f32.mrf.mxu1  ;;  %v1918_v50 = vadd.f32 %v1917_v43, %v5685_v19  ;;  %v1885_v43 = vadd.f32 %v5645_v29, %v5685_v19 }
 0xa7e   :  { %v1983_v7 = vadd.f32 %v1982_v45, %v1798_v23  ;;  %v1915_v45 = vadd.f32 %v1914_v4, %v5685_v19 }
 0xa84   :  { %v1920_v22 = vpop.f32.mrf.mxu0 }
 0xa85   :  { %v1985_v59 = vpop.f32.mrf.mxu1  ;;  %v1921_v16 = vadd.f32 %v1920_v22, %v5685_v19  ;;  %v1959_v22 = vadd.f32 %v5669_v62, %v1798_v23  ;;  %v1903_v62 = vadd.f32 %v5675_v12, %v5685_v19  ;;  %v1888_v12 = vadd.f32 %v5658_v47, %v5685_v19 }
 0xa86   :  { %v1986_v44 = vadd.f32 %v1985_v59, %v1798_v23  ;;  %v1968_v59 = vadd.f32 %v1967_v26, %v1798_v23  ;;  %v1953_v26 = vadd.f32 %v5661_v25, %v1798_v23  ;;  %v1897_v25 = vadd.f32 %v5671_v38, %v5685_v19 }
 0xa8c   :  { %v1923_v49 = vpop.f32.mrf.mxu0 }
 0xa8d   :  { %v1988_v33 = vpop.f32.mrf.mxu1  ;;  %v1924_v41 = vadd.f32 %v1923_v49, %v5685_v19  ;;  %v1965_v49 = vadd.f32 %v1964_v55, %v1798_v23  ;;  %v1950_v55 = vadd.f32 %v5647_v30, %v1798_v23  ;;  %v1894_v30 = vadd.f32 %v5667_v35, %v5685_v19 }
 0xa8e   :  { %v1989_v40 = vadd.f32 %v1988_v33, %v1798_v23  ;;  %v1971_v33 = vadd.f32 %v1970_v53, %v1798_v23  ;;  %v1909_v53 = vadd.f32 %v1908_v14, %v5685_v19  ;;  %v1822_v14 = vpop.f32.mrf.mxu3 }
 0xa8f   :  { %v1823_v35 = vadd.f32 %v1822_v14, %v1796_v34 }
 0xa94   :  { %v1926_v3 = vpop.f32.mrf.mxu0 }
 0xa95   :  { %v1991_v2 = vpop.f32.mrf.mxu1  ;;  %v1927_v20 = vadd.f32 %v1926_v3, %v5685_v19  ;;  %v1820_v3 = vadd.f32 %v1819_v27, %v1796_v34  ;;  %v3927_v27 = vld [vmem:[%s6813_s1 + $0x10] sm:$0xff] }
 0xa96   :  { %v1992_v13 = vadd.f32 %v1991_v2, %v1798_v23  ;;  %v1825_v4 = vpop.f32.mrf.mxu3 }
 0xa9c   :  { %v1929_v58 = vpop.f32.mrf.mxu0 }
 0xa9d   :  { %v1930_v46 = vadd.f32 %v1929_v58, %v5685_v19  ;;  %v1994_v60 = vpop.f32.mrf.mxu1 }
 0xa9e   :  { %v1995_v42 = vadd.f32 %v1994_v60, %v1798_v23  ;;  %v1828_v38 = vpop.f32.mrf.mxu3  ;;  %v1826_v23 = vadd.f32 %v1825_v4, %v1796_v34 }
 0xa9f   :  { %1997 = vmatpush.xpose.msra.mxu2 %v1930_v46  ;;  %v1829_v58 = vadd.f32 %v1828_v38, %v1796_v34  ;;  %v3931_v38 = vld [vmem:[%s6813_s1 + $0x30] sm:$0xff] }
 0xaa0   :  { %2206 = vmatpush.msrb.mxu3 %v1995_v42 }
 0xaa2   :  { %2207 = vmatpush.msrb.mxu3 %v1992_v13 }
 0xaa3   :  { %1998 = vmatpush.xpose.msra.mxu2 %v1927_v20 }
 0xaa4   :  { %2208 = vmatpush.msrb.mxu3 %v1989_v40 }
 0xaa6   :  { %2209 = vmatpush.msrb.mxu3 %v1986_v44  ;;  %v1831_v2 = vpop.f32.mrf.mxu3 }
 0xaa7   :  { %1999 = vmatpush.xpose.msra.mxu2 %v1924_v41  ;;  %v1832_v47 = vadd.f32 %v1831_v2, %v1796_v34  ;;  %v3932_v2 = vld [vmem:[%s6813_s1 + $0x38] sm:$0xff] }
 0xaa8   :  { %2210 = vmatpush.msrb.mxu3 %v1983_v7 }
 0xaaa   :  { %2211 = vmatpush.msrb.mxu3 %v1980_v1 }
 0xaab   :  { %2000 = vmatpush.xpose.msra.mxu2 %v1921_v16 }
 0xaac   :  { %2212 = vmatpush.msrb.mxu3 %v1977_v56 }
 0xaae   :  { %2213 = vmatpush.msrb.mxu3 %v1974_v24  ;;  %v1834_v10 = vpop.f32.mrf.mxu3 }
 0xaaf   :  { %2001 = vmatpush.xpose.msra.mxu2 %v1918_v50  ;;  %v1835_v21 = vadd.f32 %v1834_v10, %v1796_v34 }
 0xab0   :  { %2214 = vmatpush.msrb.mxu3 %v1971_v33 }
 0xab2   :  { %2215 = vmatpush.msrb.mxu3 %v1968_v59 }
 0xab3   :  { %2002 = vmatpush.xpose.msra.mxu2 %v1915_v45 }
 0xab4   :  { %2216 = vmatpush.msrb.mxu3 %v1965_v49 }
 0xab6   :  { %2217 = vmatpush.msrb.mxu3 %v1962_v5  ;;  %v1837_v46 = vpop.f32.mrf.mxu3 }
 0xab7   :  { %2003 = vmatpush.xpose.msra.mxu2 %v1912_v28  ;;  %v1838_v29 = vadd.f32 %v1837_v46, %v1796_v34  ;;  %v3925_v28 = vld [vmem:[%s6813_s1] sm:$0xff] }
 0xab8   :  { %2218 = vmatpush.msrb.mxu3 %v1959_v22 }
 0xaba   :  { %2219 = vmatpush.msrb.mxu3 %v1956_v18 }
 0xabb   :  { %2004 = vmatpush.xpose.msra.mxu2 %v1909_v53  ;;  %v3926_v53 = vld [vmem:[%s6813_s1 + $0x8] sm:$0xff] }
 0xabc   :  { %2220 = vmatpush.msrb.mxu3 %v1953_v26 }
 0xabe   :  { %2221 = vmatpush.msrb.mxu3 %v1950_v55  ;;  %v1840_v60 = vpop.f32.mrf.mxu3 }
 0xabf   :  { %2005 = vmatpush.xpose.msra.mxu2 %v1906_v57  ;;  %v1841_v19 = vadd.f32 %v1840_v60, %v1796_v34 }
 0xac3   :  { %2006 = vmatpush.xpose.msra.mxu2 %v1903_v62 }
 0xac6   :  { %v1843_v42 = vpop.f32.mrf.mxu3 }
 0xac7   :  { %2007 = vmatpush.xpose.msra.mxu2 %v1900_v17  ;;  %v1844_v20 = vadd.f32 %v1843_v42, %v1796_v34  ;;  %v3928_v17 = vld [vmem:[%s6813_s1 + $0x18] sm:$0xff] }
 0xacb   :  { %2008 = vmatpush.xpose.msra.mxu2 %v1897_v25 }
 0xace   :  { %v1846_v13 = vpop.f32.mrf.mxu3 }
 0xacf   :  { %2009 = vmatpush.xpose.msra.mxu2 %v1894_v30  ;;  %v1847_v44 = vadd.f32 %v1846_v13, %v1796_v34  ;;  %v3929_v30 = vld [vmem:[%s6813_s1 + $0x20] sm:$0xff] }
 0xad3   :  { %2010 = vmatpush.xpose.msra.mxu2 %v1891_v31 }
 0xad6   :  { %v1849_v40 = vpop.f32.mrf.mxu3 }
 0xad7   :  { %2011 = vmatpush.xpose.msra.mxu2 %v1888_v12  ;;  %v1850_v7 = vadd.f32 %v1849_v40, %v1796_v34  ;;  %v3930_v12 = vld [vmem:[%s6813_s1 + $0x28] sm:$0xff]  ;;  %v3933_v40 = vld [vmem:[%s6813_s1 + $0x40] sm:$0xff] }
 0xadb   :  { %2012 = vmatpush.xpose.msra.mxu2 %v1885_v43 }
 0xade   :  { %2013 = vmatmul.f32.vlgmr.msra.gmra.mxu2 %v1820_v3  ;;  %v1852_v41 = vpop.f32.mrf.mxu3 }
 0xadf   :  { %v1853_v16 = vadd.f32 %v1852_v41, %v1796_v34 }
 0xae6   :  { %2016 = vmatmul.f32.gmra.mxu2 %v1823_v35  ;;  %v1855_v1 = vpop.f32.mrf.mxu3 }
 0xae7   :  { %v1856_v56 = vadd.f32 %v1855_v1, %v1796_v34 }
 0xaee   :  { %2019 = vmatmul.f32.gmra.mxu2 %v1826_v23  ;;  %v1858_v24 = vpop.f32.mrf.mxu3 }
 0xaef   :  { %v1859_v50 = vadd.f32 %v1858_v24, %v1796_v34  ;;  %v3934_v24 = vld [vmem:[%s6813_s1 + $0x48] sm:$0xff] }
 0xaf6   :  { %2022 = vmatmul.f32.gmra.mxu2 %v1829_v58  ;;  %v1861_v33 = vpop.f32.mrf.mxu3 }
 0xaf7   :  { %v1862_v59 = vadd.f32 %v1861_v33, %v1796_v34 }
 0xafe   :  { %2025 = vmatmul.f32.gmra.mxu2 %v1832_v47  ;;  %v1864_v45 = vpop.f32.mrf.mxu3 }
 0xaff   :  { %v1865_v49 = vadd.f32 %v1864_v45, %v1796_v34 }
 0xb06   :  { %2028 = vmatmul.f32.gmra.mxu2 %v1835_v21 }
 0xb0e   :  { %2031 = vmatmul.f32.gmra.mxu2 %v1838_v29 }
 0xb16   :  { %2034 = vmatmul.f32.gmra.mxu2 %v1841_v19 }
 0xb1e   :  { %2037 = vmatmul.f32.gmra.mxu2 %v1844_v20 }
 0xb26   :  { %2040 = vmatmul.f32.gmra.mxu2 %v1847_v44 }
 0xb2e   :  { %2043 = vmatmul.f32.gmra.mxu2 %v1850_v7 }
 0xb36   :  { %2046 = vmatmul.f32.gmra.mxu2 %v1853_v16 }
 0xb3e   :  { %2049 = vmatmul.f32.gmra.mxu2 %v1856_v56 }
 0xb46   :  { %2052 = vmatmul.f32.gmra.mxu2 %v1859_v50 }
 0xb4e   :  { %2055 = vmatmul.f32.gmra.mxu2 %v1862_v59 }
 0xb56   :  { %2058 = vmatmul.f32.gmra.mxu2 %v1865_v49 }
 0xb61   :  { %v2014_v5 = vpop.f32.mrf.mxu2 }
 0xb62   :  { %v2015_v22 = vadd.f32 %v3925_v28, %v2014_v5  ;;  %v3935_v28 = vld [vmem:[%s6813_s1 + $0x50] sm:$0xff] }
 0xb64   :  { %2062 = vmax.xlane.f32.xlu1 %v2015_v22 }
 0xb69   :  { %v2017_v18 = vpop.f32.mrf.mxu2 }
 0xb6a   :  { %v2018_v26 = vadd.f32 %v3926_v53, %v2017_v18 }
 0xb6c   :  { %2064 = vmax.xlane.f32.xlu2 %v2018_v26 }
 0xb71   :  { %v2020_v55 = vpop.f32.mrf.mxu2 }
 0xb72   :  { %v2021_v57 = vadd.f32 %v3927_v27, %v2020_v55 }
 0xb74   :  { %2066 = vmax.xlane.f32.xlu0 %v2021_v57 }
 0xb79   :  { %v2023_v62 = vpop.f32.mrf.mxu2 }
 0xb7a   :  { %v2024_v14 = vadd.f32 %v3928_v17, %v2023_v62 }
 0xb7c   :  { %2068 = vmax.xlane.f32.xlu1 %v2024_v14 }
 0xb81   :  { %v2026_v25 = vpop.f32.mrf.mxu2 }
 0xb82   :  { %v2027_v31 = vadd.f32 %v3929_v30, %v2026_v25 }
 0xb84   :  { %2070 = vmax.xlane.f32.xlu2 %v2027_v31 }
 0xb89   :  { %v2029_v4 = vpop.f32.mrf.mxu2 }
 0xb8a   :  { %v2030_v34 = vadd.f32 %v3930_v12, %v2029_v4 }
 0xb8c   :  { %2072 = vmax.xlane.f32.xlu0 %v2030_v34 }
 0xb91   :  { %v2032_v43 = vpop.f32.mrf.mxu2 }
 0xb92   :  { %v5738_v3 = vadd.f32 %v3931_v38, %v2032_v43 }
 0xb94   :  { %2074 = vmax.xlane.f32.xlu1 %v5738_v3 }
 0xb99   :  { %v2035_v35 = vpop.f32.mrf.mxu2 }
 0xb9a   :  { %v5744_v23 = vadd.f32 %v3932_v2, %v2035_v35 }
 0xb9c   :  { %2076 = vmax.xlane.f32.xlu0 %v5744_v23 }
 0xba1   :  { %v2038_v58 = vpop.f32.mrf.mxu2 }
 0xba2   :  { %v5753_v44 = vadd.f32 %v3933_v40, %v2038_v58 }
 0xba9   :  { %v2041_v29 = vpop.f32.mrf.mxu2 }
 0xbaa   :  { %v5762_v50 = vadd.f32 %v3934_v24, %v2041_v29  ;;  %v3940_v29 = vld [vmem:[%s6813_s1 + $0x78] sm:$0xff] }
 0xbb1   :  { %v2044_v1 = vpop.f32.mrf.mxu2 }
 0xbb9   :  { %v2047_v45 = vpop.f32.mrf.mxu2 }
 0xbc1   :  { %v2050_v55 = vpop.f32.mrf.mxu2 }
 0xbd7   :  { %v2063_v10 = vpop.xlane.xlu1 %2062 }
 0xbd8   :  { %v2094_v46 = vsub.f32 %v2015_v22, %v2063_v10  ;;  %v5771_v22 = vadd.f32 %v3935_v28, %v2044_v1 }
 0xbda   :  { %v2110_v47 = vmul.f32 1.442695, %v2094_v46 }
 0xbdc   :  { %3779 = vpow2.f32 %v2110_v47  ;;  %v3939_v47 = vld [vmem:[%s6813_s1 + $0x70] sm:$0xff] }
 0xbdf   :  { %v2065_v60 = vpop.xlane.xlu2 %2064 }
 0xbe0   :  { %v2095_v21 = vsub.f32 %v2018_v26, %v2065_v60 }
 0xbe2   :  { %v5747_v42 = vpop.eup %3779  ;;  %v2112_v19 = vmul.f32 1.442695, %v2095_v21 }
 0xbe3   :  { %2142 = vadd.xlane.f32.xlu2 %v5747_v42 }
 0xbe4   :  { %3781 = vpow2.f32 %v2112_v19 }
 0xbe7   :  { %v2067_v13 = vpop.xlane.xlu0 %2066 }
 0xbe8   :  { %v2096_v20 = vsub.f32 %v2021_v57, %v2067_v13  ;;  %v3936_v57 = vld [vmem:[%s6813_s1 + $0x58] sm:$0xff] }
 0xbe9   :  { %v5780_v62 = vadd.f32 %v3936_v57, %v2047_v45 }
 0xbea   :  { %v5755_v41 = vpop.eup %3781  ;;  %v2114_v7 = vmul.f32 1.442695, %v2096_v20 }
 0xbeb   :  { %2144 = vadd.xlane.f32.xlu1 %v5755_v41  ;;  %2078 = vmax.xlane.f32.xlu2 %v5753_v44 }
 0xbec   :  { %3783 = vpow2.f32 %v2114_v7 }
 0xbef   :  { %v2069_v16 = vpop.xlane.xlu1 %2068 }
 0xbf0   :  { %v2097_v56 = vsub.f32 %v2024_v14, %v2069_v16 }
 0xbf2   :  { %v5764_v33 = vpop.eup %3783  ;;  %v2116_v59 = vmul.f32 1.442695, %v2097_v56 }
 0xbf3   :  { %2146 = vadd.xlane.f32.xlu0 %v5764_v33  ;;  %2080 = vmax.xlane.f32.xlu1 %v5762_v50 }
 0xbf4   :  { %3785 = vpow2.f32 %v2116_v59 }
 0xbf7   :  { %v2071_v49 = vpop.xlane.xlu2 %2070 }
 0xbf8   :  { %v2098_v5 = vsub.f32 %v2027_v31, %v2071_v49  ;;  %v3937_v31 = vld [vmem:[%s6813_s1 + $0x60] sm:$0xff] }
 0xbf9   :  { %v5790_v4 = vadd.f32 %v3937_v31, %v2050_v55 }
 0xbfa   :  { %v5773_v18 = vpop.eup %3785  ;;  %v2118_v53 = vmul.f32 1.442695, %v2098_v5 }
 0xbfb   :  { %2082 = vmax.xlane.f32.xlu0 %v5771_v22  ;;  %2148 = vadd.xlane.f32.xlu2 %v5773_v18 }
 0xbfc   :  { %3787 = vpow2.f32 %v2118_v53 }
 0xbff   :  { %v2073_v26 = vpop.xlane.xlu0 %2072 }
 0xc00   :  { %v2099_v27 = vsub.f32 %v2030_v34, %v2073_v26  ;;  %v2053_v34 = vpop.f32.mrf.mxu2 }
 0xc02   :  { %v5782_v17 = vpop.eup %3787  ;;  %v2120_v14 = vmul.f32 1.442695, %v2099_v27 }
 0xc03   :  { %2150 = vadd.xlane.f32.xlu1 %v5782_v17  ;;  %2084 = vmax.xlane.f32.xlu2 %v5780_v62 }
 0xc04   :  { %3789 = vpow2.f32 %v2120_v14 }
 0xc07   :  { %v2075_v25 = vpop.xlane.xlu1 %2074 }
 0xc08   :  { %v2100_v30 = vsub.f32 %v5738_v3, %v2075_v25  ;;  %v3938_v3 = vld [vmem:[%s6813_s1 + $0x68] sm:$0xff]  ;;  %v2056_v46 = vpop.f32.mrf.mxu2 }
 0xc09   :  { %v5800_v2 = vadd.f32 %v3938_v3, %v2053_v34 }
 0xc0a   :  { %v5792_v12 = vpop.eup %3789  ;;  %v2122_v43 = vmul.f32 1.442695, %v2100_v30 }
 0xc0b   :  { %2152 = vadd.xlane.f32.xlu0 %v5792_v12  ;;  %2086 = vmax.xlane.f32.xlu1 %v5790_v4 }
 0xc0c   :  { %3791 = vpow2.f32 %v2122_v43 }
 0xc0f   :  { %v2077_v38 = vpop.xlane.xlu0 %2076 }
 0xc10   :  { %v2101_v35 = vsub.f32 %v5744_v23, %v2077_v38  ;;  %v5809_v23 = vadd.f32 %v3939_v47, %v2056_v46  ;;  %v2059_v21 = vpop.f32.mrf.mxu2  ;;  %v3538_v46 = vld [vmem:[%s6814_s7 + $0x170] sm:$0xff] }
 0xc11   :  { %v5818_v19 = vadd.f32 %v3940_v29, %v2059_v21 }
 0xc12   :  { %v5802_v10 = vpop.eup %3791  ;;  %v2124_v58 = vmul.f32 1.442695, %v2101_v35 }
 0xc13   :  { %2088 = vmax.xlane.f32.xlu0 %v5800_v2  ;;  %2154 = vadd.xlane.f32.xlu2 %v5802_v10 }
 0xc14   :  { %3793 = vpow2.f32 %v2124_v58  ;;  %v3539_v58 = vld [vmem:[%s6814_s7 + $0x178] sm:$0xff] }
 0xc15   :  { %2322 = vmatpush.msrb.mxu0 %v3539_v58 }
 0xc17   :  { %2323 = vmatpush.msrb.mxu0 %v3538_v46 }
 0xc1a   :  { %v5811_v60 = vpop.eup %3793 }
 0xc1b   :  { %2156 = vadd.xlane.f32.xlu1 %v5811_v60  ;;  %2090 = vmax.xlane.f32.xlu2 %v5809_v23 }
 0xc23   :  { %2092 = vmax.xlane.f32.xlu1 %v5818_v19 }
 0xc56   :  { %v2143_v13 = vpop.xlane.xlu2 %2142 }
 0xc57   :  { %3795 = vrcp.f32 %v2143_v13  ;;  %v3536_v13 = vld [vmem:[%s6814_s7 + $0x160] sm:$0xff] }
 0xc5d   :  { %v3796_v20 = vpop.eup %3795 }
 0xc5e   :  { %v2190_v40 = vmul.f32 %v3796_v20, %v5747_v42  ;;  %v2079_v7 = vpop.xlane.xlu2 %2078  ;;  %v2145_v1 = vpop.xlane.xlu1 %2144 }
 0xc5f   :  { %v2102_v16 = vsub.f32 %v5753_v44, %v2079_v7  ;;  %3797 = vrcp.f32 %v2145_v1 }
 0xc60   :  { %2222 = vmatmul.f32.vlgmr.msrb.gmra.mxu3 %v2190_v40  ;;  %v3535_v40 = vld [vmem:[%s6814_s7 + $0x158] sm:$0xff] }
 0xc61   :  { %v2126_v56 = vmul.f32 1.442695, %v2102_v16 }
 0xc63   :  { %3799 = vpow2.f32 %v2126_v56 }
 0xc65   :  { %v3798_v24 = vpop.eup %3797 }
 0xc66   :  { %v2147_v59 = vpop.xlane.xlu0 %2146  ;;  %v2081_v45 = vpop.xlane.xlu1 %2080  ;;  %v2191_v49 = vmul.f32 %v3798_v24, %v5755_v41 }
 0xc67   :  { %3801 = vrcp.f32 %v2147_v59  ;;  %v2103_v5 = vsub.f32 %v5762_v50, %v2081_v45  ;;  %v3532_v45 = vld [vmem:[%s6814_s7 + $0x140] sm:$0xff] }
 0xc68   :  { %2225 = vmatmul.f32.gmra.mxu3 %v2191_v49 }
 0xc69   :  { %v5825_v28 = vpop.eup %3799  ;;  %v2128_v42 = vmul.f32 1.442695, %v2103_v5  ;;  %v3531_v5 = vld [vmem:[%s6814_s7 + $0x138] sm:$0xff] }
 0xc6a   :  { %2158 = vadd.xlane.f32.xlu0 %v5825_v28 }
 0xc6b   :  { %3803 = vpow2.f32 %v2128_v42 }
 0xc6d   :  { %v3802_v44 = vpop.eup %3801 }
 0xc6e   :  { %v2083_v53 = vpop.xlane.xlu0 %2082  ;;  %v2149_v26 = vpop.xlane.xlu2 %2148  ;;  %v2192_v55 = vmul.f32 %v3802_v44, %v5764_v33 }
 0xc6f   :  { %v2104_v27 = vsub.f32 %v5771_v22, %v2083_v53  ;;  %3805 = vrcp.f32 %v2149_v26 }
 0xc70   :  { %2228 = vmatmul.f32.gmra.mxu3 %v2192_v55 }
 0xc71   :  { %v5830_v41 = vpop.eup %3803  ;;  %v2130_v57 = vmul.f32 1.442695, %v2104_v27 }
 0xc72   :  { %2160 = vadd.xlane.f32.xlu2 %v5830_v41 }
 0xc73   :  { %3807 = vpow2.f32 %v2130_v57 }
 0xc75   :  { %v3806_v50 = vpop.eup %3805 }
 0xc76   :  { %v2085_v14 = vpop.xlane.xlu2 %2084  ;;  %v2151_v25 = vpop.xlane.xlu1 %2150  ;;  %v2193_v30 = vmul.f32 %v3806_v50, %v5773_v18 }
 0xc77   :  { %v2105_v31 = vsub.f32 %v5780_v62, %v2085_v14  ;;  %3809 = vrcp.f32 %v2151_v25  ;;  %v3528_v25 = vld [vmem:[%s6814_s7 + $0x120] sm:$0xff] }
 0xc78   :  { %2231 = vmatmul.f32.gmra.mxu3 %v2193_v30  ;;  %v3525_v30 = vld [vmem:[%s6814_s7 + $0x108] sm:$0xff] }
 0xc79   :  { %v5835_v33 = vpop.eup %3807  ;;  %v2132_v22 = vmul.f32 1.442695, %v2105_v31  ;;  %v3524_v31 = vld [vmem:[%s6814_s7 + $0x100] sm:$0xff] }
 0xc7a   :  { %2162 = vadd.xlane.f32.xlu0 %v5835_v33 }
 0xc7b   :  { %3811 = vpow2.f32 %v2132_v22 }
 0xc7d   :  { %v3810_v34 = vpop.eup %3809 }
 0xc7e   :  { %v2153_v43 = vpop.xlane.xlu0 %2152  ;;  %v2087_v38 = vpop.xlane.xlu1 %2086  ;;  %v2194_v35 = vmul.f32 %v3810_v34, %v5782_v17  ;;  %v3537_v17 = vld [vmem:[%s6814_s7 + $0x168] sm:$0xff] }
 0xc7f   :  { %3813 = vrcp.f32 %v2153_v43  ;;  %v2106_v3 = vsub.f32 %v5790_v4, %v2087_v38  ;;  %2324 = vmatpush.msrb.mxu0 %v3537_v17 }
 0xc80   :  { %2234 = vmatmul.f32.gmra.mxu3 %v2194_v35 }
 0xc81   :  { %v5840_v18 = vpop.eup %3811  ;;  %v2134_v62 = vmul.f32 1.442695, %v2106_v3  ;;  %2325 = vmatpush.msrb.mxu0 %v3536_v13 }
 0xc82   :  { %2164 = vadd.xlane.f32.xlu1 %v5840_v18 }
 0xc83   :  { %3815 = vpow2.f32 %v2134_v62  ;;  %2326 = vmatpush.msrb.mxu0 %v3535_v40 }
 0xc85   :  { %v3814_v4 = vpop.eup %3813 }
 0xc86   :  { %v2089_v47 = vpop.xlane.xlu0 %2088  ;;  %v2155_v21 = vpop.xlane.xlu2 %2154  ;;  %v2195_v29 = vmul.f32 %v3814_v4, %v5792_v12  ;;  %v3534_v12 = vld [vmem:[%s6814_s7 + $0x150] sm:$0xff] }
 0xc87   :  { %v2107_v20 = vsub.f32 %v5800_v2, %v2089_v47  ;;  %3817 = vrcp.f32 %v2155_v21  ;;  %v3533_v2 = vld [vmem:[%s6814_s7 + $0x148] sm:$0xff]  ;;  %2327 = vmatpush.msrb.mxu0 %v3534_v12 }
 0xc88   :  { %2237 = vmatmul.f32.gmra.mxu3 %v2195_v29 }
 0xc89   :  { %v5860_v7 = vpop.eup %3815  ;;  %v2136_v1 = vmul.f32 1.442695, %v2107_v20  ;;  %2328 = vmatpush.msrb.mxu0 %v3533_v2 }
 0xc8a   :  { %2166 = vadd.xlane.f32.xlu2 %v5860_v7 }
 0xc8b   :  { %3819 = vpow2.f32 %v2136_v1  ;;  %2329 = vmatpush.msrb.mxu0 %v3532_v45 }
 0xc8d   :  { %v3818_v16 = vpop.eup %3817  ;;  %2330 = vmatpush.msrb.mxu0 %v3531_v5 }
 0xc8e   :  { %v2091_v56 = vpop.xlane.xlu2 %2090  ;;  %v2157_v24 = vpop.xlane.xlu1 %2156  ;;  %v2196_v59 = vmul.f32 %v3818_v16, %v5802_v10  ;;  %v3530_v10 = vld [vmem:[%s6814_s7 + $0x130] sm:$0xff] }
 0xc8f   :  { %v2108_v49 = vsub.f32 %v5809_v23, %v2091_v56  ;;  %3821 = vrcp.f32 %v2157_v24  ;;  %v3529_v23 = vld [vmem:[%s6814_s7 + $0x128] sm:$0xff]  ;;  %2331 = vmatpush.msrb.mxu0 %v3530_v10  ;;  %v3550_v10 = vld [vmem:[%s6816_s9 + $0x150] sm:$0xff] }
 0xc90   :  { %2240 = vmatmul.f32.gmra.mxu3 %v2196_v59  ;;  %v3552_v59 = vld [vmem:[%s6816_s9 + $0x160] sm:$0xff] }
 0xc91   :  { %v5877_v42 = vpop.eup %3819  ;;  %v2138_v44 = vmul.f32 1.442695, %v2108_v49  ;;  %2332 = vmatpush.msrb.mxu0 %v3529_v23 }
 0xc92   :  { %2168 = vadd.xlane.f32.xlu0 %v5877_v42 }
 0xc93   :  { %3823 = vpow2.f32 %v2138_v44  ;;  %2333 = vmatpush.msrb.mxu0 %v3528_v25  ;;  %v3551_v44 = vld [vmem:[%s6816_s9 + $0x158] sm:$0xff] }
 0xc94   :  { %v3547_v25 = vld [vmem:[%s6816_s9 + $0x138] sm:$0xff] }
 0xc95   :  { %v3822_v53 = vpop.eup %3821 }
 0xc96   :  { %v2093_v26 = vpop.xlane.xlu1 %2092  ;;  %v2197_v55 = vmul.f32 %v3822_v53, %v5811_v60  ;;  %v3527_v60 = vld [vmem:[%s6814_s7 + $0x118] sm:$0xff] }
 0xc97   :  { %v2109_v27 = vsub.f32 %v5818_v19, %v2093_v26  ;;  %2334 = vmatpush.msrb.mxu0 %v3527_v60  ;;  %v3526_v19 = vld [vmem:[%s6814_s7 + $0x110] sm:$0xff]  ;;  %v3548_v26 = vld [vmem:[%s6816_s9 + $0x140] sm:$0xff] }
 0xc98   :  { %2243 = vmatmul.f32.gmra.mxu3 %v2197_v55  ;;  %v3546_v60 = vld [vmem:[%s6816_s9 + $0x130] sm:$0xff] }
 0xc99   :  { %v5888_v57 = vpop.eup %3823  ;;  %v2140_v50 = vmul.f32 1.442695, %v2109_v27  ;;  %2335 = vmatpush.msrb.mxu0 %v3526_v19 }
 0xc9a   :  { %2170 = vadd.xlane.f32.xlu1 %v5888_v57 }
 0xc9b   :  { %3825 = vpow2.f32 %v2140_v50  ;;  %2336 = vmatpush.msrb.mxu0 %v3525_v30 }
 0xc9d   :  { %2337 = vmatpush.msrb.mxu0 %v3524_v31  ;;  %v3544_v31 = vld [vmem:[%s6816_s9 + $0x120] sm:$0xff] }
 0xca1   :  { %v5891_v14 = vpop.eup %3825 }
 0xca2   :  { %2172 = vadd.xlane.f32.xlu2 %v5891_v14 }
 0xcdd   :  { %v2159_v22 = vpop.xlane.xlu0 %2158 }
 0xcde   :  { %3827 = vrcp.f32 %v2159_v22 }
 0xce3   :  { %v2223_v34 = vpop.f32.mrf.mxu3 }
 0xce4   :  { %v3828_v43 = vpop.eup %3827  ;;  %v2271_v38 = vmax.f32 %v2223_v34, 0.0 }
 0xce5   :  { %v2161_v35 = vpop.xlane.xlu2 %2160  ;;  %v2198_v3 = vmul.f32 %v3828_v43, %v5825_v28 }
 0xce6   :  { %v5911_v62 = vadd.f32 %v2271_v38, %v5538_v15  ;;  %3829 = vrcp.f32 %v2161_v35  ;;  %v3543_v38 = vld [vmem:[%s6816_s9 + $0x118] sm:$0xff] }
 0xce7   :  { %2246 = vmatmul.f32.gmra.mxu3 %v2198_v3 }
 0xce8   :  { %2338 = vmatmul.f32.vlgmr.msrb.gmra.mxu0 %v5911_v62 }
 0xceb   :  { %v2226_v58 = vpop.f32.mrf.mxu3 }
 0xcec   :  { %v3830_v46 = vpop.eup %3829  ;;  %v2272_v17 = vmax.f32 %v2226_v58, 0.0 }
 0xced   :  { %v2163_v4 = vpop.xlane.xlu0 %2162  ;;  %v2199_v47 = vmul.f32 %v3830_v46, %v5830_v41 }
 0xcee   :  { %v5916_v21 = vadd.f32 %v2272_v17, %v5546_v6  ;;  %3831 = vrcp.f32 %v2163_v4  ;;  %v3541_v17 = vld [vmem:[%s6816_s9 + $0x108] sm:$0xff] }
 0xcef   :  { %2249 = vmatmul.f32.gmra.mxu3 %v2199_v47 }
 0xcf0   :  { %2341 = vmatmul.f32.gmra.mxu0 %v5916_v21 }
 0xcf3   :  { %v2229_v28 = vpop.f32.mrf.mxu3 }
 0xcf4   :  { %v3832_v15 = vpop.eup %3831  ;;  %v2273_v29 = vmax.f32 %v2229_v28, 0.0 }
 0xcf5   :  { %v2165_v13 = vpop.xlane.xlu1 %2164  ;;  %v2200_v20 = vmul.f32 %v3832_v15, %v5835_v33  ;;  %v3554_v33 = vld [vmem:[%s6816_s9 + $0x170] sm:$0xff] }
 0xcf6   :  { %v5921_v40 = vadd.f32 %v2273_v29, %v5554_v63  ;;  %3833 = vrcp.f32 %v2165_v13  ;;  %v3555_v63 = vld [vmem:[%s6816_s9 + $0x178] sm:$0xff] }
 0xcf7   :  { %2252 = vmatmul.f32.gmra.mxu3 %v2200_v20  ;;  %2422 = vmatpush.msrb.mxu1 %v3555_v63 }
 0xcf8   :  { %2344 = vmatmul.f32.gmra.mxu0 %v5921_v40 }
 0xcf9   :  { %2423 = vmatpush.msrb.mxu1 %v3554_v33 }
 0xcfb   :  { %v2232_v41 = vpop.f32.mrf.mxu3 }
 0xcfc   :  { %v3834_v6 = vpop.eup %3833  ;;  %v2274_v1 = vmax.f32 %v2232_v41, 0.0 }
 0xcfd   :  { %v2167_v12 = vpop.xlane.xlu2 %2166  ;;  %v2201_v2 = vmul.f32 %v3834_v6, %v5840_v18  ;;  %v3553_v18 = vld [vmem:[%s6816_s9 + $0x168] sm:$0xff] }
 0xcfe   :  { %v5926_v16 = vadd.f32 %v2274_v1, %v5562_v48  ;;  %3835 = vrcp.f32 %v2167_v12  ;;  %2424 = vmatpush.msrb.mxu1 %v3553_v18 }
 0xcff   :  { %2255 = vmatmul.f32.gmra.mxu3 %v2201_v2 }
 0xd00   :  { %2347 = vmatmul.f32.gmra.mxu0 %v5926_v16  ;;  %2425 = vmatpush.msrb.mxu1 %v3552_v59 }
 0xd02   :  { %2426 = vmatpush.msrb.mxu1 %v3551_v44 }
 0xd03   :  { %v2235_v56 = vpop.f32.mrf.mxu3 }
 0xd04   :  { %v3836_v48 = vpop.eup %3835  ;;  %v2275_v24 = vmax.f32 %v2235_v56, 0.0  ;;  %2427 = vmatpush.msrb.mxu1 %v3550_v10 }
 0xd05   :  { %v2169_v45 = vpop.xlane.xlu0 %2168  ;;  %v2202_v49 = vmul.f32 %v3836_v48, %v5860_v7  ;;  %v3549_v7 = vld [vmem:[%s6816_s9 + $0x148] sm:$0xff] }
 0xd06   :  { %v5943_v5 = vadd.f32 %v2275_v24, %v5570_v8  ;;  %3837 = vrcp.f32 %v2169_v45  ;;  %2428 = vmatpush.msrb.mxu1 %v3549_v7 }
 0xd07   :  { %2258 = vmatmul.f32.gmra.mxu3 %v2202_v49 }
 0xd08   :  { %2350 = vmatmul.f32.gmra.mxu0 %v5943_v5  ;;  %2429 = vmatpush.msrb.mxu1 %v3548_v26  ;;  %v3599_v26 = vld [vmem:[%s6811_s5 + $0x5d8] sm:$0xff] }
 0xd0a   :  { %2430 = vmatpush.msrb.mxu1 %v3547_v25 }
 0xd0b   :  { %v2238_v8 = vpop.f32.mrf.mxu3 }
 0xd0c   :  { %v3838_v23 = vpop.eup %3837  ;;  %v2276_v53 = vmax.f32 %v2238_v8, 0.0  ;;  %2431 = vmatpush.msrb.mxu1 %v3546_v60  ;;  %v3602_v8 = vld [vmem:[%s6811_s5 + $0x5f0] sm:$0xff]  ;;  %v3596_v60 = vld [vmem:[%s6811_s5 + $0x5c0] sm:$0xff] }
 0xd0d   :  { %v2171_v55 = vpop.xlane.xlu1 %2170  ;;  %v2203_v27 = vmul.f32 %v3838_v23, %v5877_v42  ;;  %v3545_v42 = vld [vmem:[%s6816_s9 + $0x128] sm:$0xff]  ;;  %v3603_v23 = vld [vmem:[%s6811_s5 + $0x5f8] sm:$0xff]  ;;  %2642 = vmatpush.msra.mxu3 %v3602_v8 }
 0xd0e   :  { %v5960_v50 = vadd.f32 %v2276_v53, %v5578_v9  ;;  %3839 = vrcp.f32 %v2171_v55  ;;  %2432 = vmatpush.msrb.mxu1 %v3545_v42  ;;  %v3600_v55 = vld [vmem:[%s6811_s5 + $0x5e0] sm:$0xff]  ;;  %2707 = vmatpush.msra.mxu0 %v3603_v23  ;;  %v3597_v42 = vld [vmem:[%s6811_s5 + $0x5c8] sm:$0xff] }
 0xd0f   :  { %2261 = vmatmul.f32.gmra.mxu3 %v2203_v27  ;;  %v3595_v27 = vld [vmem:[%s6811_s5 + $0x5b8] sm:$0xff]  ;;  %v3573_v8 = vld [vmem:[%s6811_s5 + $0x508] sm:$0xff] }
 0xd10   :  { %2353 = vmatmul.f32.gmra.mxu0 %v5960_v50  ;;  %2433 = vmatpush.msrb.mxu1 %v3544_v31  ;;  %v3569_v23 = vld [vmem:[%s6811_s5 + $0x4e8] sm:$0xff] }
 0xd11   :  { %2643 = vmatpush.msra.mxu3 %v3599_v26  ;;  %2708 = vmatpush.msra.mxu0 %v3600_v55 }
 0xd12   :  { %2434 = vmatpush.msrb.mxu1 %v3543_v38  ;;  %v3589_v38 = vld [vmem:[%s6811_s5 + $0x588] sm:$0xff] }
 0xd13   :  { %v2241_v9 = vpop.f32.mrf.mxu3  ;;  %2644 = vmatpush.msra.mxu3 %v3596_v60  ;;  %2709 = vmatpush.msra.mxu0 %v3597_v42  ;;  %v3566_v60 = vld [vmem:[%s6811_s5 + $0x4d0] sm:$0xff]  ;;  %v3567_v42 = vld [vmem:[%s6811_s5 + $0x4d8] sm:$0xff] }
 0xd14   :  { %v3840_v19 = vpop.eup %3839  ;;  %v2277_v30 = vmax.f32 %v2241_v9, 0.0 }
 0xd15   :  { %v2173_v22 = vpop.xlane.xlu2 %2172  ;;  %v2204_v34 = vmul.f32 %v3840_v19, %v5888_v57  ;;  %v3592_v19 = vld [vmem:[%s6811_s5 + $0x5a0] sm:$0xff] }
 0xd16   :  { %v5977_v43 = vadd.f32 %v2277_v30, %v5586_v0  ;;  %3841 = vrcp.f32 %v2173_v22  ;;  %v3542_v0 = vld [vmem:[%s6816_s9 + $0x110] sm:$0xff]  ;;  %v3593_v30 = vld [vmem:[%s6811_s5 + $0x5a8] sm:$0xff] }
 0xd17   :  { %2264 = vmatmul.f32.gmra.mxu3 %v2204_v34  ;;  %2435 = vmatpush.msrb.mxu1 %v3542_v0  ;;  %v3594_v34 = vld [vmem:[%s6811_s5 + $0x5b0] sm:$0xff]  ;;  %v3587_v0 = vld [vmem:[%s6811_s5 + $0x578] sm:$0xff] }
 0xd18   :  { %2356 = vmatmul.f32.gmra.mxu0 %v5977_v43  ;;  %2645 = vmatpush.msra.mxu3 %v3593_v30  ;;  %v3559_v30 = vld [vmem:[%s6811_s5 + $0x498] sm:$0xff] }
 0xd19   :  { %2436 = vmatpush.msrb.mxu1 %v3541_v17  ;;  %2710 = vmatpush.msra.mxu0 %v3594_v34  ;;  %v3588_v17 = vld [vmem:[%s6811_s5 + $0x580] sm:$0xff]  ;;  %v3561_v34 = vld [vmem:[%s6811_s5 + $0x4a8] sm:$0xff] }
 0xd1b   :  { %v2244_v35 = vpop.f32.mrf.mxu3 }
 0xd1c   :  { %v3842_v3 = vpop.eup %3841  ;;  %v2278_v58 = vmax.f32 %v2244_v35, 0.0 }
 0xd1d   :  { %v2205_v46 = vmul.f32 %v3842_v3, %v5891_v14  ;;  %v3540_v14 = vld [vmem:[%s6816_s9 + $0x100] sm:$0xff]  ;;  %v3590_v3 = vld [vmem:[%s6811_s5 + $0x590] sm:$0xff] }
 0xd1e   :  { %v5985_v57 = vadd.f32 %v2278_v58, %v5594_v32  ;;  %2437 = vmatpush.msrb.mxu1 %v3540_v14  ;;  %v6000_v32 = vld [vmem:[%s6815_s8 + $0x2] ss:$0 sm:$0xff]  ;;  %2646 = vmatpush.msra.mxu3 %v3590_v3  ;;  %v3558_v3 = vld [vmem:[%s6811_s5 + $0x490] sm:$0xff] }
 0xd1f   :  { %2267 = vmatmul.f32.gmra.mxu3 %v2205_v46  ;;  %v3586_v46 = vld [vmem:[%s6811_s5 + $0x570] sm:$0xff] }
 0xd20   :  { %2359 = vmatmul.f32.gmra.mxu0 %v5985_v57  ;;  %2647 = vmatpush.msra.mxu3 %v3587_v0 }
 0xd65   :  { %v2339_v4 = vpop.f32.mrf.mxu0 }
 0xd66   :  { %v2340_v47 = vadd.f32 %v6000_v32, %v2339_v4  ;;  %v3583_v4 = vld [vmem:[%s6811_s5 + $0x558] sm:$0xff] }
 0xd68   :  { %v2387_v28 = vmax.f32 %v2340_v47, 0.0  ;;  %v3584_v47 = vld [vmem:[%s6811_s5 + $0x560] sm:$0xff] }
 0xd69   :  { %2648 = vmatpush.msra.mxu3 %v3584_v47 }
 0xd6a   :  { %v2247_v15 = vpop.f32.mrf.mxu3  ;;  %2438 = vmatmul.f32.vlgmr.msrb.gmra.mxu1 %v2387_v28 }
 0xd6b   :  { %v2279_v29 = vmax.f32 %v2247_v15, 0.0  ;;  %v3585_v15 = vld [vmem:[%s6811_s5 + $0x568] sm:$0xff] }
 0xd6d   :  { %v6004_v13 = vadd.f32 %v2279_v29, %v5601_v11  ;;  %v2342_v20 = vpop.f32.mrf.mxu0  ;;  %v3580_v29 = vld [vmem:[%s6811_s5 + $0x540] sm:$0xff] }
 0xd6e   :  { %v2343_v41 = vadd.f32 %v6000_v32, %v2342_v20 }
 0xd6f   :  { %2362 = vmatmul.f32.gmra.mxu0 %v6004_v13 }
 0xd70   :  { %v2388_v6 = vmax.f32 %v2343_v41, 0.0 }
 0xd72   :  { %v2250_v1 = vpop.f32.mrf.mxu3  ;;  %2441 = vmatmul.f32.gmra.mxu1 %v2388_v6  ;;  %v3581_v6 = vld [vmem:[%s6811_s5 + $0x548] sm:$0xff] }
 0xd73   :  { %v2280_v12 = vmax.f32 %v2250_v1, 0.0  ;;  %v3582_v1 = vld [vmem:[%s6811_s5 + $0x550] sm:$0xff]  ;;  %2649 = vmatpush.msra.mxu3 %v3581_v6 }
 0xd75   :  { %v6009_v2 = vadd.f32 %v2280_v12, %v5608_v39  ;;  %v2345_v63 = vpop.f32.mrf.mxu0 }
 0xd76   :  { %v2346_v33 = vadd.f32 %v6000_v32, %v2345_v63  ;;  %v3577_v63 = vld [vmem:[%s6811_s5 + $0x528] sm:$0xff] }
 0xd77   :  { %2365 = vmatmul.f32.gmra.mxu0 %v6009_v2 }
 0xd78   :  { %v2389_v18 = vmax.f32 %v2346_v33, 0.0 }
 0xd7a   :  { %v2253_v11 = vpop.f32.mrf.mxu3  ;;  %2444 = vmatmul.f32.gmra.mxu1 %v2389_v18  ;;  %v3579_v18 = vld [vmem:[%s6811_s5 + $0x538] sm:$0xff] }
 0xd7b   :  { %v2281_v56 = vmax.f32 %v2253_v11, 0.0  ;;  %v3574_v11 = vld [vmem:[%s6811_s5 + $0x510] sm:$0xff] }
 0xd7d   :  { %v6014_v48 = vadd.f32 %v2281_v56, %v5615_v52  ;;  %v2348_v24 = vpop.f32.mrf.mxu0  ;;  %v3601_v52 = vld [vmem:[%s6811_s5 + $0x5e8] sm:$0xff]  ;;  %v3575_v56 = vld [vmem:[%s6811_s5 + $0x518] sm:$0xff] }
 0xd7e   :  { %v2349_v59 = vadd.f32 %v6000_v32, %v2348_v24  ;;  %2577 = vmatpush.msrb.mxu2 %v3601_v52 }
 0xd7f   :  { %2368 = vmatmul.f32.gmra.mxu0 %v6014_v48 }
 0xd80   :  { %v2390_v45 = vmax.f32 %v2349_v59, 0.0  ;;  %v3576_v59 = vld [vmem:[%s6811_s5 + $0x520] sm:$0xff] }
 0xd82   :  { %v2256_v39 = vpop.f32.mrf.mxu3  ;;  %2447 = vmatmul.f32.gmra.mxu1 %v2390_v45  ;;  %v3571_v45 = vld [vmem:[%s6811_s5 + $0x4f8] sm:$0xff] }
 0xd83   :  { %v2282_v49 = vmax.f32 %v2256_v39, 0.0 }
 0xd85   :  { %v6019_v44 = vadd.f32 %v2282_v49, %v5622_v61  ;;  %v2351_v10 = vpop.f32.mrf.mxu0  ;;  %v3598_v61 = vld [vmem:[%s6811_s5 + $0x5d0] sm:$0xff]  ;;  %v3572_v49 = vld [vmem:[%s6811_s5 + $0x500] sm:$0xff] }
 0xd86   :  { %v2352_v7 = vadd.f32 %v6000_v32, %v2351_v10  ;;  %2578 = vmatpush.msrb.mxu2 %v3598_v61  ;;  %v3568_v10 = vld [vmem:[%s6811_s5 + $0x4e0] sm:$0xff] }
 0xd87   :  { %2371 = vmatmul.f32.gmra.mxu0 %v6019_v44 }
 0xd88   :  { %v2391_v53 = vmax.f32 %v2352_v7, 0.0  ;;  %2579 = vmatpush.msrb.mxu2 %v3595_v27 }
 0xd8a   :  { %v2259_v25 = vpop.f32.mrf.mxu3  ;;  %2450 = vmatmul.f32.gmra.mxu1 %v2391_v53  ;;  %2580 = vmatpush.msrb.mxu2 %v3592_v19  ;;  %v3564_v19 = vld [vmem:[%s6811_s5 + $0x4c0] sm:$0xff] }
 0xd8b   :  { %v2283_v9 = vmax.f32 %v2259_v25, 0.0  ;;  %v3565_v25 = vld [vmem:[%s6811_s5 + $0x4c8] sm:$0xff] }
 0xd8c   :  { %2581 = vmatpush.msrb.mxu2 %v3589_v38  ;;  %v3556_v38 = vld [vmem:[%s6811_s5 + $0x480] sm:$0xff] }
 0xd8d   :  { %v6057_v31 = vadd.f32 %v2283_v9, %v5629_v37  ;;  %v2354_v22 = vpop.f32.mrf.mxu0  ;;  %v3591_v37 = vld [vmem:[%s6811_s5 + $0x598] sm:$0xff] }
 0xd8e   :  { %v2355_v35 = vadd.f32 %v6000_v32, %v2354_v22  ;;  %2711 = vmatpush.msra.mxu0 %v3591_v37  ;;  %2582 = vmatpush.msrb.mxu2 %v3586_v46  ;;  %v3563_v9 = vld [vmem:[%s6811_s5 + $0x4b8] sm:$0xff]  ;;  %v3560_v22 = vld [vmem:[%s6811_s5 + $0x4a0] sm:$0xff] }
 0xd8f   :  { %2374 = vmatmul.f32.gmra.mxu0 %v6057_v31  ;;  %v6189_v37 = vld [vmem:[%s6817_s10 + $0x2] ss:$0 sm:$0xff] }
 0xd90   :  { %v2392_v58 = vmax.f32 %v2355_v35, 0.0  ;;  %2712 = vmatpush.msra.mxu0 %v3588_v17  ;;  %2583 = vmatpush.msrb.mxu2 %v3583_v4  ;;  %v3557_v35 = vld [vmem:[%s6811_s5 + $0x488] sm:$0xff] }
 0xd92   :  { %v2262_v14 = vpop.f32.mrf.mxu3  ;;  %2453 = vmatmul.f32.gmra.mxu1 %v2392_v58  ;;  %2713 = vmatpush.msra.mxu0 %v3585_v15 }
 0xd93   :  { %v2284_v28 = vmax.f32 %v2262_v14, 0.0  ;;  %2584 = vmatpush.msrb.mxu2 %v3580_v29 }
 0xd94   :  { %2714 = vmatpush.msra.mxu0 %v3582_v1 }
 0xd95   :  { %v6095_v20 = vadd.f32 %v2284_v28, %v5636_v36  ;;  %v2357_v41 = vpop.f32.mrf.mxu0  ;;  %v3578_v36 = vld [vmem:[%s6811_s5 + $0x530] sm:$0xff]  ;;  %2585 = vmatpush.msrb.mxu2 %v3577_v63 }
 0xd96   :  { %v2358_v12 = vadd.f32 %v6000_v32, %v2357_v41  ;;  %2650 = vmatpush.msra.mxu3 %v3578_v36  ;;  %2715 = vmatpush.msra.mxu0 %v3579_v18 }
 0xd97   :  { %2377 = vmatmul.f32.gmra.mxu0 %v6095_v20  ;;  %2586 = vmatpush.msrb.mxu2 %v3574_v11 }
 0xd98   :  { %v2393_v33 = vmax.f32 %v2358_v12, 0.0  ;;  %2651 = vmatpush.msra.mxu3 %v3575_v56  ;;  %2716 = vmatpush.msra.mxu0 %v3576_v59 }
 0xd99   :  { %2587 = vmatpush.msrb.mxu2 %v3571_v45 }
 0xd9a   :  { %v2265_v24 = vpop.f32.mrf.mxu3  ;;  %2456 = vmatmul.f32.gmra.mxu1 %v2393_v33  ;;  %2652 = vmatpush.msra.mxu3 %v3572_v49 }
 0xd9b   :  { %v2285_v39 = vmax.f32 %v2265_v24, 0.0  ;;  %2588 = vmatpush.msrb.mxu2 %v3568_v10  ;;  %2717 = vmatpush.msra.mxu0 %v3573_v8 }
 0xd9c   :  { %2653 = vmatpush.msra.mxu3 %v3569_v23 }
 0xd9d   :  { %v6133_v7 = vadd.f32 %v2285_v39, %v5643_v51  ;;  %v2360_v52 = vpop.f32.mrf.mxu0  ;;  %v3570_v51 = vld [vmem:[%s6811_s5 + $0x4f0] sm:$0xff]  ;;  %2589 = vmatpush.msrb.mxu2 %v3565_v25 }
 0xd9e   :  { %v2361_v53 = vadd.f32 %v6000_v32, %v2360_v52  ;;  %2718 = vmatpush.msra.mxu0 %v3570_v51  ;;  %2654 = vmatpush.msra.mxu3 %v3566_v60 }
 0xd9f   :  { %2380 = vmatmul.f32.gmra.mxu0 %v6133_v7 }
 0xda0   :  { %v2394_v61 = vmax.f32 %v2361_v53, 0.0  ;;  %2719 = vmatpush.msra.mxu0 %v3567_v42  ;;  %2655 = vmatpush.msra.mxu3 %v3563_v9 }
 0xda2   :  { %v2268_v26 = vpop.f32.mrf.mxu3  ;;  %2459 = vmatmul.f32.gmra.mxu1 %v2394_v61  ;;  %2720 = vmatpush.msra.mxu0 %v3564_v19 }
 0xda3   :  { %v2286_v55 = vmax.f32 %v2268_v26, 0.0  ;;  %2656 = vmatpush.msra.mxu3 %v3560_v22 }
 0xda4   :  { %2721 = vmatpush.msra.mxu0 %v3561_v34 }
 0xda5   :  { %v6147_v27 = vadd.f32 %v2286_v55, %v5654_v54  ;;  %v3562_v54 = vld [vmem:[%s6811_s5 + $0x4b0] sm:$0xff]  ;;  %2657 = vmatpush.msra.mxu3 %v3557_v35 }
 0xda6   :  { %2590 = vmatpush.msrb.mxu2 %v3562_v54  ;;  %2722 = vmatpush.msra.mxu0 %v3558_v3 }
 0xda7   :  { %2383 = vmatmul.f32.gmra.mxu0 %v6147_v27 }
 0xda8   :  { %2591 = vmatpush.msrb.mxu2 %v3559_v30 }
 0xdaa   :  { %2592 = vmatpush.msrb.mxu2 %v3556_v38 }
 0xde7   :  { %v2439_v58 = vpop.f32.mrf.mxu1 }
 0xde8   :  { %v2440_v46 = vadd.f32 %v6189_v37, %v2439_v58 }
 0xdea   :  { %v2487_v0 = vmax.f32 %v2440_v46, 0.0 }
 0xdec   :  { %v6193_v17 = vadd.f32 %v2487_v0, %v5911_v62  ;;  %v2363_v14 = vpop.f32.mrf.mxu0 }
 0xded   :  { %v2364_v4 = vadd.f32 %v6000_v32, %v2363_v14 }
 0xdee   :  { %2593 = vmatmul.f32.vlgmr.msrb.gmra.mxu2 %v6193_v17  ;;  %2658 = vmatmul.f32.vlgmr.msra.gmra.mxu3 %v6193_v17 }
 0xdef   :  { %v2395_v47 = vmax.f32 %v2364_v4, 0.0  ;;  %2723 = vmatmul.f32.vlgmr.msra.gmra.mxu0 %v6193_v17  ;;  %v2442_v28 = vpop.f32.mrf.mxu1 }
 0xdf0   :  { %v2443_v15 = vadd.f32 %v6189_v37, %v2442_v28 }
 0xdf1   :  { %2462 = vmatmul.f32.gmra.mxu1 %v2395_v47 }
 0xdf2   :  { %v2488_v29 = vmax.f32 %v2443_v15, 0.0 }
 0xdf4   :  { %v6201_v41 = vadd.f32 %v2488_v29, %v5916_v21  ;;  %v2366_v62 = vpop.f32.mrf.mxu0 }
 0xdf5   :  { %v2367_v6 = vadd.f32 %v6000_v32, %v2366_v62 }
 0xdf6   :  { %2596 = vmatmul.f32.gmra.mxu2 %v6201_v41  ;;  %2661 = vmatmul.f32.gmra.mxu3 %v6201_v41 }
 0xdf7   :  { %v2396_v1 = vmax.f32 %v2367_v6, 0.0  ;;  %2726 = vmatmul.f32.gmra.mxu0 %v6201_v41  ;;  %v2445_v12 = vpop.f32.mrf.mxu1 }
 0xdf8   :  { %v2446_v63 = vadd.f32 %v6189_v37, %v2445_v12 }
 0xdf9   :  { %2465 = vmatmul.f32.gmra.mxu1 %v2396_v1 }
 0xdfa   :  { %v2489_v36 = vmax.f32 %v2446_v63, 0.0 }
 0xdfc   :  { %v6209_v33 = vadd.f32 %v2489_v36, %v5921_v40  ;;  %v2369_v21 = vpop.f32.mrf.mxu0 }
 0xdfd   :  { %v2370_v18 = vadd.f32 %v6000_v32, %v2369_v21 }
 0xdfe   :  { %2599 = vmatmul.f32.gmra.mxu2 %v6209_v33  ;;  %2664 = vmatmul.f32.gmra.mxu3 %v6209_v33 }
 0xdff   :  { %v2397_v11 = vmax.f32 %v2370_v18, 0.0  ;;  %2729 = vmatmul.f32.gmra.mxu0 %v6209_v33  ;;  %v2448_v56 = vpop.f32.mrf.mxu1 }
 0xe00   :  { %v2449_v24 = vadd.f32 %v6189_v37, %v2448_v56 }
 0xe01   :  { %2468 = vmatmul.f32.gmra.mxu1 %v2397_v11 }
 0xe02   :  { %v2490_v59 = vmax.f32 %v2449_v24, 0.0 }
 0xe04   :  { %v6217_v45 = vadd.f32 %v2490_v59, %v5926_v16  ;;  %v2372_v40 = vpop.f32.mrf.mxu0 }
 0xe05   :  { %v2373_v39 = vadd.f32 %v6000_v32, %v2372_v40 }
 0xe06   :  { %2602 = vmatmul.f32.gmra.mxu2 %v6217_v45  ;;  %2667 = vmatmul.f32.gmra.mxu3 %v6217_v45 }
 0xe07   :  { %v2398_v49 = vmax.f32 %v2373_v39, 0.0  ;;  %2732 = vmatmul.f32.gmra.mxu0 %v6217_v45  ;;  %v2451_v10 = vpop.f32.mrf.mxu1 }
 0xe08   :  { %v2452_v52 = vadd.f32 %v6189_v37, %v2451_v10 }
 0xe09   :  { %2471 = vmatmul.f32.gmra.mxu1 %v2398_v49 }
 0xe0a   :  { %v2491_v8 = vmax.f32 %v2452_v52, 0.0 }
 0xe0c   :  { %v6225_v23 = vadd.f32 %v2491_v8, %v5943_v5  ;;  %v2375_v16 = vpop.f32.mrf.mxu0 }
 0xe0d   :  { %v2376_v53 = vadd.f32 %v6000_v32, %v2375_v16 }
 0xe0e   :  { %2605 = vmatmul.f32.gmra.mxu2 %v6225_v23  ;;  %2670 = vmatmul.f32.gmra.mxu3 %v6225_v23 }
 0xe0f   :  { %v2399_v51 = vmax.f32 %v2376_v53, 0.0  ;;  %2735 = vmatmul.f32.gmra.mxu0 %v6225_v23  ;;  %v2454_v61 = vpop.f32.mrf.mxu1 }
 0xe10   :  { %v2455_v26 = vadd.f32 %v6189_v37, %v2454_v61 }
 0xe11   :  { %2474 = vmatmul.f32.gmra.mxu1 %v2399_v51 }
 0xe12   :  { %v2492_v55 = vmax.f32 %v2455_v26, 0.0 }
 0xe14   :  { %v6233_v25 = vadd.f32 %v2492_v55, %v5960_v50  ;;  %v2378_v5 = vpop.f32.mrf.mxu0 }
 0xe15   :  { %v2379_v60 = vadd.f32 %v6000_v32, %v2378_v5 }
 0xe16   :  { %2608 = vmatmul.f32.gmra.mxu2 %v6233_v25  ;;  %2673 = vmatmul.f32.gmra.mxu3 %v6233_v25 }
 0xe17   :  { %v2400_v42 = vmax.f32 %v2379_v60, 0.0  ;;  %2738 = vmatmul.f32.gmra.mxu0 %v6233_v25  ;;  %v2457_v54 = vpop.f32.mrf.mxu1 }
 0xe18   :  { %v2458_v9 = vadd.f32 %v6189_v37, %v2457_v54 }
 0xe19   :  { %2477 = vmatmul.f32.gmra.mxu1 %v2400_v42 }
 0xe1a   :  { %v2493_v19 = vmax.f32 %v2458_v9, 0.0 }
 0xe1c   :  { %v6241_v30 = vadd.f32 %v2493_v19, %v5977_v43  ;;  %v2381_v50 = vpop.f32.mrf.mxu0 }
 0xe1d   :  { %v2382_v22 = vadd.f32 %v6000_v32, %v2381_v50 }
 0xe1e   :  { %2611 = vmatmul.f32.gmra.mxu2 %v6241_v30  ;;  %2676 = vmatmul.f32.gmra.mxu3 %v6241_v30 }
 0xe1f   :  { %v2401_v34 = vmax.f32 %v2382_v22, 0.0  ;;  %2741 = vmatmul.f32.gmra.mxu0 %v6241_v30  ;;  %v2460_v38 = vpop.f32.mrf.mxu1 }
 0xe20   :  { %v2461_v35 = vadd.f32 %v6189_v37, %v2460_v38 }
 0xe21   :  { %2480 = vmatmul.f32.gmra.mxu1 %v2401_v34 }
 0xe22   :  { %v2494_v3 = vmax.f32 %v2461_v35, 0.0 }
 0xe24   :  { %v6249_v58 = vadd.f32 %v2494_v3, %v5985_v57  ;;  %v2384_v43 = vpop.f32.mrf.mxu0 }
 0xe25   :  { %v2385_v46 = vadd.f32 %v6000_v32, %v2384_v43 }
 0xe26   :  { %2614 = vmatmul.f32.gmra.mxu2 %v6249_v58  ;;  %2679 = vmatmul.f32.gmra.mxu3 %v6249_v58 }
 0xe27   :  { %v2402_v0 = vmax.f32 %v2385_v46, 0.0  ;;  %2744 = vmatmul.f32.gmra.mxu0 %v6249_v58 }
 0xe29   :  { %2483 = vmatmul.f32.gmra.mxu1 %v2402_v0 }
 0xe6c   :  { %v6301_v10 = vpop.f32.mrf.mxu0 }
 0xe6e   :  { %v2463_v14 = vpop.f32.mrf.mxu1 }
 0xe6f   :  { %v2464_v4 = vadd.f32 %v6189_v37, %v2463_v14 }
 0xe71   :  { %v2495_v47 = vmax.f32 %v2464_v4, 0.0  ;;  %v6307_v16 = vpop.f32.mrf.mxu3 }
 0xe73   :  { %v6257_v28 = vadd.f32 %v2495_v47, %v6004_v13 }
 0xe75   :  { %2617 = vmatmul.f32.gmra.mxu2 %v6257_v28  ;;  %2682 = vmatmul.f32.gmra.mxu3 %v6257_v28 }
 0xe76   :  { %2747 = vmatmul.f32.gmra.mxu0 %v6257_v28  ;;  %v2466_v57 = vpop.f32.mrf.mxu1 }
 0xe77   :  { %v2467_v32 = vadd.f32 %v6189_v37, %v2466_v57 }
 0xe79   :  { %v2496_v15 = vmax.f32 %v2467_v32, 0.0  ;;  %v6317_v51 = vpop.f32.mrf.mxu3 }
 0xe7b   :  { %v6264_v29 = vadd.f32 %v2496_v15, %v6009_v2  ;;  %v6338_v15 = vld [vmem:[%s6812_s6 + $0x3] ss:$4 sm:$0x7] }
 0xe7d   :  { %2620 = vmatmul.f32.gmra.mxu2 %v6264_v29  ;;  %2685 = vmatmul.f32.gmra.mxu3 %v6264_v29 }
 0xe7e   :  { %2750 = vmatmul.f32.gmra.mxu0 %v6264_v29  ;;  %v2469_v13 = vpop.f32.mrf.mxu1 }
 0xe7f   :  { %v2470_v62 = vadd.f32 %v6189_v37, %v2469_v13 }
 0xe81   :  { %v2497_v6 = vmax.f32 %v2470_v62, 0.0  ;;  %v6321_v26 = vpop.f32.mrf.mxu3  ;;  %v2573_v62 = vperm.slane %v6338_v15, 2 }
 0xe83   :  { %v6271_v1 = vadd.f32 %v2497_v6, %v6014_v48 }
 0xe85   :  { %2623 = vmatmul.f32.gmra.mxu2 %v6271_v1  ;;  %2688 = vmatmul.f32.gmra.mxu3 %v6271_v1 }
 0xe86   :  { %2753 = vmatmul.f32.gmra.mxu0 %v6271_v1  ;;  %v2472_v2 = vpop.f32.mrf.mxu1 }
 0xe87   :  { %v2473_v12 = vadd.f32 %v6189_v37, %v2472_v2 }
 0xe89   :  { %v2498_v63 = vmax.f32 %v2473_v12, 0.0  ;;  %v6323_v55 = vpop.f32.mrf.mxu3 }
 0xe8b   :  { %v6278_v36 = vadd.f32 %v2498_v63, %v6019_v44  ;;  %v6342_v63 = vperm.slane %v6338_v15, 1 }
 0xe8d   :  { %2626 = vmatmul.f32.gmra.mxu2 %v6278_v36  ;;  %2691 = vmatmul.f32.gmra.mxu3 %v6278_v36 }
 0xe8e   :  { %2756 = vmatmul.f32.gmra.mxu0 %v6278_v36  ;;  %v2475_v48 = vpop.f32.mrf.mxu1 }
 0xe8f   :  { %v2476_v21 = vadd.f32 %v6189_v37, %v2475_v48 }
 0xe91   :  { %v2499_v18 = vmax.f32 %v2476_v21, 0.0 }
 0xe93   :  { %v6285_v11 = vadd.f32 %v2499_v18, %v6057_v31 }
 0xe95   :  { %2629 = vmatmul.f32.gmra.mxu2 %v6285_v11  ;;  %2694 = vmatmul.f32.gmra.mxu3 %v6285_v11 }
 0xe96   :  { %2759 = vmatmul.f32.gmra.mxu0 %v6285_v11  ;;  %v2478_v44 = vpop.f32.mrf.mxu1 }
 0xe97   :  { %v2479_v56 = vadd.f32 %v6189_v37, %v2478_v44 }
 0xe99   :  { %v2500_v24 = vmax.f32 %v2479_v56, 0.0 }
 0xe9b   :  { %v6292_v59 = vadd.f32 %v2500_v24, %v6095_v20 }
 0xe9d   :  { %2632 = vmatmul.f32.gmra.mxu2 %v6292_v59  ;;  %2697 = vmatmul.f32.gmra.mxu3 %v6292_v59 }
 0xe9e   :  { %2762 = vmatmul.f32.gmra.mxu0 %v6292_v59  ;;  %v2481_v31 = vpop.f32.mrf.mxu1 }
 0xe9f   :  { %v2482_v40 = vadd.f32 %v6189_v37, %v2481_v31 }
 0xea1   :  { %v2501_v39 = vmax.f32 %v2482_v40, 0.0 }
 0xea3   :  { %v6299_v49 = vadd.f32 %v2501_v39, %v6133_v7  ;;  %v6315_v7 = vpop.f32.mrf.mxu0 }
 0xea5   :  { %2635 = vmatmul.f32.gmra.mxu2 %v6299_v49  ;;  %2700 = vmatmul.f32.gmra.mxu3 %v6299_v49 }
 0xea6   :  { %2765 = vmatmul.f32.gmra.mxu0 %v6299_v49  ;;  %v2484_v20 = vpop.f32.mrf.mxu1 }
 0xea7   :  { %v2485_v52 = vadd.f32 %v6189_v37, %v2484_v20 }
 0xea9   :  { %v2502_v8 = vmax.f32 %v2485_v52, 0.0 }
 0xeab   :  { %v6310_v53 = vadd.f32 %v2502_v8, %v6147_v27  ;;  %v6319_v61 = vpop.f32.mrf.mxu0  ;;  %v6325_v27 = vpop.f32.mrf.mxu3 }
 0xead   :  { %2638 = vmatmul.f32.gmra.mxu2 %v6310_v53  ;;  %2703 = vmatmul.f32.gmra.mxu3 %v6310_v53 }
 0xeae   :  { %2768 = vmatmul.f32.gmra.mxu0 %v6310_v53 }
 0xeb3   :  { %v2733_v37 = vpop.f32.mrf.mxu0  ;;  %v6327_v42 = vpop.f32.mrf.mxu3 }
 0xebb   :  { %v2736_v5 = vpop.f32.mrf.mxu0  ;;  %v6329_v9 = vpop.f32.mrf.mxu3 }
 0xec3   :  { %v2739_v60 = vpop.f32.mrf.mxu0  ;;  %v6331_v50 = vpop.f32.mrf.mxu3 }
 0xecb   :  { %v2742_v54 = vpop.f32.mrf.mxu0 }
 0xed3   :  { %v2745_v19 = vpop.f32.mrf.mxu0 }
 0xed4   :  { %v2746_v52 = vadd.f32 %v2745_v19, %v2573_v62  ;;  %v2728_v19 = vadd.f32 %v6315_v7, %v2573_v62  ;;  %v2678_v7 = vadd.f32 %v6329_v9, %v6342_v63  ;;  %v2663_v9 = vadd.f32 %v6317_v51, %v6342_v63 }
 0xef3   :  { %v2748_v22 = vpop.f32.mrf.mxu0 }
 0xef4   :  { %v2749_v20 = vadd.f32 %v2748_v22, %v2573_v62 }
 0xef8   :  { %v6333_v34 = vpop.f32.mrf.mxu3 }
 0xefb   :  { %v2751_v38 = vpop.f32.mrf.mxu0 }
 0xefc   :  { %v2752_v40 = vadd.f32 %v2751_v38, %v2573_v62  ;;  %v2734_v38 = vadd.f32 %v2733_v37, %v2573_v62  ;;  %v2684_v37 = vadd.f32 %v6333_v34, %v6342_v63  ;;  %v2669_v34 = vadd.f32 %v6323_v55, %v6342_v63 }
 0xf00   :  { %v2686_v35 = vpop.f32.mrf.mxu3 }
 0xf03   :  { %v2754_v3 = vpop.f32.mrf.mxu0 }
 0xf04   :  { %v2755_v31 = vadd.f32 %v2754_v3, %v2573_v62 }
 0xf08   :  { %v2689_v43 = vpop.f32.mrf.mxu3 }
 0xf09   :  { %v2690_v22 = vadd.f32 %v2689_v43, %v6342_v63  ;;  %v2672_v43 = vadd.f32 %v6325_v27, %v6342_v63 }
 0xf0b   :  { %v2757_v46 = vpop.f32.mrf.mxu0 }
 0xf0c   :  { %v2758_v56 = vadd.f32 %v2757_v46, %v2573_v62  ;;  %v2740_v46 = vadd.f32 %v2739_v60, %v2573_v62  ;;  %v2725_v60 = vadd.f32 %v6301_v10, %v2573_v62 }
 0xf10   :  { %v2692_v0 = vpop.f32.mrf.mxu3 }
 0xf11   :  { %v2693_v3 = vadd.f32 %v2692_v0, %v6342_v63 }
 0xf13   :  { %v2760_v14 = vpop.f32.mrf.mxu0 }
 0xf14   :  { %v2761_v44 = vadd.f32 %v2760_v14, %v2573_v62  ;;  %v2743_v14 = vadd.f32 %v2742_v54, %v2573_v62  ;;  %v2687_v54 = vadd.f32 %v2686_v35, %v6342_v63  ;;  %v2675_v35 = vadd.f32 %v6327_v42, %v6342_v63 }
 0xf15   :  { %v2571_v42 = vperm.slane %v6338_v15, 0 }
 0xf18   :  { %v2695_v4 = vpop.f32.mrf.mxu3 }
 0xf19   :  { %v2696_v8 = vadd.f32 %v2695_v4, %v6342_v63  ;;  %v2660_v4 = vadd.f32 %v6307_v16, %v6342_v63 }
 0xf1b   :  { %v2763_v47 = vpop.f32.mrf.mxu0 }
 0xf1c   :  { %v2764_v48 = vadd.f32 %v2763_v47, %v2573_v62  ;;  %v2737_v47 = vadd.f32 %v2736_v5, %v2573_v62  ;;  %v2594_v5 = vpop.f32.mrf.mxu2 }
 0xf20   :  { %v2698_v57 = vpop.f32.mrf.mxu3 }
 0xf21   :  { %v2699_v39 = vadd.f32 %v2698_v57, %v6342_v63  ;;  %v2731_v57 = vadd.f32 %v6319_v61, %v2573_v62  ;;  %v2681_v61 = vadd.f32 %v6331_v50, %v6342_v63  ;;  %v2666_v50 = vadd.f32 %v6321_v26, %v6342_v63 }
 0xf23   :  { %v2766_v32 = vpop.f32.mrf.mxu0 }
 0xf24   :  { %v2767_v12 = vadd.f32 %v2766_v32, %v2573_v62  ;;  %v2597_v10 = vpop.f32.mrf.mxu2  ;;  %v2595_v32 = vadd.f32 %v2594_v5, %v2571_v42  ;;  %v3943_v5 = vld [vmem:[%s6813_s1 + $0x10] sm:$0xff] }
 0xf25   :  { %v2598_v55 = vadd.f32 %v2597_v10, %v2571_v42 }
 0xf28   :  { %v2701_v13 = vpop.f32.mrf.mxu3 }
 0xf29   :  { %v2702_v24 = vadd.f32 %v2701_v13, %v6342_v63 }
 0xf2b   :  { %v2769_v6 = vpop.f32.mrf.mxu0 }
 0xf2c   :  { %v2770_v2 = vadd.f32 %v2769_v6, %v2573_v62  ;;  %v2600_v0 = vpop.f32.mrf.mxu2 }
 0xf2d   :  { %v2601_v62 = vadd.f32 %v2600_v0, %v2571_v42 }
 0xf2e   :  { %2981 = vmatpush.msra.mxu2 %v2770_v2 }
 0xf30   :  { %2982 = vmatpush.msra.mxu2 %v2767_v12  ;;  %v2704_v21 = vpop.f32.mrf.mxu3 }
 0xf31   :  { %v2705_v18 = vadd.f32 %v2704_v21, %v6342_v63 }
 0xf32   :  { %2983 = vmatpush.msra.mxu2 %v2764_v48 }
 0xf33   :  { %2772 = vmatpush.xpose.msra.mxu1 %v2705_v18 }
 0xf34   :  { %2984 = vmatpush.msra.mxu2 %v2761_v44  ;;  %v2603_v27 = vpop.f32.mrf.mxu2 }
 0xf35   :  { %v2604_v6 = vadd.f32 %v2603_v27, %v2571_v42  ;;  %v3947_v27 = vld [vmem:[%s6813_s1 + $0x30] sm:$0xff] }
 0xf36   :  { %2985 = vmatpush.msra.mxu2 %v2758_v56 }
 0xf37   :  { %2773 = vmatpush.xpose.msra.mxu1 %v2702_v24 }
 0xf38   :  { %2986 = vmatpush.msra.mxu2 %v2755_v31 }
 0xf3a   :  { %2987 = vmatpush.msra.mxu2 %v2752_v40 }
 0xf3b   :  { %2774 = vmatpush.xpose.msra.mxu1 %v2699_v39 }
 0xf3c   :  { %2988 = vmatpush.msra.mxu2 %v2749_v20  ;;  %v2606_v13 = vpop.f32.mrf.mxu2 }
 0xf3d   :  { %v2607_v51 = vadd.f32 %v2606_v13, %v2571_v42  ;;  %v3948_v13 = vld [vmem:[%s6813_s1 + $0x38] sm:$0xff] }
 0xf3e   :  { %2989 = vmatpush.msra.mxu2 %v2746_v52 }
 0xf3f   :  { %2775 = vmatpush.xpose.msra.mxu1 %v2696_v8 }
 0xf40   :  { %2990 = vmatpush.msra.mxu2 %v2743_v14 }
 0xf42   :  { %2991 = vmatpush.msra.mxu2 %v2740_v46 }
 0xf43   :  { %2776 = vmatpush.xpose.msra.mxu1 %v2693_v3 }
 0xf44   :  { %2992 = vmatpush.msra.mxu2 %v2737_v47  ;;  %v2609_v26 = vpop.f32.mrf.mxu2 }
 0xf45   :  { %v2610_v15 = vadd.f32 %v2609_v26, %v2571_v42 }
 0xf46   :  { %2993 = vmatpush.msra.mxu2 %v2734_v38 }
 0xf47   :  { %2777 = vmatpush.xpose.msra.mxu1 %v2690_v22  ;;  %v3941_v22 = vld [vmem:[%s6813_s1] sm:$0xff] }
 0xf48   :  { %2994 = vmatpush.msra.mxu2 %v2731_v57 }
 0xf4a   :  { %2995 = vmatpush.msra.mxu2 %v2728_v19 }
 0xf4b   :  { %2778 = vmatpush.xpose.msra.mxu1 %v2687_v54  ;;  %v3942_v54 = vld [vmem:[%s6813_s1 + $0x8] sm:$0xff] }
 0xf4c   :  { %2996 = vmatpush.msra.mxu2 %v2725_v60  ;;  %v2612_v2 = vpop.f32.mrf.mxu2 }
 0xf4d   :  { %v2613_v16 = vadd.f32 %v2612_v2, %v2571_v42 }
 0xf4f   :  { %2779 = vmatpush.xpose.msra.mxu1 %v2684_v37 }
 0xf53   :  { %2780 = vmatpush.xpose.msra.mxu1 %v2681_v61 }
 0xf54   :  { %v2615_v12 = vpop.f32.mrf.mxu2 }
 0xf55   :  { %v2616_v63 = vadd.f32 %v2615_v12, %v2571_v42 }
 0xf57   :  { %2781 = vmatpush.xpose.msra.mxu1 %v2678_v7 }
 0xf5b   :  { %2782 = vmatpush.xpose.msra.mxu1 %v2675_v35  ;;  %v3944_v35 = vld [vmem:[%s6813_s1 + $0x18] sm:$0xff] }
 0xf5c   :  { %v2618_v48 = vpop.f32.mrf.mxu2 }
 0xf5d   :  { %v2619_v18 = vadd.f32 %v2618_v48, %v2571_v42 }
 0xf5f   :  { %2783 = vmatpush.xpose.msra.mxu1 %v2672_v43 }
 0xf63   :  { %2784 = vmatpush.xpose.msra.mxu1 %v2669_v34  ;;  %v3945_v34 = vld [vmem:[%s6813_s1 + $0x20] sm:$0xff] }
 0xf64   :  { %v2621_v21 = vpop.f32.mrf.mxu2 }
 0xf65   :  { %v2622_v56 = vadd.f32 %v2621_v21, %v2571_v42 }
 0xf67   :  { %2785 = vmatpush.xpose.msra.mxu1 %v2666_v50 }
 0xf6b   :  { %2786 = vmatpush.xpose.msra.mxu1 %v2663_v9  ;;  %v3946_v9 = vld [vmem:[%s6813_s1 + $0x28] sm:$0xff] }
 0xf6c   :  { %v2624_v44 = vpop.f32.mrf.mxu2 }
 0xf6d   :  { %v2625_v31 = vadd.f32 %v2624_v44, %v2571_v42  ;;  %v3949_v44 = vld [vmem:[%s6813_s1 + $0x40] sm:$0xff] }
 0xf6f   :  { %2787 = vmatpush.xpose.msra.mxu1 %v2660_v4 }
 0xf72   :  { %2788 = vmatmul.f32.vlgmr.msra.gmra.mxu1 %v2595_v32 }
 0xf74   :  { %v2627_v24 = vpop.f32.mrf.mxu2 }
 0xf75   :  { %v2628_v39 = vadd.f32 %v2627_v24, %v2571_v42 }
 0xf7a   :  { %2791 = vmatmul.f32.gmra.mxu1 %v2598_v55 }
 0xf7c   :  { %v2630_v40 = vpop.f32.mrf.mxu2 }
 0xf7d   :  { %v2631_v20 = vadd.f32 %v2630_v40, %v2571_v42 }
 0xf82   :  { %2794 = vmatmul.f32.gmra.mxu1 %v2601_v62 }
 0xf84   :  { %v2633_v52 = vpop.f32.mrf.mxu2 }
 0xf85   :  { %v2634_v8 = vadd.f32 %v2633_v52, %v2571_v42  ;;  %v3950_v52 = vld [vmem:[%s6813_s1 + $0x48] sm:$0xff] }
 0xf8a   :  { %2797 = vmatmul.f32.gmra.mxu1 %v2604_v6 }
 0xf8c   :  { %v2636_v14 = vpop.f32.mrf.mxu2 }
 0xf8d   :  { %v2637_v46 = vadd.f32 %v2636_v14, %v2571_v42 }
 0xf92   :  { %2800 = vmatmul.f32.gmra.mxu1 %v2607_v51 }
 0xf94   :  { %v2639_v3 = vpop.f32.mrf.mxu2 }
 0xf95   :  { %v2640_v47 = vadd.f32 %v2639_v3, %v2571_v42 }
 0xf9a   :  { %2803 = vmatmul.f32.gmra.mxu1 %v2610_v15 }
 0xfa2   :  { %2806 = vmatmul.f32.gmra.mxu1 %v2613_v16 }
 0xfaa   :  { %2809 = vmatmul.f32.gmra.mxu1 %v2616_v63 }
 0xfb2   :  { %2812 = vmatmul.f32.gmra.mxu1 %v2619_v18 }
 0xfba   :  { %2815 = vmatmul.f32.gmra.mxu1 %v2622_v56 }
 0xfc2   :  { %2818 = vmatmul.f32.gmra.mxu1 %v2625_v31 }
 0xfca   :  { %2821 = vmatmul.f32.gmra.mxu1 %v2628_v39 }
 0xfd2   :  { %2824 = vmatmul.f32.gmra.mxu1 %v2631_v20 }
 0xfda   :  { %2827 = vmatmul.f32.gmra.mxu1 %v2634_v8 }
 0xfe2   :  { %2830 = vmatmul.f32.gmra.mxu1 %v2637_v46 }
 0xfea   :  { %2833 = vmatmul.f32.gmra.mxu1 %v2640_v47 }
 0xfef   :  { %v2789_v38 = vpop.f32.mrf.mxu1 }
 0xff0   :  { %v2790_v57 = vadd.f32 %v3941_v22, %v2789_v38  ;;  %v3951_v22 = vld [vmem:[%s6813_s1 + $0x50] sm:$0xff] }
 0xff2   :  { %2837 = vmax.xlane.f32.xlu0 %v2790_v57 }
 0xff7   :  { %v2792_v19 = vpop.f32.mrf.mxu1 }
 0xff8   :  { %v2793_v60 = vadd.f32 %v3942_v54, %v2792_v19 }
 0xffa   :  { %2839 = vmax.xlane.f32.xlu1 %v2793_v60 }
 0xfff   :  { %v2795_v37 = vpop.f32.mrf.mxu1 }
0x1000   :  { %v2796_v61 = vadd.f32 %v3943_v5, %v2795_v37 }
0x1002   :  { %2841 = vmax.xlane.f32.xlu2 %v2796_v61 }
0x1007   :  { %v2798_v7 = vpop.f32.mrf.mxu1 }
0x1008   :  { %v2799_v10 = vadd.f32 %v3944_v35, %v2798_v7 }
0x100a   :  { %2843 = vmax.xlane.f32.xlu0 %v2799_v10 }
0x100f   :  { %v2801_v43 = vpop.f32.mrf.mxu1 }
0x1010   :  { %v2802_v0 = vadd.f32 %v3945_v34, %v2801_v43 }
0x1012   :  { %2845 = vmax.xlane.f32.xlu1 %v2802_v0 }
0x1017   :  { %v2804_v50 = vpop.f32.mrf.mxu1 }
0x1018   :  { %v2805_v42 = vadd.f32 %v3946_v9, %v2804_v50 }
0x101a   :  { %2847 = vmax.xlane.f32.xlu2 %v2805_v42 }
0x101f   :  { %v2807_v4 = vpop.f32.mrf.mxu1 }
0x1020   :  { %v6394_v32 = vadd.f32 %v3947_v27, %v2807_v4 }
0x1022   :  { %2849 = vmax.xlane.f32.xlu0 %v6394_v32 }
0x1027   :  { %v2810_v55 = vpop.f32.mrf.mxu1 }
0x1028   :  { %v6400_v62 = vadd.f32 %v3948_v13, %v2810_v55 }
0x102a   :  { %2851 = vmax.xlane.f32.xlu2 %v6400_v62 }
0x102f   :  { %v2813_v6 = vpop.f32.mrf.mxu1 }
0x1030   :  { %v6409_v56 = vadd.f32 %v3949_v44, %v2813_v6 }
0x1037   :  { %v2816_v16 = vpop.f32.mrf.mxu1 }
0x1038   :  { %v6418_v8 = vadd.f32 %v3950_v52, %v2816_v16  ;;  %v3956_v16 = vld [vmem:[%s6813_s1 + $0x78] sm:$0xff] }
0x103f   :  { %v2819_v40 = vpop.f32.mrf.mxu1 }
0x1047   :  { %v2822_v3 = vpop.f32.mrf.mxu1 }
0x104f   :  { %v2825_v37 = vpop.f32.mrf.mxu1 }
0x1065   :  { %v2838_v26 = vpop.xlane.xlu0 %2837 }
0x1066   :  { %v2869_v2 = vsub.f32 %v2790_v57, %v2838_v26  ;;  %v6427_v57 = vadd.f32 %v3951_v22, %v2819_v40 }
0x1068   :  { %v2885_v51 = vmul.f32 1.442695, %v2869_v2 }
0x106a   :  { %3843 = vpow2.f32 %v2885_v51  ;;  %v3955_v51 = vld [vmem:[%s6813_s1 + $0x70] sm:$0xff] }
0x106d   :  { %v2840_v12 = vpop.xlane.xlu1 %2839 }
0x106e   :  { %v2870_v15 = vsub.f32 %v2793_v60, %v2840_v12 }
0x1070   :  { %v6403_v48 = vpop.eup %3843  ;;  %v2887_v63 = vmul.f32 1.442695, %v2870_v15 }
0x1071   :  { %2917 = vadd.xlane.f32.xlu1 %v6403_v48 }
0x1072   :  { %3845 = vpow2.f32 %v2887_v63 }
0x1075   :  { %v2842_v21 = vpop.xlane.xlu2 %2841 }
0x1076   :  { %v2871_v18 = vsub.f32 %v2796_v61, %v2842_v21  ;;  %v3952_v61 = vld [vmem:[%s6813_s1 + $0x58] sm:$0xff] }
0x1077   :  { %v6436_v7 = vadd.f32 %v3952_v61, %v2822_v3 }
0x1078   :  { %v6411_v24 = vpop.eup %3845  ;;  %v2889_v31 = vmul.f32 1.442695, %v2871_v18 }
0x1079   :  { %2919 = vadd.xlane.f32.xlu0 %v6411_v24  ;;  %2853 = vmax.xlane.f32.xlu1 %v6409_v56 }
0x107a   :  { %3847 = vpow2.f32 %v2889_v31 }
0x107d   :  { %v2844_v39 = vpop.xlane.xlu0 %2843 }
0x107e   :  { %v2872_v20 = vsub.f32 %v2799_v10, %v2844_v39 }
0x1080   :  { %v6420_v14 = vpop.eup %3847  ;;  %v2891_v46 = vmul.f32 1.442695, %v2872_v20 }
0x1081   :  { %2921 = vadd.xlane.f32.xlu2 %v6420_v14  ;;  %2855 = vmax.xlane.f32.xlu0 %v6418_v8 }
0x1082   :  { %3849 = vpow2.f32 %v2891_v46 }
0x1085   :  { %v2846_v47 = vpop.xlane.xlu1 %2845 }
0x1086   :  { %v2873_v38 = vsub.f32 %v2802_v0, %v2846_v47  ;;  %v3953_v0 = vld [vmem:[%s6813_s1 + $0x60] sm:$0xff] }
0x1087   :  { %v6446_v50 = vadd.f32 %v3953_v0, %v2825_v37 }
0x1088   :  { %v6429_v19 = vpop.eup %3849  ;;  %v2893_v54 = vmul.f32 1.442695, %v2873_v38 }
0x1089   :  { %2857 = vmax.xlane.f32.xlu2 %v6427_v57  ;;  %2923 = vadd.xlane.f32.xlu1 %v6429_v19 }
0x108a   :  { %3851 = vpow2.f32 %v2893_v54 }
0x108d   :  { %v2848_v60 = vpop.xlane.xlu2 %2847 }
0x108e   :  { %v2874_v5 = vsub.f32 %v2805_v42, %v2848_v60  ;;  %v2828_v42 = vpop.f32.mrf.mxu1 }
0x1090   :  { %v6438_v35 = vpop.eup %3851  ;;  %v2895_v10 = vmul.f32 1.442695, %v2874_v5 }
0x1091   :  { %2925 = vadd.xlane.f32.xlu0 %v6438_v35  ;;  %2859 = vmax.xlane.f32.xlu1 %v6436_v7 }
0x1092   :  { %3853 = vpow2.f32 %v2895_v10 }
0x1095   :  { %v2850_v43 = vpop.xlane.xlu0 %2849 }
0x1096   :  { %v2875_v34 = vsub.f32 %v6394_v32, %v2850_v43  ;;  %v3954_v32 = vld [vmem:[%s6813_s1 + $0x68] sm:$0xff]  ;;  %v2831_v2 = vpop.f32.mrf.mxu1 }
0x1097   :  { %v6456_v13 = vadd.f32 %v3954_v32, %v2828_v42 }
0x1098   :  { %v6448_v9 = vpop.eup %3853  ;;  %v2897_v4 = vmul.f32 1.442695, %v2875_v34 }
0x1099   :  { %2927 = vadd.xlane.f32.xlu2 %v6448_v9  ;;  %2861 = vmax.xlane.f32.xlu0 %v6446_v50 }
0x109a   :  { %3855 = vpow2.f32 %v2897_v4 }
0x109d   :  { %v2852_v27 = vpop.xlane.xlu2 %2851 }
0x109e   :  { %v2876_v55 = vsub.f32 %v6400_v62, %v2852_v27  ;;  %v6465_v62 = vadd.f32 %v3955_v51, %v2831_v2  ;;  %v2834_v15 = vpop.f32.mrf.mxu1  ;;  %v3619_v2 = vld [vmem:[%s6814_s7 + $0x1f0] sm:$0xff] }
0x109f   :  { %v6474_v63 = vadd.f32 %v3956_v16, %v2834_v15 }
0x10a0   :  { %v6458_v26 = vpop.eup %3855  ;;  %v2899_v6 = vmul.f32 1.442695, %v2876_v55 }
0x10a1   :  { %2863 = vmax.xlane.f32.xlu2 %v6456_v13  ;;  %2929 = vadd.xlane.f32.xlu1 %v6458_v26 }
0x10a2   :  { %3857 = vpow2.f32 %v2899_v6  ;;  %v3620_v6 = vld [vmem:[%s6814_s7 + $0x1f8] sm:$0xff] }
0x10a3   :  { %3097 = vmatpush.msrb.mxu3 %v3620_v6 }
0x10a5   :  { %3098 = vmatpush.msrb.mxu3 %v3619_v2 }
0x10a8   :  { %v6467_v12 = vpop.eup %3857 }
0x10a9   :  { %2931 = vadd.xlane.f32.xlu0 %v6467_v12  ;;  %2865 = vmax.xlane.f32.xlu1 %v6465_v62 }
0x10b1   :  { %2867 = vmax.xlane.f32.xlu0 %v6474_v63 }
0x10e4   :  { %v2918_v21 = vpop.xlane.xlu1 %2917 }
0x10e5   :  { %3859 = vrcp.f32 %v2918_v21  ;;  %v3617_v21 = vld [vmem:[%s6814_s7 + $0x1e0] sm:$0xff] }
0x10eb   :  { %v3860_v18 = vpop.eup %3859 }
0x10ec   :  { %v2965_v44 = vmul.f32 %v3860_v18, %v6403_v48  ;;  %v2854_v31 = vpop.xlane.xlu1 %2853  ;;  %v2920_v40 = vpop.xlane.xlu0 %2919 }
0x10ed   :  { %v2877_v39 = vsub.f32 %v6409_v56, %v2854_v31  ;;  %3861 = vrcp.f32 %v2920_v40 }
0x10ee   :  { %2997 = vmatmul.f32.vlgmr.msra.gmra.mxu2 %v2965_v44  ;;  %v3616_v44 = vld [vmem:[%s6814_s7 + $0x1d8] sm:$0xff] }
0x10ef   :  { %v2901_v20 = vmul.f32 1.442695, %v2877_v39 }
0x10f1   :  { %3863 = vpow2.f32 %v2901_v20 }
0x10f3   :  { %v3862_v52 = vpop.eup %3861 }
0x10f4   :  { %v2922_v46 = vpop.xlane.xlu2 %2921  ;;  %v2856_v3 = vpop.xlane.xlu0 %2855  ;;  %v2966_v47 = vmul.f32 %v3862_v52, %v6411_v24 }
0x10f5   :  { %3865 = vrcp.f32 %v2922_v46  ;;  %v2878_v38 = vsub.f32 %v6418_v8, %v2856_v3  ;;  %v3613_v3 = vld [vmem:[%s6814_s7 + $0x1c0] sm:$0xff] }
0x10f6   :  { %3000 = vmatmul.f32.gmra.mxu2 %v2966_v47 }
0x10f7   :  { %v6481_v22 = vpop.eup %3863  ;;  %v2903_v48 = vmul.f32 1.442695, %v2878_v38  ;;  %v3612_v38 = vld [vmem:[%s6814_s7 + $0x1b8] sm:$0xff] }
0x10f8   :  { %2933 = vadd.xlane.f32.xlu2 %v6481_v22 }
0x10f9   :  { %3867 = vpow2.f32 %v2903_v48 }
0x10fb   :  { %v3866_v56 = vpop.eup %3865 }
0x10fc   :  { %v2858_v54 = vpop.xlane.xlu2 %2857  ;;  %v2924_v60 = vpop.xlane.xlu1 %2923  ;;  %v2967_v37 = vmul.f32 %v3866_v56, %v6420_v14 }
0x10fd   :  { %v2879_v5 = vsub.f32 %v6427_v57, %v2858_v54  ;;  %3869 = vrcp.f32 %v2924_v60 }
0x10fe   :  { %3003 = vmatmul.f32.gmra.mxu2 %v2967_v37 }
0x10ff   :  { %v6486_v24 = vpop.eup %3867  ;;  %v2905_v61 = vmul.f32 1.442695, %v2879_v5 }
0x1100   :  { %2935 = vadd.xlane.f32.xlu1 %v6486_v24 }
0x1101   :  { %3871 = vpow2.f32 %v2905_v61 }
0x1103   :  { %v3870_v8 = vpop.eup %3869 }
0x1104   :  { %v2860_v10 = vpop.xlane.xlu1 %2859  ;;  %v2926_v43 = vpop.xlane.xlu0 %2925  ;;  %v2968_v34 = vmul.f32 %v3870_v8, %v6429_v19 }
0x1105   :  { %v2880_v0 = vsub.f32 %v6436_v7, %v2860_v10  ;;  %3873 = vrcp.f32 %v2926_v43  ;;  %v3609_v43 = vld [vmem:[%s6814_s7 + $0x1a0] sm:$0xff] }
0x1106   :  { %3006 = vmatmul.f32.gmra.mxu2 %v2968_v34  ;;  %v3606_v34 = vld [vmem:[%s6814_s7 + $0x188] sm:$0xff] }
0x1107   :  { %v6491_v14 = vpop.eup %3871  ;;  %v2907_v57 = vmul.f32 1.442695, %v2880_v0  ;;  %v3605_v0 = vld [vmem:[%s6814_s7 + $0x180] sm:$0xff] }
0x1108   :  { %2937 = vadd.xlane.f32.xlu2 %v6491_v14 }
0x1109   :  { %3875 = vpow2.f32 %v2907_v57 }
0x110b   :  { %v3874_v42 = vpop.eup %3873 }
0x110c   :  { %v2928_v4 = vpop.xlane.xlu2 %2927  ;;  %v2862_v27 = vpop.xlane.xlu0 %2861  ;;  %v2969_v55 = vmul.f32 %v3874_v42, %v6438_v35  ;;  %v3618_v35 = vld [vmem:[%s6814_s7 + $0x1e8] sm:$0xff] }
0x110d   :  { %3877 = vrcp.f32 %v2928_v4  ;;  %v2881_v32 = vsub.f32 %v6446_v50, %v2862_v27  ;;  %3099 = vmatpush.msrb.mxu3 %v3618_v35 }
0x110e   :  { %3009 = vmatmul.f32.gmra.mxu2 %v2969_v55 }
0x110f   :  { %v6496_v19 = vpop.eup %3875  ;;  %v2909_v7 = vmul.f32 1.442695, %v2881_v32  ;;  %3100 = vmatpush.msrb.mxu3 %v3617_v21 }
0x1110   :  { %2939 = vadd.xlane.f32.xlu0 %v6496_v19 }
0x1111   :  { %3879 = vpow2.f32 %v2909_v7  ;;  %3101 = vmatpush.msrb.mxu3 %v3616_v44 }
0x1113   :  { %v3878_v50 = vpop.eup %3877 }
0x1114   :  { %v2864_v51 = vpop.xlane.xlu2 %2863  ;;  %v2930_v15 = vpop.xlane.xlu1 %2929  ;;  %v2970_v16 = vmul.f32 %v3878_v50, %v6448_v9  ;;  %v3615_v9 = vld [vmem:[%s6814_s7 + $0x1d0] sm:$0xff] }
0x1115   :  { %v2882_v18 = vsub.f32 %v6456_v13, %v2864_v51  ;;  %3881 = vrcp.f32 %v2930_v15  ;;  %v3614_v13 = vld [vmem:[%s6814_s7 + $0x1c8] sm:$0xff]  ;;  %3102 = vmatpush.msrb.mxu3 %v3615_v9 }
0x1116   :  { %3012 = vmatmul.f32.gmra.mxu2 %v2970_v16 }
0x1117   :  { %v6516_v31 = vpop.eup %3879  ;;  %v2911_v40 = vmul.f32 1.442695, %v2882_v18  ;;  %3103 = vmatpush.msrb.mxu3 %v3614_v13 }
0x1118   :  { %2941 = vadd.xlane.f32.xlu1 %v6516_v31 }
0x1119   :  { %3883 = vpow2.f32 %v2911_v40  ;;  %3104 = vmatpush.msrb.mxu3 %v3613_v3 }
0x111b   :  { %v3882_v39 = vpop.eup %3881  ;;  %3105 = vmatpush.msrb.mxu3 %v3612_v38 }
0x111c   :  { %v2866_v20 = vpop.xlane.xlu1 %2865  ;;  %v2932_v52 = vpop.xlane.xlu0 %2931  ;;  %v2971_v46 = vmul.f32 %v3882_v39, %v6458_v26  ;;  %v3611_v26 = vld [vmem:[%s6814_s7 + $0x1b0] sm:$0xff] }
0x111d   :  { %v2883_v47 = vsub.f32 %v6465_v62, %v2866_v20  ;;  %3885 = vrcp.f32 %v2932_v52  ;;  %v3610_v62 = vld [vmem:[%s6814_s7 + $0x1a8] sm:$0xff]  ;;  %3106 = vmatpush.msrb.mxu3 %v3611_v26  ;;  %v3631_v26 = vld [vmem:[%s6816_s9 + $0x1d0] sm:$0xff] }
0x111e   :  { %3015 = vmatmul.f32.gmra.mxu2 %v2971_v46  ;;  %v3633_v46 = vld [vmem:[%s6816_s9 + $0x1e0] sm:$0xff] }
0x111f   :  { %v6533_v48 = vpop.eup %3883  ;;  %v2913_v56 = vmul.f32 1.442695, %v2883_v47  ;;  %3107 = vmatpush.msrb.mxu3 %v3610_v62 }
0x1120   :  { %2943 = vadd.xlane.f32.xlu2 %v6533_v48 }
0x1121   :  { %3887 = vpow2.f32 %v2913_v56  ;;  %3108 = vmatpush.msrb.mxu3 %v3609_v43  ;;  %v3632_v56 = vld [vmem:[%s6816_s9 + $0x1d8] sm:$0xff] }
0x1122   :  { %v3628_v43 = vld [vmem:[%s6816_s9 + $0x1b8] sm:$0xff] }
0x1123   :  { %v3886_v54 = vpop.eup %3885 }
0x1124   :  { %v2868_v60 = vpop.xlane.xlu0 %2867  ;;  %v2972_v37 = vmul.f32 %v3886_v54, %v6467_v12  ;;  %v3608_v12 = vld [vmem:[%s6814_s7 + $0x198] sm:$0xff] }
0x1125   :  { %v2884_v5 = vsub.f32 %v6474_v63, %v2868_v60  ;;  %3109 = vmatpush.msrb.mxu3 %v3608_v12  ;;  %v3607_v63 = vld [vmem:[%s6814_s7 + $0x190] sm:$0xff]  ;;  %v3629_v60 = vld [vmem:[%s6816_s9 + $0x1c0] sm:$0xff] }
0x1126   :  { %3018 = vmatmul.f32.gmra.mxu2 %v2972_v37  ;;  %v3627_v12 = vld [vmem:[%s6816_s9 + $0x1b0] sm:$0xff] }
0x1127   :  { %v6544_v61 = vpop.eup %3887  ;;  %v2915_v8 = vmul.f32 1.442695, %v2884_v5  ;;  %3110 = vmatpush.msrb.mxu3 %v3607_v63 }
0x1128   :  { %2945 = vadd.xlane.f32.xlu0 %v6544_v61 }
0x1129   :  { %3889 = vpow2.f32 %v2915_v8  ;;  %3111 = vmatpush.msrb.mxu3 %v3606_v34 }
0x112b   :  { %3112 = vmatpush.msrb.mxu3 %v3605_v0  ;;  %v3625_v0 = vld [vmem:[%s6816_s9 + $0x1a0] sm:$0xff] }
0x112f   :  { %v6547_v10 = vpop.eup %3889 }
0x1130   :  { %2947 = vadd.xlane.f32.xlu1 %v6547_v10 }
0x116b   :  { %v2934_v57 = vpop.xlane.xlu2 %2933 }
0x116c   :  { %3891 = vrcp.f32 %v2934_v57 }
0x1171   :  { %v2998_v42 = vpop.f32.mrf.mxu2 }
0x1172   :  { %v3892_v4 = vpop.eup %3891  ;;  %v3046_v27 = vmax.f32 %v2998_v42, 0.0 }
0x1173   :  { %v2936_v55 = vpop.xlane.xlu1 %2935  ;;  %v2973_v32 = vmul.f32 %v3892_v4, %v6481_v22 }
0x1174   :  { %v6567_v7 = vadd.f32 %v3046_v27, %v6193_v17  ;;  %3893 = vrcp.f32 %v2936_v55  ;;  %v3624_v27 = vld [vmem:[%s6816_s9 + $0x198] sm:$0xff] }
0x1175   :  { %3021 = vmatmul.f32.gmra.mxu2 %v2973_v32 }
0x1176   :  { %3113 = vmatmul.f32.vlgmr.msrb.gmra.mxu3 %v6567_v7 }
0x1179   :  { %v3001_v6 = vpop.f32.mrf.mxu2 }
0x117a   :  { %v3894_v2 = vpop.eup %3893  ;;  %v3047_v35 = vmax.f32 %v3001_v6, 0.0 }
0x117b   :  { %v2938_v50 = vpop.xlane.xlu2 %2937  ;;  %v2974_v51 = vmul.f32 %v3894_v2, %v6486_v24 }
0x117c   :  { %v6572_v15 = vadd.f32 %v3047_v35, %v6201_v41  ;;  %3895 = vrcp.f32 %v2938_v50  ;;  %v3622_v35 = vld [vmem:[%s6816_s9 + $0x188] sm:$0xff] }
0x117d   :  { %3024 = vmatmul.f32.gmra.mxu2 %v2974_v51 }
0x117e   :  { %3116 = vmatmul.f32.gmra.mxu3 %v6572_v15 }
0x1181   :  { %v3004_v22 = vpop.f32.mrf.mxu2 }
0x1182   :  { %v3896_v17 = vpop.eup %3895  ;;  %v3048_v16 = vmax.f32 %v3004_v22, 0.0 }
0x1183   :  { %v2940_v21 = vpop.xlane.xlu0 %2939  ;;  %v2975_v18 = vmul.f32 %v3896_v17, %v6491_v14  ;;  %v3635_v14 = vld [vmem:[%s6816_s9 + $0x1f0] sm:$0xff] }
0x1184   :  { %v6577_v44 = vadd.f32 %v3048_v16, %v6209_v33  ;;  %3897 = vrcp.f32 %v2940_v21  ;;  %v3636_v33 = vld [vmem:[%s6816_s9 + $0x1f8] sm:$0xff] }
0x1185   :  { %3027 = vmatmul.f32.gmra.mxu2 %v2975_v18  ;;  %3197 = vmatpush.msrb.mxu0 %v3636_v33 }
0x1186   :  { %3119 = vmatmul.f32.gmra.mxu3 %v6577_v44 }
0x1187   :  { %3198 = vmatpush.msrb.mxu0 %v3635_v14 }
0x1189   :  { %v3007_v24 = vpop.f32.mrf.mxu2 }
0x118a   :  { %v3898_v41 = vpop.eup %3897  ;;  %v3049_v40 = vmax.f32 %v3007_v24, 0.0 }
0x118b   :  { %v2942_v9 = vpop.xlane.xlu1 %2941  ;;  %v2976_v13 = vmul.f32 %v3898_v41, %v6496_v19  ;;  %v3634_v19 = vld [vmem:[%s6816_s9 + $0x1e8] sm:$0xff] }
0x118c   :  { %v6582_v39 = vadd.f32 %v3049_v40, %v6217_v45  ;;  %3899 = vrcp.f32 %v2942_v9  ;;  %3199 = vmatpush.msrb.mxu0 %v3634_v19 }
0x118d   :  { %3030 = vmatmul.f32.gmra.mxu2 %v2976_v13 }
0x118e   :  { %3122 = vmatmul.f32.gmra.mxu3 %v6582_v39  ;;  %3200 = vmatpush.msrb.mxu0 %v3633_v46 }
0x1190   :  { %3201 = vmatpush.msrb.mxu0 %v3632_v56 }
0x1191   :  { %v3010_v20 = vpop.f32.mrf.mxu2 }
0x1192   :  { %v3900_v45 = vpop.eup %3899  ;;  %v3050_v52 = vmax.f32 %v3010_v20, 0.0  ;;  %3202 = vmatpush.msrb.mxu0 %v3631_v26 }
0x1193   :  { %v2944_v3 = vpop.xlane.xlu2 %2943  ;;  %v2977_v47 = vmul.f32 %v3900_v45, %v6516_v31  ;;  %v3630_v31 = vld [vmem:[%s6816_s9 + $0x1c8] sm:$0xff] }
0x1194   :  { %v6599_v38 = vadd.f32 %v3050_v52, %v6225_v23  ;;  %3901 = vrcp.f32 %v2944_v3  ;;  %3203 = vmatpush.msrb.mxu0 %v3630_v31 }
0x1195   :  { %3033 = vmatmul.f32.gmra.mxu2 %v2977_v47 }
0x1196   :  { %3125 = vmatmul.f32.gmra.mxu3 %v6599_v38  ;;  %3204 = vmatpush.msrb.mxu0 %v3629_v60 }
0x1198   :  { %3205 = vmatpush.msrb.mxu0 %v3628_v43 }
0x1199   :  { %v3013_v23 = vpop.f32.mrf.mxu2 }
0x119a   :  { %v3902_v62 = vpop.eup %3901  ;;  %v3051_v54 = vmax.f32 %v3013_v23, 0.0  ;;  %3206 = vmatpush.msrb.mxu0 %v3627_v12 }
0x119b   :  { %v2946_v37 = vpop.xlane.xlu0 %2945  ;;  %v2978_v5 = vmul.f32 %v3902_v62, %v6533_v48  ;;  %v3626_v48 = vld [vmem:[%s6816_s9 + $0x1a8] sm:$0xff] }
0x119c   :  { %v6616_v8 = vadd.f32 %v3051_v54, %v6233_v25  ;;  %3903 = vrcp.f32 %v2946_v37  ;;  %3207 = vmatpush.msrb.mxu0 %v3626_v48 }
0x119d   :  { %3036 = vmatmul.f32.gmra.mxu2 %v2978_v5 }
0x119e   :  { %3128 = vmatmul.f32.gmra.mxu3 %v6616_v8  ;;  %3208 = vmatpush.msrb.mxu0 %v3625_v0 }
0x11a0   :  { %3209 = vmatpush.msrb.mxu0 %v3624_v27 }
0x11a1   :  { %v3016_v25 = vpop.f32.mrf.mxu2 }
0x11a2   :  { %v3904_v63 = vpop.eup %3903  ;;  %v3052_v34 = vmax.f32 %v3016_v25, 0.0 }
0x11a3   :  { %v2948_v57 = vpop.xlane.xlu1 %2947  ;;  %v2979_v42 = vmul.f32 %v3904_v63, %v6544_v61 }
0x11a4   :  { %v6633_v4 = vadd.f32 %v3052_v34, %v6241_v30  ;;  %3905 = vrcp.f32 %v2948_v57  ;;  %v3623_v30 = vld [vmem:[%s6816_s9 + $0x190] sm:$0xff] }
0x11a5   :  { %3039 = vmatmul.f32.gmra.mxu2 %v2979_v42  ;;  %3210 = vmatpush.msrb.mxu0 %v3623_v30 }
0x11a6   :  { %3131 = vmatmul.f32.gmra.mxu3 %v6633_v4 }
0x11a7   :  { %3211 = vmatpush.msrb.mxu0 %v3622_v35 }
0x11a9   :  { %v3019_v55 = vpop.f32.mrf.mxu2 }
0x11aa   :  { %v3906_v32 = vpop.eup %3905  ;;  %v3053_v6 = vmax.f32 %v3019_v55, 0.0 }
0x11ab   :  { %v2980_v2 = vmul.f32 %v3906_v32, %v6547_v10  ;;  %v3621_v10 = vld [vmem:[%s6816_s9 + $0x180] sm:$0xff] }
0x11ac   :  { %v6641_v61 = vadd.f32 %v3053_v6, %v6249_v58  ;;  %3212 = vmatpush.msrb.mxu0 %v3621_v10  ;;  %v6656_v58 = vld [vmem:[%s6815_s8 + $0x3] ss:$0 sm:$0xff] }
0x11ad   :  { %3042 = vmatmul.f32.gmra.mxu2 %v2980_v2 }
0x11ae   :  { %3134 = vmatmul.f32.gmra.mxu3 %v6641_v61 }
0x11f8   :  { %v3022_v50 = vpop.f32.mrf.mxu2 }
0x11f9   :  { %v3054_v51 = vmax.f32 %v3022_v50, 0.0  ;;  %v3114_v22 = vpop.f32.mrf.mxu3 }
0x11fa   :  { %v3115_v17 = vadd.f32 %v6656_v58, %v3114_v22 }
0x11fb   :  { %v6660_v16 = vadd.f32 %v3054_v51, %v6257_v28 }
0x11fc   :  { %v3162_v21 = vmax.f32 %v3115_v17, 0.0 }
0x11fd   :  { %3137 = vmatmul.f32.gmra.mxu3 %v6660_v16 }
0x11fe   :  { %3213 = vmatmul.f32.vlgmr.msrb.gmra.mxu0 %v3162_v21 }
0x1200   :  { %v3025_v18 = vpop.f32.mrf.mxu2 }
0x1201   :  { %v3055_v24 = vmax.f32 %v3025_v18, 0.0  ;;  %v3117_v41 = vpop.f32.mrf.mxu3 }
0x1202   :  { %v3118_v40 = vadd.f32 %v6656_v58, %v3117_v41 }
0x1203   :  { %v6665_v9 = vadd.f32 %v3055_v24, %v6264_v29 }
0x1204   :  { %v3163_v13 = vmax.f32 %v3118_v40, 0.0 }
0x1205   :  { %3140 = vmatmul.f32.gmra.mxu3 %v6665_v9 }
0x1206   :  { %3216 = vmatmul.f32.gmra.mxu0 %v3163_v13 }
0x1208   :  { %v3028_v33 = vpop.f32.mrf.mxu2 }
0x1209   :  { %v3056_v14 = vmax.f32 %v3028_v33, 0.0  ;;  %v3120_v28 = vpop.f32.mrf.mxu3 }
0x120a   :  { %v3121_v19 = vadd.f32 %v6656_v58, %v3120_v28 }
0x120b   :  { %v6670_v20 = vadd.f32 %v3056_v14, %v6271_v1 }
0x120c   :  { %v3164_v45 = vmax.f32 %v3121_v19, 0.0 }
0x120d   :  { %3143 = vmatmul.f32.gmra.mxu3 %v6670_v20 }
0x120e   :  { %3219 = vmatmul.f32.gmra.mxu0 %v3164_v45 }
0x1210   :  { %v3031_v52 = vpop.f32.mrf.mxu2 }
0x1211   :  { %v3057_v46 = vmax.f32 %v3031_v52, 0.0  ;;  %v3123_v29 = vpop.f32.mrf.mxu3 }
0x1212   :  { %v3124_v3 = vadd.f32 %v6656_v58, %v3123_v29 }
0x1213   :  { %v6675_v47 = vadd.f32 %v3057_v46, %v6278_v36 }
0x1214   :  { %v3165_v56 = vmax.f32 %v3124_v3, 0.0 }
0x1215   :  { %3146 = vmatmul.f32.gmra.mxu3 %v6675_v47 }
0x1216   :  { %3222 = vmatmul.f32.gmra.mxu0 %v3165_v56 }
0x1218   :  { %v3034_v26 = vpop.f32.mrf.mxu2 }
0x1219   :  { %v3058_v31 = vmax.f32 %v3034_v26, 0.0  ;;  %v3126_v1 = vpop.f32.mrf.mxu3 }
0x121a   :  { %v3127_v23 = vadd.f32 %v6656_v58, %v3126_v1 }
0x121b   :  { %v6680_v62 = vadd.f32 %v3058_v31, %v6285_v11 }
0x121c   :  { %v3166_v54 = vmax.f32 %v3127_v23, 0.0 }
0x121d   :  { %3149 = vmatmul.f32.gmra.mxu3 %v6680_v62 }
0x121e   :  { %3225 = vmatmul.f32.gmra.mxu0 %v3166_v54 }
0x1220   :  { %v3037_v60 = vpop.f32.mrf.mxu2 }
0x1221   :  { %v3059_v37 = vmax.f32 %v3037_v60, 0.0  ;;  %v3129_v36 = vpop.f32.mrf.mxu3 }
0x1222   :  { %v3130_v5 = vadd.f32 %v6656_v58, %v3129_v36 }
0x1223   :  { %v6685_v43 = vadd.f32 %v3059_v37, %v6292_v59 }
0x1224   :  { %v3167_v12 = vmax.f32 %v3130_v5, 0.0 }
0x1225   :  { %3152 = vmatmul.f32.gmra.mxu3 %v6685_v43 }
0x1226   :  { %3228 = vmatmul.f32.gmra.mxu0 %v3167_v12 }
0x1228   :  { %v3040_v48 = vpop.f32.mrf.mxu2 }
0x1229   :  { %v3060_v25 = vmax.f32 %v3040_v48, 0.0  ;;  %v3132_v11 = vpop.f32.mrf.mxu3 }
0x122a   :  { %v3133_v63 = vadd.f32 %v6656_v58, %v3132_v11 }
0x122b   :  { %v6690_v34 = vadd.f32 %v3060_v25, %v6299_v49 }
0x122c   :  { %v3168_v0 = vmax.f32 %v3133_v63, 0.0 }
0x122d   :  { %3155 = vmatmul.f32.gmra.mxu3 %v6690_v34 }
0x122e   :  { %3231 = vmatmul.f32.gmra.mxu0 %v3168_v0 }
0x1230   :  { %v3043_v57 = vpop.f32.mrf.mxu2 }
0x1231   :  { %v3061_v42 = vmax.f32 %v3043_v57, 0.0  ;;  %v3135_v59 = vpop.f32.mrf.mxu3 }
0x1232   :  { %v3136_v27 = vadd.f32 %v6656_v58, %v3135_v59 }
0x1233   :  { %v3077_v55 = vadd.f32 %v3061_v42, %v6310_v53 }
0x1234   :  { %v3169_v32 = vmax.f32 %v3136_v27, 0.0 }
0x1235   :  { %3158 = vmatmul.f32.gmra.mxu3 %v3077_v55 }
0x1236   :  { %3234 = vmatmul.f32.gmra.mxu0 %v3169_v32 }
0x127b   :  { %v6702_v45 = vpop.f32.mrf.mxu0 }
0x1280   :  { %v3138_v6 = vpop.f32.mrf.mxu3 }
0x1281   :  { %v3139_v2 = vadd.f32 %v6656_v58, %v3138_v6 }
0x1283   :  { %v3170_v30 = vmax.f32 %v3139_v2, 0.0  ;;  %v6705_v3 = vpop.f32.mrf.mxu0 }
0x1285   :  { %3237 = vmatmul.f32.gmra.mxu0 %v3170_v30 }
0x1288   :  { %v3141_v49 = vpop.f32.mrf.mxu3 }
0x1289   :  { %v3142_v35 = vadd.f32 %v6656_v58, %v3141_v49 }
0x128b   :  { %v3171_v10 = vmax.f32 %v3142_v35, 0.0  ;;  %v6707_v56 = vpop.f32.mrf.mxu0 }
0x128d   :  { %3240 = vmatmul.f32.gmra.mxu0 %v3171_v10 }
0x1290   :  { %v3144_v50 = vpop.f32.mrf.mxu3 }
0x1291   :  { %v3145_v51 = vadd.f32 %v6656_v58, %v3144_v50 }
0x1293   :  { %v3172_v22 = vmax.f32 %v3145_v51, 0.0  ;;  %v6709_v26 = vpop.f32.mrf.mxu0 }
0x1295   :  { %3243 = vmatmul.f32.gmra.mxu0 %v3172_v22 }
0x1298   :  { %v3147_v17 = vpop.f32.mrf.mxu3 }
0x1299   :  { %v3148_v53 = vadd.f32 %v6656_v58, %v3147_v17 }
0x129b   :  { %v3173_v21 = vmax.f32 %v3148_v53, 0.0  ;;  %v3226_v31 = vpop.f32.mrf.mxu0 }
0x129d   :  { %3246 = vmatmul.f32.gmra.mxu0 %v3173_v21 }
0x12a0   :  { %v3150_v18 = vpop.f32.mrf.mxu3 }
0x12a1   :  { %v3151_v24 = vadd.f32 %v6656_v58, %v3150_v18 }
0x12a3   :  { %v3174_v41 = vmax.f32 %v3151_v24, 0.0  ;;  %v3229_v1 = vpop.f32.mrf.mxu0 }
0x12a5   :  { %3249 = vmatmul.f32.gmra.mxu0 %v3174_v41 }
0x12a8   :  { %v3153_v40 = vpop.f32.mrf.mxu3 }
0x12a9   :  { %v3154_v13 = vadd.f32 %v6656_v58, %v3153_v40 }
0x12ab   :  { %v3175_v33 = vmax.f32 %v3154_v13, 0.0  ;;  %v3232_v23 = vpop.f32.mrf.mxu0 }
0x12ad   :  { %3252 = vmatmul.f32.gmra.mxu0 %v3175_v33 }
0x12b0   :  { %v3156_v14 = vpop.f32.mrf.mxu3 }
0x12b1   :  { %v3157_v28 = vadd.f32 %v6656_v58, %v3156_v14  ;;  %v3957_v14 = vmov 0  }
0x12b2   :  { %3640 = vset.pattern.permute.xlu2 %v3957_v14  ;;  %3641 = vset.pattern.permute.xlu0 %v3957_v14 }
0x12b3   :  { %v3176_v19 = vmax.f32 %v3157_v28, 0.0  ;;  %v3235_v54 = vpop.f32.mrf.mxu0 }
0x12b5   :  { %3255 = vmatmul.f32.gmra.mxu0 %v3176_v19 }
0x12b8   :  { %v3159_v52 = vpop.f32.mrf.mxu3 }
0x12b9   :  { %v3160_v46 = vadd.f32 %v6656_v58, %v3159_v52  ;;  %v6714_v58 = vld [vmem:[%s6817_s10 + $0x3] ss:$0 sm:$0xff]  ;;  %v3335_v52 = vld [vmem:[%s6819_s2 + $0x68] sm:$0xff] }
0x12bb   :  { %v3177_v29 = vmax.f32 %v3160_v46, 0.0  ;;  %v3334_v46 = vld [vmem:[%s6819_s2 + $0x60] sm:$0xff] }
0x12bd   :  { %3258 = vmatmul.f32.gmra.mxu0 %v3177_v29  ;;  %v3224_v29 = vadd.f32 %v6714_v58, %v6709_v26 }
0x12bf   :  { %v3265_v26 = vmax.f32 %v3224_v29, 0.0 }
0x1302   :  { %v3238_v60 = vpop.f32.mrf.mxu0 }
0x130a   :  { %v3241_v37 = vpop.f32.mrf.mxu0 }
0x1312   :  { %v3244_v36 = vpop.f32.mrf.mxu0 }
0x1313   :  { %v3245_v10 = vadd.f32 %v6714_v58, %v3244_v36  ;;  %v3330_v36 = vld [vmem:[%s6819_s2 + $0x40] sm:$0xff] }
0x1315   :  { %v3272_v22 = vmax.f32 %v3245_v10, 0.0 }
0x1317   :  { %v3288_v21 = vadd.f32 %v3272_v22, %v6670_v20  ;;  %v18_v20 = vstv %s6818_s12 }
0x1318   :  { %19 = vst [vmem:[#allocation2] sm:$0x1] %v18_v20 }
0x131a   :  { %v3247_v5 = vpop.f32.mrf.mxu0 }
0x131b   :  { %v3248_v30 = vadd.f32 %v6714_v58, %v3247_v5  ;;  %v3218_v5 = vadd.f32 %v6714_v58, %v6705_v3 }
0x131d   :  { %v3273_v50 = vmax.f32 %v3248_v30, 0.0 }
0x131f   :  { %v3289_v17 = vadd.f32 %v3273_v50, %v6675_v47  ;;  %v3230_v47 = vadd.f32 %v6714_v58, %v3229_v1 }
0x1321   :  { %v3267_v28 = vmax.f32 %v3230_v47, 0.0 }
0x1322   :  { %v3250_v12 = vpop.f32.mrf.mxu0 }
0x1323   :  { %v3251_v32 = vadd.f32 %v6714_v58, %v3250_v12 }
0x1325   :  { %v3274_v49 = vmax.f32 %v3251_v32, 0.0 }
0x1327   :  { %v3290_v51 = vadd.f32 %v3274_v49, %v6680_v62  ;;  %v3233_v62 = vadd.f32 %v6714_v58, %v3232_v23  ;;  %v3295_v23 = vld [vmem:[#allocation2] sm:$0x1] }
0x1328   :  { %3298 = vperm.xlu2 %3640, %v3295_v23  }
0x1329   :  { %v3268_v13 = vmax.f32 %v3233_v62, 0.0 }
0x132a   :  { %v3253_v48 = vpop.f32.mrf.mxu0 }
0x132b   :  { %v3254_v42 = vadd.f32 %v6714_v58, %v3253_v48  ;;  %v3284_v19 = vadd.f32 %v3268_v13, %v6633_v4  ;;  %v3333_v4 = vld [vmem:[%s6819_s2 + $0x58] sm:$0xff]  ;;  %v3328_v48 = vld [vmem:[%s6819_s2 + $0x30] sm:$0xff] }
0x132d   :  { %v3275_v6 = vmax.f32 %v3254_v42, 0.0  ;;  %v3294_v42 = vld [vmem:[%s6820_s11] sm:$0x1] }
0x132f   :  { %v3291_v35 = vadd.f32 %v3275_v6, %v6685_v43  ;;  %v3236_v43 = vadd.f32 %v6714_v58, %v3235_v54  ;;  %v3332_v54 = vld [vmem:[%s6819_s2 + $0x50] sm:$0xff] }
0x1331   :  { %v3269_v41 = vmax.f32 %v3236_v43, 0.0 }
0x1332   :  { %v3256_v25 = vpop.f32.mrf.mxu0 }
0x1333   :  { %v3257_v63 = vadd.f32 %v6714_v58, %v3256_v25  ;;  %v3285_v33 = vadd.f32 %v3269_v41, %v6641_v61  ;;  %v3227_v61 = vadd.f32 %v6714_v58, %v3226_v31  ;;  %v3283_v31 = vadd.f32 %v3267_v28, %v6616_v8  ;;  %v3331_v8 = vld [vmem:[%s6819_s2 + $0x48] sm:$0xff] }
0x1334   :  { %v3215_v25 = vadd.f32 %v6714_v58, %v6702_v45  ;;  %v3325_v45 = vld [vmem:[%s6819_s2 + $0x18] sm:$0xff] }
0x1335   :  { %v3276_v59 = vmax.f32 %v3257_v63, 0.0  ;;  %v3266_v1 = vmax.f32 %v3227_v61, 0.0  ;;  %v3326_v63 = vld [vmem:[%s6819_s2 + $0x20] sm:$0xff] }
0x1337   :  { %v3292_v2 = vadd.f32 %v3276_v59, %v6690_v34  ;;  %v3239_v34 = vadd.f32 %v6714_v58, %v3238_v60  ;;  %v3221_v60 = vadd.f32 %v6714_v58, %v6707_v56  ;;  %v3281_v56 = vadd.f32 %v3265_v26, %v6582_v39  ;;  %v3327_v39 = vld [vmem:[%s6819_s2 + $0x28] sm:$0xff]  ;;  %v3322_v59 = vld [vmem:[%s6819_s2] sm:$0xff] }
0x1339   :  { %v3270_v18 = vmax.f32 %v3239_v34, 0.0  ;;  %v3264_v12 = vmax.f32 %v3221_v60, 0.0 }
0x133a   :  { %v3259_v11 = vpop.f32.mrf.mxu0 }
0x133b   :  { %v3260_v0 = vadd.f32 %v6714_v58, %v3259_v11  ;;  %v3286_v40 = vadd.f32 %v3270_v18, %v6660_v16  ;;  %v3336_v16 = vld [vmem:[%s6819_s2 + $0x70] sm:$0xff]  ;;  %v3263_v11 = vmax.f32 %v3218_v5, 0.0  ;;  %v3280_v3 = vadd.f32 %v3264_v12, %v6577_v44 }
0x133c   :  { %v3324_v44 = vld [vmem:[%s6819_s2 + $0x10] sm:$0xff] }
0x133d   :  { %v3277_v57 = vmax.f32 %v3260_v0, 0.0  ;;  %v3262_v0 = vmax.f32 %v3215_v25, 0.0 }
0x133f   :  { %v3293_v27 = vadd.f32 %v3277_v57, %v3077_v55  ;;  %v3242_v55 = vadd.f32 %v6714_v58, %v3241_v37  ;;  %v3282_v37 = vadd.f32 %v3266_v1, %v6599_v38  ;;  %v3329_v38 = vld [vmem:[%s6819_s2 + $0x38] sm:$0xff]  ;;  %v3279_v57 = vadd.f32 %v3263_v11, %v6572_v15  ;;  %v3323_v15 = vld [vmem:[%s6819_s2 + $0x8] sm:$0xff] }
0x1340   :  { %v3278_v58 = vadd.f32 %v3262_v0, %v6567_v7 }
0x1341   :  { %3302 = vmatpush.xpose.msrb.mxu1 %v3293_v27  ;;  %v3271_v53 = vmax.f32 %v3242_v55, 0.0 }
0x1343   :  { %v3287_v24 = vadd.f32 %v3271_v53, %v6665_v9  ;;  %v3337_v9 = vld [vmem:[%s6819_s2 + $0x78] sm:$0xff] }
0x1344   :  { %3338 = vmatpush.msrb.mxu2 %v3337_v9 }
0x1345   :  { %3303 = vmatpush.xpose.msrb.mxu1 %v3292_v2 }
0x1346   :  { %3339 = vmatpush.msrb.mxu2 %v3336_v16 }
0x1348   :  { %3340 = vmatpush.msrb.mxu2 %v3335_v52 }
0x1349   :  { %3304 = vmatpush.xpose.msrb.mxu1 %v3291_v35 }
0x134a   :  { %3341 = vmatpush.msrb.mxu2 %v3334_v46 }
0x134c   :  { %3342 = vmatpush.msrb.mxu2 %v3333_v4 }
0x134d   :  { %3305 = vmatpush.xpose.msrb.mxu1 %v3290_v51 }
0x134e   :  { %3343 = vmatpush.msrb.mxu2 %v3332_v54 }
0x1350   :  { %3344 = vmatpush.msrb.mxu2 %v3331_v8 }
0x1351   :  { %3306 = vmatpush.xpose.msrb.mxu1 %v3289_v17 }
0x1352   :  { %3345 = vmatpush.msrb.mxu2 %v3330_v36 }
0x1354   :  { %3346 = vmatpush.msrb.mxu2 %v3329_v38 }
0x1355   :  { %3307 = vmatpush.xpose.msrb.mxu1 %v3288_v21 }
0x1356   :  { %3347 = vmatpush.msrb.mxu2 %v3328_v48 }
0x1358   :  { %3348 = vmatpush.msrb.mxu2 %v3327_v39 }
0x1359   :  { %3308 = vmatpush.xpose.msrb.mxu1 %v3287_v24 }
0x135a   :  { %3349 = vmatpush.msrb.mxu2 %v3326_v63 }
0x135c   :  { %3350 = vmatpush.msrb.mxu2 %v3325_v45 }
0x135d   :  { %3309 = vmatpush.xpose.msrb.mxu1 %v3286_v40 }
0x135e   :  { %3351 = vmatpush.msrb.mxu2 %v3324_v44 }
0x1360   :  { %3352 = vmatpush.msrb.mxu2 %v3323_v15 }
0x1361   :  { %3310 = vmatpush.xpose.msrb.mxu1 %v3285_v33 }
0x1362   :  { %3353 = vmatpush.msrb.mxu2 %v3322_v59 }
0x1365   :  { %3311 = vmatpush.xpose.msrb.mxu1 %v3284_v19 }
0x1369   :  { %3312 = vmatpush.xpose.msrb.mxu1 %v3283_v31 }
0x136d   :  { %3313 = vmatpush.xpose.msrb.mxu1 %v3282_v37 }
0x1371   :  { %3314 = vmatpush.xpose.msrb.mxu1 %v3281_v56 }
0x1375   :  { %3315 = vmatpush.xpose.msrb.mxu1 %v3280_v3 }
0x1379   :  { %3316 = vmatpush.xpose.msrb.mxu1 %v3279_v57 }
0x137d   :  { %3317 = vmatpush.xpose.msrb.mxu1 %v3278_v58 }
0x1380   :  { %3318 = vmatmul.f32.vlgmr.msrb.gmra.mxu1 %v3294_v42 }
0x1382   :  { %v3299_v27 = vpop.permute.xlu2 %3298 }
0x1383   :  { %v3301_v32 = vperm.slane %v3299_v27, 0 }
0x13fd   :  { %v3319_v7 = vpop.f32.mrf.mxu1 }
0x13fe   :  { %v3320_v6 = vadd.f32 %v3319_v7, %v3301_v32 }
0x1400   :  { %3354 = vmatmul.f32.vlgmr.msrb.gmra.mxu2 %v3320_v6 }
0x1483   :  { %v3355_v2 = vpop.f32.mrf.mxu2 }
0x1484   :  { %3907 = vrcp.f32 %v3355_v2  ;;  %v3369_v10 = vand.u32 2147483648, %v3355_v2  ;;  %v3367_v51 = vand.u32 2147483647, %v3355_v2  ;;  %vm3363_vm2 = vweird.f32 %v3355_v2 }
0x1486   :  { %v3370_v22 = vor.u32 1.1754944e-38, %v3369_v10  ;;  %vm3368_vm4 = vcmp.eq.f32.partialorder %v3367_v51, 8.507059e+37 }
0x148a   :  { %v3908_v30 = vpop.eup %3907 }
0x148b   :  { %v3359_v49 = vmul.f32 %v3908_v30, %v3355_v2  ;;  %vm3364_vm1 = vweird.f32 %v3908_v30 }
0x148c   :  { %vm3365_vm3 = vmor %vm3363_vm2, %vm3364_vm1 }
0x148d   :  { %v3360_v35 = vsub.f32 1.0, %v3359_v49 }
0x148f   :  { %v3361_v50 = vmul.f32 %v3908_v30, %v3360_v35 }
0x1491   :  { %v3362_v55 = vadd.f32 %v3908_v30, %v3361_v50 }
0x1493   :  { %v3366_v17 = vsel %vm3365_vm3, %v3908_v30, %v3362_v55 }
0x1494   :  { %v3371_v34 = vsel %vm3368_vm4, %v3370_v22, %v3366_v17 }
0x1495   :  { %v3372_v53 = vmul.f32 %v3371_v34, %v3320_v6 }
0x1497   :  { %3373 = vst [vmem:[%s6821_s13] sm:$0x1] %v3372_v53 }

</bundles_post_ra>
